<compile_context>
chip_gen: v6e
topology: v6e:2x2x1
jax: 0.10.0
libtpu: 0.0.40
codegen_flags: <defaults>
</compile_context>

<pallas_src>
import jax
import jax.numpy as jnp
from jax import lax
from jax.experimental import pallas as pl
from jax.experimental.pallas import tpu as pltpu

EPS = 1e-5
LANE = 128


# ------------------------------ small helpers ------------------------------ #

def _round_up(v, m):
    return (v + m - 1) // m * m


def _pad_lane(a):
    """Zero-pad last axis to a multiple of 128 (lane-dense)."""
    c = a.shape[-1]
    cp = _round_up(c, LANE)
    if cp == c:
        return a
    pad = [(0, 0)] * (a.ndim - 1) + [(0, cp - c)]
    return jnp.pad(a, pad)


def _vmem_limit_bytes():
    """Generation-aware scoped-VMEM budget (v5e/v6e: 128 MiB phys, v7x: 64 MiB)."""
    try:
        cap = pltpu.get_tpu_info().vmem_capacity_bytes
        return int(min(cap * 3 // 4, 100 * 1024 * 1024))
    except Exception:
        return 32 * 1024 * 1024


def _pick_band(h, bytes_per_row, budget):
    """Largest multiple-of-8 divisor of h (or h itself) whose band fits budget."""
    cands = [t for t in range(h, 0, -1) if h % t == 0 and (t % 8 == 0 or t == h)]
    for t in cands:
        if 2 * t * bytes_per_row <= budget:     # ~double-buffered in + out
            return t
    return cands[-1]


def _fold_bn_stats(ps, gamma_p, beta_p, count):
    """Partial (sum, sumsq) per tile -> folded per-channel scale/shift."""
    s = jnp.sum(ps[:, 0, :], axis=0)                       # (Cp,)
    ss = jnp.sum(ps[:, 1, :], axis=0)                      # (Cp,)
    mean = s / count
    var = jnp.maximum(ss / count - mean * mean, 0.0)
    scale = gamma_p * lax.rsqrt(var + EPS)                 # (1, Cp)
    shift = beta_p - mean * scale                          # (1, Cp)
    return scale, shift


# ------------------------------ kernel helpers ------------------------------ #

def _fill_halo_and_interior(pad_sc, x_hwc, h, w):
    """Zero only the 1-pixel halo, then write the interior (bf16)."""
    c = pad_sc.shape[-1]
    zrow = jnp.zeros((1, w + 2, c), pad_sc.dtype)
    zcol = jnp.zeros((h, 1, c), pad_sc.dtype)
    pad_sc[0:1, :, :] = zrow
    pad_sc[h + 1:h + 2, :, :] = zrow
    pad_sc[1:h + 1, 0:1, :] = zcol
    pad_sc[1:h + 1, w + 1:w + 2, :] = zcol
    pad_sc[1:h + 1, 1:w + 1, :] = x_hwc.astype(pad_sc.dtype)


def _conv3x3_taps(pad_sc, w_ref, h, w):
    """SAME 3x3 conv as 9 accumulated MXU dots; returns (h*w, Cout_p) f32."""
    c = pad_sc.shape[-1]
    cout = w_ref.shape[-1]
    acc = jnp.zeros((h * w, cout), jnp.float32)
    t = 0
    for kh in range(3):
        for kw in range(3):
            tap = pad_sc[kh:kh + h, kw:kw + w, :].reshape(h * w, c)
            acc = acc + jnp.dot(tap, w_ref[t],
                                preferred_element_type=jnp.float32)
            t += 1
    return acc


def _write_partial_stats(ps_ref, acc_2d):
    """acc_2d: (rows, C) f32 -> per-channel sum / sumsq into a (1,2,C) block."""
    ps_ref[0, 0:1, :] = jnp.sum(acc_2d, axis=0, keepdims=True)
    ps_ref[0, 1:2, :] = jnp.sum(acc_2d * acc_2d, axis=0, keepdims=True)


# --------------------------------- kernels ---------------------------------- #

def conv1_ds_kernel(x_ref, w1_ref, wd_ref, y1_ref, ps1_ref, psd_ref, pad_sc):
    """conv3x3(x) raw output (bf16) + bn1 partial stats; also 1x1 downsample stats."""
    _, h, w, cin = x_ref.shape
    cout = w1_ref.shape[-1]
    x_b = x_ref[0]                                          # bf16 (h,w,cin)
    _fill_halo_and_interior(pad_sc, x_b, h, w)
    acc1 = _conv3x3_taps(pad_sc, w1_ref, h, w)              # f32 (h*w, cout)
    y1_ref[0] = acc1.reshape(h, w, cout).astype(y1_ref.dtype)
    _write_partial_stats(ps1_ref, acc1)
    d = jnp.dot(x_b.reshape(h * w, cin), wd_ref[...],
                preferred_element_type=jnp.float32)
    _write_partial_stats(psd_ref, d)


def conv1_id_kernel(x_ref, w1_ref, y1_ref, ps1_ref, pad_sc):
    _, h, w, _ = x_ref.shape
    cout = w1_ref.shape[-1]
    _fill_halo_and_interior(pad_sc, x_ref[0], h, w)
    acc1 = _conv3x3_taps(pad_sc, w1_ref, h, w)
    y1_ref[0] = acc1.reshape(h, w, cout).astype(y1_ref.dtype)
    _write_partial_stats(ps1_ref, acc1)


def conv2_kernel(y1_ref, sc1_ref, sh1_ref, w2_ref, y2_ref, ps2_ref, pad_sc):
    """Apply folded bn1 (f32 FMA), conv3x3, emit raw conv2 output + bn2 partial stats."""
    _, h, w, _ = y1_ref.shape
    cout = w2_ref.shape[-1]
    y1n = y1_ref[0].astype(jnp.float32) * sc1_ref[...] + sh1_ref[...]
    _fill_halo_and_interior(pad_sc, y1n, h, w)
    acc2 = _conv3x3_taps(pad_sc, w2_ref, h, w)
    y2_ref[0] = acc2.reshape(h, w, cout).astype(y2_ref.dtype)
    _write_partial_stats(ps2_ref, acc2)


def final_ds_kernel(y2_ref, x_ref, wd_ref, sc2_ref, sh2_ref, scd_ref, shd_ref,
                    out_ref):
    """bn2(y2) + bnD(x @ wd) -> add -> relu.  1x1 shortcut recomputed (no HBM rt)."""
    _, th, w, cout = out_ref.shape
    cin = x_ref.shape[-1]
    y2n = y2_ref[0].astype(jnp.float32) * sc2_ref[...] + sh2_ref[...]
    d = jnp.dot(x_ref[0].reshape(th * w, cin), wd_ref[...],
                preferred_element_type=jnp.float32).reshape(th, w, cout)
    dn = d * scd_ref[...] + shd_ref[...]
    out_ref[0] = jnp.maximum(y2n + dn, 0.0).astype(out_ref.dtype)


def final_id_kernel(y2_ref, x_ref, sc2_ref, sh2_ref, out_ref):
    y2n = y2_ref[0].astype(jnp.float32) * sc2_ref[...] + sh2_ref[...]
    s = x_ref[0].astype(jnp.float32)
    out_ref[0] = jnp.maximum(y2n + s, 0.0).astype(out_ref.dtype)


# --------------------------------- wrapper ----------------------------------- #

class BasicBlockPallas:
    expansion = 1

    def __init__(self, in_chan, out_chan, stride=1, *, key):
        # TODO(synk): only stride == 1 is implemented.
        assert stride == 1, "only stride=1 implemented"
        self.in_chan, self.out_chan, self.stride = in_chan, out_chan, stride
        self.cinp = _round_up(in_chan, LANE)
        self.coutp = _round_up(out_chan, LANE)

        ks = jax.random.split(key, 8)
        # f32 "parameters" (used by the reference); packed bf16 copies for kernels
        self.w1 = jax.random.normal(ks[0], (3, 3, in_chan, out_chan),
                                    jnp.float32) * (2.0 / (9 * in_chan)) ** 0.5
        self.w2 = jax.random.normal(ks[1], (3, 3, out_chan, out_chan),
                                    jnp.float32) * (2.0 / (9 * out_chan)) ** 0.5
        self.g1 = 1.0 + 0.1 * jax.random.normal(ks[2], (1, out_chan), jnp.float32)
        self.b1 = 0.1 * jax.random.normal(ks[3], (1, out_chan), jnp.float32)
        self.g2 = 1.0 + 0.1 * jax.random.normal(ks[4], (1, out_chan), jnp.float32)
        self.b2 = 0.1 * jax.random.normal(ks[5], (1, out_chan), jnp.float32)
        self.has_downsample = (in_chan != out_chan) or (stride != 1)

        cinp, coutp = self.cinp, self.coutp
        # Weights packed as (9, Cin_p, Cout_p) bf16 -> one MXU dot per 3x3 tap.
        w1p = jnp.zeros((3, 3, cinp, coutp), jnp.float32)
        w1p = w1p.at[:, :, :in_chan, :out_chan].set(self.w1)
        self.w1_packed = w1p.reshape(9, cinp, coutp).astype(jnp.bfloat16)
        w2p = jnp.zeros((3, 3, coutp, coutp), jnp.float32)
        w2p = w2p.at[:, :, :out_chan, :out_chan].set(self.w2)
        self.w2_packed = w2p.reshape(9, coutp, coutp).astype(jnp.bfloat16)
        self.g1p, self.b1p = _pad_lane(self.g1), _pad_lane(self.b1)
        self.g2p, self.b2p = _pad_lane(self.g2), _pad_lane(self.b2)

        if self.has_downsample:
            self.wd = jax.random.normal(ks[6], (in_chan, out_chan),
                                        jnp.float32) * (2.0 / in_chan) ** 0.5
            kgd, kbd = jax.random.split(ks[7])
            self.gd = 1.0 + 0.1 * jax.random.normal(kgd, (1, out_chan), jnp.float32)
            self.bd = 0.1 * jax.random.normal(kbd, (1, out_chan), jnp.float32)
            wdp = jnp.zeros((cinp, coutp), jnp.float32)
            wdp = wdp.at[:in_chan, :out_chan].set(self.wd)
            self.wd_packed = wdp.astype(jnp.bfloat16)
            self.gdp, self.bdp = _pad_lane(self.gd), _pad_lane(self.bd)

    def __call__(self, x_nchw, return_padded_nhwc=False):
        n, _, h, w = x_nchw.shape
        cinp, coutp = self.cinp, self.coutp
        x = jnp.transpose(x_nchw, (0, 2, 3, 1))              # NHWC
        xp = _pad_lane(x).astype(jnp.bfloat16)               # (n,h,w,cinp), lane-dense

        vmem_limit = _vmem_limit_bytes()

        # ---- specs (grid over batch for conv passes) ----
        act_in = pl.BlockSpec((1, h, w, cinp), lambda i: (i, 0, 0, 0))
        act_mid = pl.BlockSpec((1, h, w, coutp), lambda i: (i, 0, 0, 0))
        stat_spec = pl.BlockSpec((1, 2, coutp), lambda i: (i, 0, 0))
        vec_spec = pl.BlockSpec((1, coutp), lambda i: (0, 0))
        w1_spec = pl.BlockSpec((9, cinp, coutp), lambda i: (0, 0, 0))
        w2_spec = pl.BlockSpec((9, coutp, coutp), lambda i: (0, 0, 0))
        wd_spec = pl.BlockSpec((cinp, coutp), lambda i: (0, 0))
        cparams = pltpu.CompilerParams(dimension_semantics=("parallel",),
                                       vmem_limit_bytes=vmem_limit)

        act_bf16 = jax.ShapeDtypeStruct((n, h, w, coutp), jnp.bfloat16)
        stat_f32 = jax.ShapeDtypeStruct((n, 2, coutp), jnp.float32)
        count = n * h * w

        # ---------- pass 1: conv1 raw + bn1 stats (+ downsample stats) ----------
        if self.has_downsample:
            y1, ps1, psd = pl.pallas_call(
                conv1_ds_kernel,
                out_shape=(act_bf16, stat_f32, stat_f32),
                grid_spec=pltpu.PrefetchScalarGridSpec(
                    num_scalar_prefetch=0, grid=(n,),
                    in_specs=[act_in, w1_spec, wd_spec],
                    out_specs=(act_mid, stat_spec, stat_spec),
                    scratch_shapes=[pltpu.VMEM((h + 2, w + 2, cinp), jnp.bfloat16)]),
                compiler_params=cparams,
            )(xp, self.w1_packed, self.wd_packed)
        else:
            y1, ps1 = pl.pallas_call(
                conv1_id_kernel,
                out_shape=(act_bf16, stat_f32),
                grid_spec=pltpu.PrefetchScalarGridSpec(
                    num_scalar_prefetch=0, grid=(n,),
                    in_specs=[act_in, w1_spec],
                    out_specs=(act_mid, stat_spec),
                    scratch_shapes=[pltpu.VMEM((h + 2, w + 2, cinp), jnp.bfloat16)]),
                compiler_params=cparams,
            )(xp, self.w1_packed)

        sc1, sh1 = _fold_bn_stats(ps1, self.g1p, self.b1p, count)

        # ---------- pass 2: apply bn1 (FMA) + conv2 raw + bn2 stats ----------
        y2, ps2 = pl.pallas_call(
            conv2_kernel,
            out_shape=(act_bf16, stat_f32),
            grid_spec=pltpu.PrefetchScalarGridSpec(
                num_scalar_prefetch=0, grid=(n,),
                in_specs=[act_mid, vec_spec, vec_spec, w2_spec],
                out_specs=(act_mid, stat_spec),
                scratch_shapes=[pltpu.VMEM((h + 2, w + 2, coutp), jnp.bfloat16)]),
            compiler_params=cparams,
        )(y1, sc1, sh1, self.w2_packed)

        sc2, sh2 = _fold_bn_stats(ps2, self.g2p, self.b2p, count)

        # ---------- pass 3: bn2 + shortcut + relu (grid over N and large H bands) ----
        bytes_per_row = w * (2 * coutp + 2 * cinp + 2 * coutp)   # y2 + x + out, bf16
        th = _pick_band(h, bytes_per_row, vmem_limit // 2)
        grid3 = (n, h // th)
        y2_band = pl.BlockSpec((1, th, w, coutp), lambda i, j: (i, j, 0, 0))
        x_band = pl.BlockSpec((1, th, w, cinp), lambda i, j: (i, j, 0, 0))
        out_band = pl.BlockSpec((1, th, w, coutp), lambda i, j: (i, j, 0, 0))
        vec_band = pl.BlockSpec((1, coutp), lambda i, j: (0, 0))
        wd_band = pl.BlockSpec((cinp, coutp), lambda i, j: (0, 0))
        cparams3 = pltpu.CompilerParams(dimension_semantics=("parallel", "parallel"),
                                        vmem_limit_bytes=vmem_limit)
        out_shape3 = jax.ShapeDtypeStruct((n, h, w, coutp), jnp.bfloat16)

        if self.has_downsample:
            scd, shd = _fold_bn_stats(psd, self.gdp, self.bdp, count)
            out = pl.pallas_call(
                final_ds_kernel,
                out_shape=out_shape3,
                grid_spec=pltpu.PrefetchScalarGridSpec(
                    num_scalar_prefetch=0, grid=grid3,
                    in_specs=[y2_band, x_band, wd_band,
                              vec_band, vec_band, vec_band, vec_band],
                    out_specs=out_band),
                compiler_params=cparams3,
            )(y2, xp, self.wd_packed, sc2, sh2, scd, shd)
        else:
            out = pl.pallas_call(
                final_id_kernel,
                out_shape=out_shape3,
                grid_spec=pltpu.PrefetchScalarGridSpec(
                    num_scalar_prefetch=0, grid=grid3,
                    in_specs=[y2_band, x_band, vec_band, vec_band],
                    out_specs=out_band),
                compiler_params=cparams3,
            )(y2, xp, sc2, sh2)

        if return_padded_nhwc:
            # Chain into the next BasicBlock without a slice/transpose HBM round trip.
            return out                                        # bf16 (n,h,w,coutp)
        out = out[..., :self.out_chan].astype(jnp.float32)    # drop lane padding
        return jnp.transpose(out, (0, 3, 1, 2))               # -> NCHW


# ----------------------------- pure-JAX reference ---------------------------- #

def reference_forward(block: BasicBlockPallas, x_nchw):
    x = jnp.transpose(x_nchw, (0, 2, 3, 1)).astype(jnp.float32)

    def conv(v, w):
        return lax.conv_general_dilated(
            v, w, (1, 1), "SAME", dimension_numbers=("NHWC", "HWIO", "NHWC"))

    def bn(v, g, b):
        mean = jnp.mean(v, axis=(0, 1, 2), keepdims=True)
        var = jnp.mean((v - mean) ** 2, axis=(0, 1, 2), keepdims=True)
        return (v - mean) * lax.rsqrt(var + EPS) * g.reshape(1, 1, 1, -1) \
            + b.reshape(1, 1, 1, -1)

    out = bn(conv(x, block.w1), block.g1, block.b1)
    out = bn(conv(out, block.w2), block.g2, block.b2)
    if block.has_downsample:
        sc = jnp.einsum("nhwi,io->nhwo", x, block.wd)
        sc = bn(sc, block.gd, block.bd)
    else:
        sc = x
    out = jnp.maximum(sc + out, 0.0)
    return jnp.transpose(out, (0, 3, 1, 2))


# ----------------------------------- main ------------------------------------ #

if __name__ == "__main__":
    key = jax.random.PRNGKey(0)
    kx, kp1, kp2 = jax.random.split(key, 3)

    N, Cin, H, W = 2, 4, 16, 16
    Cout = 8
    x = jax.random.normal(kx, (N, Cin, H, W), jnp.float32)

    # Dtype-aware tolerances: MXU operands, the y1/y2 intermediates and the
    # output are bf16 (activation magnitudes are O(1)), so absolute errors vs
    # the full-f32 reference are a few 1e-2.
    TOL_MAX = 2e-1
    TOL_MEAN = 3e-2

    # Case 1: in_chan != out_chan  -> downsample (1x1 conv + BN) shortcut
    block_ds = BasicBlockPallas(Cin, Cout, stride=1, key=kp1)
    out_ds = jax.block_until_ready(block_ds(x))
    ref_ds = reference_forward(block_ds, x)
    assert out_ds.shape == (N, Cout, H, W)
    err = jnp.abs(out_ds - ref_ds)
    assert float(jnp.max(err)) < TOL_MAX, f"downsample-path max abs err {float(jnp.max(err))}"
    assert float(jnp.mean(err)) < TOL_MEAN, f"downsample-path mean abs err {float(jnp.mean(err))}"

    # Case 2: in_chan == out_chan, stride == 1 -> identity shortcut
    block_id = BasicBlockPallas(Cin, Cin, stride=1, key=kp2)
    out_id = jax.block_until_ready(block_id(x))
    ref_id = reference_forward(block_id, x)
    assert out_id.shape == (N, Cin, H, W)
    err = jnp.abs(out_id - ref_id)
    assert float(jnp.max(err)) < TOL_MAX, f"identity-path max abs err {float(jnp.max(err))}"
    assert float(jnp.mean(err)) < TOL_MEAN, f"identity-path mean abs err {float(jnp.mean(err))}"

    print("KERNEL_OK")
</pallas_src>

<mosaic_0001>
module attributes {stable_mosaic.version = 11 : i64} {
  func.func @conv1_ds_kernel(%arg0: i32, %arg1: memref<1x16x16x128xbf16, #tpu.memory_space<vmem>>, %arg2: memref<9x128x128xbf16, #tpu.memory_space<vmem>>, %arg3: memref<128x128xbf16, #tpu.memory_space<vmem>>, %arg4: memref<1x16x16x128xbf16, #tpu.memory_space<vmem>>, %arg5: memref<1x2x128xf32, #tpu.memory_space<vmem>>, %arg6: memref<1x2x128xf32, #tpu.memory_space<vmem>>, %arg7: memref<18x18x128xbf16, #tpu.memory_space<vmem>>) attributes {dimension_semantics = [#tpu.dimension_semantics<parallel>], iteration_bounds = array<i64: 2>, scalar_prefetch = 0 : i64, scratch_operands = 1 : i64, tpu.core_type = #tpu.core_type<tc>, window_params = [{transform_indices = @transform_0, window_bounds = array<i64: 1, 16, 16, 128>}, {pipeline_mode = #tpu.pipeline_mode<synchronous>, transform_indices = @transform_1, window_bounds = array<i64: 9, 128, 128>}, {pipeline_mode = #tpu.pipeline_mode<synchronous>, transform_indices = @transform_2, window_bounds = array<i64: 128, 128>}, {transform_indices = @transform_3, window_bounds = array<i64: 1, 16, 16, 128>}, {transform_indices = @transform_4, window_bounds = array<i64: 1, 2, 128>}, {transform_indices = @transform_5, window_bounds = array<i64: 1, 2, 128>}]} {
    %c0 = arith.constant 0 : index
    %c0_0 = arith.constant 0 : index
    %c0_1 = arith.constant 0 : index
    %c0_2 = arith.constant 0 : index
    %0 = vector.load %arg1[%c0, %c0_0, %c0_1, %c0_2] : memref<1x16x16x128xbf16, #tpu.memory_space<vmem>>, vector<1x16x16x128xbf16>
    %1 = vector.shape_cast %0 : vector<1x16x16x128xbf16> to vector<16x16x128xbf16>
    %cst = arith.constant 0.000000e+00 : bf16
    %2 = vector.broadcast %cst : bf16 to vector<1x18x128xbf16>
    %cst_3 = arith.constant 0.000000e+00 : bf16
    %3 = vector.broadcast %cst_3 : bf16 to vector<16x1x128xbf16>
    %c0_4 = arith.constant 0 : index
    %c0_5 = arith.constant 0 : index
    %c0_6 = arith.constant 0 : index
    %4 = vector.load %arg7[%c0_4, %c0_5, %c0_6] : memref<18x18x128xbf16, #tpu.memory_space<vmem>>, vector<1x18x128xbf16>
    tpu.vector_store %arg7[%c0_4, %c0_5, %c0_6], %2 {strides = array<i32>} : memref<18x18x128xbf16, #tpu.memory_space<vmem>>, vector<1x18x128xbf16>,
    %c17 = arith.constant 17 : index
    %c0_7 = arith.constant 0 : index
    %c0_8 = arith.constant 0 : index
    %5 = vector.load %arg7[%c17, %c0_7, %c0_8] : memref<18x18x128xbf16, #tpu.memory_space<vmem>>, vector<1x18x128xbf16>
    tpu.vector_store %arg7[%c17, %c0_7, %c0_8], %2 {strides = array<i32>} : memref<18x18x128xbf16, #tpu.memory_space<vmem>>, vector<1x18x128xbf16>,
    %c1 = arith.constant 1 : index
    %c0_9 = arith.constant 0 : index
    %c0_10 = arith.constant 0 : index
    %6 = vector.load %arg7[%c1, %c0_9, %c0_10] : memref<18x18x128xbf16, #tpu.memory_space<vmem>>, vector<16x1x128xbf16>
    tpu.vector_store %arg7[%c1, %c0_9, %c0_10], %3 {strides = array<i32>} : memref<18x18x128xbf16, #tpu.memory_space<vmem>>, vector<16x1x128xbf16>,
    %c1_11 = arith.constant 1 : index
    %c17_12 = arith.constant 17 : index
    %c0_13 = arith.constant 0 : index
    %7 = vector.load %arg7[%c1_11, %c17_12, %c0_13] : memref<18x18x128xbf16, #tpu.memory_space<vmem>>, vector<16x1x128xbf16>
    tpu.vector_store %arg7[%c1_11, %c17_12, %c0_13], %3 {strides = array<i32>} : memref<18x18x128xbf16, #tpu.memory_space<vmem>>, vector<16x1x128xbf16>,
    %c1_14 = arith.constant 1 : index
    %c1_15 = arith.constant 1 : index
    %c0_16 = arith.constant 0 : index
    %8 = vector.load %arg7[%c1_14, %c1_15, %c0_16] : memref<18x18x128xbf16, #tpu.memory_space<vmem>>, vector<16x16x128xbf16>
    tpu.vector_store %arg7[%c1_14, %c1_15, %c0_16], %1 {strides = array<i32>} : memref<18x18x128xbf16, #tpu.memory_space<vmem>>, vector<16x16x128xbf16>,
    %cst_17 = arith.constant 0.000000e+00 : f32
    %9 = vector.broadcast %cst_17 : f32 to vector<256x128xf32>
    %c0_18 = arith.constant 0 : index
    %c0_19 = arith.constant 0 : index
    %c0_20 = arith.constant 0 : index
    %10 = vector.load %arg7[%c0_18, %c0_19, %c0_20] : memref<18x18x128xbf16, #tpu.memory_space<vmem>>, vector<16x16x128xbf16>
    %11 = vector.shape_cast %10 : vector<16x16x128xbf16> to vector<256x128xbf16>
    %c0_21 = arith.constant 0 : index
    %c0_22 = arith.constant 0 : index
    %c0_23 = arith.constant 0 : index
    %12 = vector.load %arg2[%c0_21, %c0_22, %c0_23] : memref<9x128x128xbf16, #tpu.memory_space<vmem>>, vector<1x128x128xbf16>
    %13 = vector.shape_cast %12 : vector<1x128x128xbf16> to vector<128x128xbf16>
    %cst_24 = arith.constant dense<0.000000e+00> : vector<256x128xf32>
    %14 = tpu.matmul %11, %13, %cst_24 {dimension_numbers = #tpu.dot_dimension_numbers<[1], [0], [0], [1], [0, 0, 1, 1], [], []>} : vector<256x128xbf16>, vector<128x128xbf16>, vector<256x128xf32> -> vector<256x128xf32>
    %15 = arith.addf %9, %14 : vector<256x128xf32>
    %c0_25 = arith.constant 0 : index
    %c1_26 = arith.constant 1 : index
    %c0_27 = arith.constant 0 : index
    %16 = vector.load %arg7[%c0_25, %c1_26, %c0_27] : memref<18x18x128xbf16, #tpu.memory_space<vmem>>, vector<16x16x128xbf16>
    %17 = vector.shape_cast %16 : vector<16x16x128xbf16> to vector<256x128xbf16>
    %c1_28 = arith.constant 1 : index
    %c0_29 = arith.constant 0 : index
    %c0_30 = arith.constant 0 : index
    %18 = vector.load %arg2[%c1_28, %c0_29, %c0_30] : memref<9x128x128xbf16, #tpu.memory_space<vmem>>, vector<1x128x128xbf16>
    %19 = vector.shape_cast %18 : vector<1x128x128xbf16> to vector<128x128xbf16>
    %cst_31 = arith.constant dense<0.000000e+00> : vector<256x128xf32>
    %20 = tpu.matmul %17, %19, %cst_31 {dimension_numbers = #tpu.dot_dimension_numbers<[1], [0], [0], [1], [0, 0, 1, 1], [], []>} : vector<256x128xbf16>, vector<128x128xbf16>, vector<256x128xf32> -> vector<256x128xf32>
    %21 = arith.addf %15, %20 : vector<256x128xf32>
    %c0_32 = arith.constant 0 : index
    %c2 = arith.constant 2 : index
    %c0_33 = arith.constant 0 : index
    %22 = vector.load %arg7[%c0_32, %c2, %c0_33] : memref<18x18x128xbf16, #tpu.memory_space<vmem>>, vector<16x16x128xbf16>
    %23 = vector.shape_cast %22 : vector<16x16x128xbf16> to vector<256x128xbf16>
    %c2_34 = arith.constant 2 : index
    %c0_35 = arith.constant 0 : index
    %c0_36 = arith.constant 0 : index
    %24 = vector.load %arg2[%c2_34, %c0_35, %c0_36] : memref<9x128x128xbf16, #tpu.memory_space<vmem>>, vector<1x128x128xbf16>
    %25 = vector.shape_cast %24 : vector<1x128x128xbf16> to vector<128x128xbf16>
    %cst_37 = arith.constant dense<0.000000e+00> : vector<256x128xf32>
    %26 = tpu.matmul %23, %25, %cst_37 {dimension_numbers = #tpu.dot_dimension_numbers<[1], [0], [0], [1], [0, 0, 1, 1], [], []>} : vector<256x128xbf16>, vector<128x128xbf16>, vector<256x128xf32> -> vector<256x128xf32>
    %27 = arith.addf %21, %26 : vector<256x128xf32>
    %c1_38 = arith.constant 1 : index
    %c0_39 = arith.constant 0 : index
    %c0_40 = arith.constant 0 : index
    %28 = vector.load %arg7[%c1_38, %c0_39, %c0_40] : memref<18x18x128xbf16, #tpu.memory_space<vmem>>, vector<16x16x128xbf16>
    %29 = vector.shape_cast %28 : vector<16x16x128xbf16> to vector<256x128xbf16>
    %c3 = arith.constant 3 : index
    %c0_41 = arith.constant 0 : index
    %c0_42 = arith.constant 0 : index
    %30 = vector.load %arg2[%c3, %c0_41, %c0_42] : memref<9x128x128xbf16, #tpu.memory_space<vmem>>, vector<1x128x128xbf16>
    %31 = vector.shape_cast %30 : vector<1x128x128xbf16> to vector<128x128xbf16>
    %cst_43 = arith.constant dense<0.000000e+00> : vector<256x128xf32>
    %32 = tpu.matmul %29, %31, %cst_43 {dimension_numbers = #tpu.dot_dimension_numbers<[1], [0], [0], [1], [0, 0, 1, 1], [], []>} : vector<256x128xbf16>, vector<128x128xbf16>, vector<256x128xf32> -> vector<256x128xf32>
    %33 = arith.addf %27, %32 : vector<256x128xf32>
    %c1_44 = arith.constant 1 : index
    %c1_45 = arith.constant 1 : index
    %c0_46 = arith.constant 0 : index
    %34 = vector.load %arg7[%c1_44, %c1_45, %c0_46] : memref<18x18x128xbf16, #tpu.memory_space<vmem>>, vector<16x16x128xbf16>
    %35 = vector.shape_cast %34 : vector<16x16x128xbf16> to vector<256x128xbf16>
    %c4 = arith.constant 4 : index
    %c0_47 = arith.constant 0 : index
    %c0_48 = arith.constant 0 : index
    %36 = vector.load %arg2[%c4, %c0_47, %c0_48] : memref<9x128x128xbf16, #tpu.memory_space<vmem>>, vector<1x128x128xbf16>
    %37 = vector.shape_cast %36 : vector<1x128x128xbf16> to vector<128x128xbf16>
    %cst_49 = arith.constant dense<0.000000e+00> : vector<256x128xf32>
    %38 = tpu.matmul %35, %37, %cst_49 {dimension_numbers = #tpu.dot_dimension_numbers<[1], [0], [0], [1], [0, 0, 1, 1], [], []>} : vector<256x128xbf16>, vector<128x128xbf16>, vector<256x128xf32> -> vector<256x128xf32>
    %39 = arith.addf %33, %38 : vector<256x128xf32>
    %c1_50 = arith.constant 1 : index
    %c2_51 = arith.constant 2 : index
    %c0_52 = arith.constant 0 : index
    %40 = vector.load %arg7[%c1_50, %c2_51, %c0_52] : memref<18x18x128xbf16, #tpu.memory_space<vmem>>, vector<16x16x128xbf16>
    %41 = vector.shape_cast %40 : vector<16x16x128xbf16> to vector<256x128xbf16>
    %c5 = arith.constant 5 : index
    %c0_53 = arith.constant 0 : index
    %c0_54 = arith.constant 0 : index
    %42 = vector.load %arg2[%c5, %c0_53, %c0_54] : memref<9x128x128xbf16, #tpu.memory_space<vmem>>, vector<1x128x128xbf16>
    %43 = vector.shape_cast %42 : vector<1x128x128xbf16> to vector<128x128xbf16>
    %cst_55 = arith.constant dense<0.000000e+00> : vector<256x128xf32>
    %44 = tpu.matmul %41, %43, %cst_55 {dimension_numbers = #tpu.dot_dimension_numbers<[1], [0], [0], [1], [0, 0, 1, 1], [], []>} : vector<256x128xbf16>, vector<128x128xbf16>, vector<256x128xf32> -> vector<256x128xf32>
    %45 = arith.addf %39, %44 : vector<256x128xf32>
    %c2_56 = arith.constant 2 : index
    %c0_57 = arith.constant 0 : index
    %c0_58 = arith.constant 0 : index
    %46 = vector.load %arg7[%c2_56, %c0_57, %c0_58] : memref<18x18x128xbf16, #tpu.memory_space<vmem>>, vector<16x16x128xbf16>
    %47 = vector.shape_cast %46 : vector<16x16x128xbf16> to vector<256x128xbf16>
    %c6 = arith.constant 6 : index
    %c0_59 = arith.constant 0 : index
    %c0_60 = arith.constant 0 : index
    %48 = vector.load %arg2[%c6, %c0_59, %c0_60] : memref<9x128x128xbf16, #tpu.memory_space<vmem>>, vector<1x128x128xbf16>
    %49 = vector.shape_cast %48 : vector<1x128x128xbf16> to vector<128x128xbf16>
    %cst_61 = arith.constant dense<0.000000e+00> : vector<256x128xf32>
    %50 = tpu.matmul %47, %49, %cst_61 {dimension_numbers = #tpu.dot_dimension_numbers<[1], [0], [0], [1], [0, 0, 1, 1], [], []>} : vector<256x128xbf16>, vector<128x128xbf16>, vector<256x128xf32> -> vector<256x128xf32>
    %51 = arith.addf %45, %50 : vector<256x128xf32>
    %c2_62 = arith.constant 2 : index
    %c1_63 = arith.constant 1 : index
    %c0_64 = arith.constant 0 : index
    %52 = vector.load %arg7[%c2_62, %c1_63, %c0_64] : memref<18x18x128xbf16, #tpu.memory_space<vmem>>, vector<16x16x128xbf16>
    %53 = vector.shape_cast %52 : vector<16x16x128xbf16> to vector<256x128xbf16>
    %c7 = arith.constant 7 : index
    %c0_65 = arith.constant 0 : index
    %c0_66 = arith.constant 0 : index
    %54 = vector.load %arg2[%c7, %c0_65, %c0_66] : memref<9x128x128xbf16, #tpu.memory_space<vmem>>, vector<1x128x128xbf16>
    %55 = vector.shape_cast %54 : vector<1x128x128xbf16> to vector<128x128xbf16>
    %cst_67 = arith.constant dense<0.000000e+00> : vector<256x128xf32>
    %56 = tpu.matmul %53, %55, %cst_67 {dimension_numbers = #tpu.dot_dimension_numbers<[1], [0], [0], [1], [0, 0, 1, 1], [], []>} : vector<256x128xbf16>, vector<128x128xbf16>, vector<256x128xf32> -> vector<256x128xf32>
    %57 = arith.addf %51, %56 : vector<256x128xf32>
    %c2_68 = arith.constant 2 : index
    %c2_69 = arith.constant 2 : index
    %c0_70 = arith.constant 0 : index
    %58 = vector.load %arg7[%c2_68, %c2_69, %c0_70] : memref<18x18x128xbf16, #tpu.memory_space<vmem>>, vector<16x16x128xbf16>
    %59 = vector.shape_cast %58 : vector<16x16x128xbf16> to vector<256x128xbf16>
    %c8 = arith.constant 8 : index
    %c0_71 = arith.constant 0 : index
    %c0_72 = arith.constant 0 : index
    %60 = vector.load %arg2[%c8, %c0_71, %c0_72] : memref<9x128x128xbf16, #tpu.memory_space<vmem>>, vector<1x128x128xbf16>
    %61 = vector.shape_cast %60 : vector<1x128x128xbf16> to vector<128x128xbf16>
    %cst_73 = arith.constant dense<0.000000e+00> : vector<256x128xf32>
    %62 = tpu.matmul %59, %61, %cst_73 {dimension_numbers = #tpu.dot_dimension_numbers<[1], [0], [0], [1], [0, 0, 1, 1], [], []>} : vector<256x128xbf16>, vector<128x128xbf16>, vector<256x128xf32> -> vector<256x128xf32>
    %63 = arith.addf %57, %62 : vector<256x128xf32>
    %64 = vector.shape_cast %63 : vector<256x128xf32> to vector<16x16x128xf32>
    %65 = arith.truncf %64 : vector<16x16x128xf32> to vector<16x16x128xbf16>
    %c0_74 = arith.constant 0 : index
    %c0_75 = arith.constant 0 : index
    %c0_76 = arith.constant 0 : index
    %c0_77 = arith.constant 0 : index
    %66 = vector.load %arg4[%c0_74, %c0_75, %c0_76, %c0_77] : memref<1x16x16x128xbf16, #tpu.memory_space<vmem>>, vector<1x16x16x128xbf16>
    %67 = vector.shape_cast %66 : vector<1x16x16x128xbf16> to vector<16x16x128xbf16>
    %68 = vector.shape_cast %65 : vector<16x16x128xbf16> to vector<1x16x16x128xbf16>
    tpu.vector_store %arg4[%c0_74, %c0_75, %c0_76, %c0_77], %68 {strides = array<i32>} : memref<1x16x16x128xbf16, #tpu.memory_space<vmem>>, vector<1x16x16x128xbf16>,
    %cst_78 = arith.constant dense<0.000000e+00> : vector<128xf32>
    %69 = vector.multi_reduction <add>, %63, %cst_78 [0] : vector<256x128xf32> to vector<128xf32>
    %70 = vector.shape_cast %69 : vector<128xf32> to vector<1x128xf32>
    %c0_79 = arith.constant 0 : index
    %c0_80 = arith.constant 0 : index
    %c0_81 = arith.constant 0 : index
    %71 = vector.load %arg5[%c0_79, %c0_80, %c0_81] : memref<1x2x128xf32, #tpu.memory_space<vmem>>, vector<1x1x128xf32>
    %72 = vector.shape_cast %71 : vector<1x1x128xf32> to vector<1x128xf32>
    %73 = vector.shape_cast %70 : vector<1x128xf32> to vector<1x1x128xf32>
    tpu.vector_store %arg5[%c0_79, %c0_80, %c0_81], %73 {strides = array<i32>} : memref<1x2x128xf32, #tpu.memory_space<vmem>>, vector<1x1x128xf32>,
    %74 = arith.mulf %63, %63 : vector<256x128xf32>
    %cst_82 = arith.constant dense<0.000000e+00> : vector<128xf32>
    %75 = vector.multi_reduction <add>, %74, %cst_82 [0] : vector<256x128xf32> to vector<128xf32>
    %76 = vector.shape_cast %75 : vector<128xf32> to vector<1x128xf32>
    %c0_83 = arith.constant 0 : index
    %c1_84 = arith.constant 1 : index
    %c0_85 = arith.constant 0 : index
    %77 = vector.load %arg5[%c0_83, %c1_84, %c0_85] : memref<1x2x128xf32, #tpu.memory_space<vmem>>, vector<1x1x128xf32>
    %78 = vector.shape_cast %77 : vector<1x1x128xf32> to vector<1x128xf32>
    %79 = vector.shape_cast %76 : vector<1x128xf32> to vector<1x1x128xf32>
    tpu.vector_store %arg5[%c0_83, %c1_84, %c0_85], %79 {strides = array<i32>} : memref<1x2x128xf32, #tpu.memory_space<vmem>>, vector<1x1x128xf32>,
    %80 = vector.shape_cast %1 : vector<16x16x128xbf16> to vector<256x128xbf16>
    %c0_86 = arith.constant 0 : index
    %c0_87 = arith.constant 0 : index
    %81 = vector.load %arg3[%c0_86, %c0_87] : memref<128x128xbf16, #tpu.memory_space<vmem>>, vector<128x128xbf16>
    %cst_88 = arith.constant dense<0.000000e+00> : vector<256x128xf32>
    %82 = tpu.matmul %80, %81, %cst_88 {dimension_numbers = #tpu.dot_dimension_numbers<[1], [0], [0], [1], [0, 0, 1, 1], [], []>} : vector<256x128xbf16>, vector<128x128xbf16>, vector<256x128xf32> -> vector<256x128xf32>
    %cst_89 = arith.constant dense<0.000000e+00> : vector<128xf32>
    %83 = vector.multi_reduction <add>, %82, %cst_89 [0] : vector<256x128xf32> to vector<128xf32>
    %84 = vector.shape_cast %83 : vector<128xf32> to vector<1x128xf32>
    %c0_90 = arith.constant 0 : index
    %c0_91 = arith.constant 0 : index
    %c0_92 = arith.constant 0 : index
    %85 = vector.load %arg6[%c0_90, %c0_91, %c0_92] : memref<1x2x128xf32, #tpu.memory_space<vmem>>, vector<1x1x128xf32>
    %86 = vector.shape_cast %85 : vector<1x1x128xf32> to vector<1x128xf32>
    %87 = vector.shape_cast %84 : vector<1x128xf32> to vector<1x1x128xf32>
    tpu.vector_store %arg6[%c0_90, %c0_91, %c0_92], %87 {strides = array<i32>} : memref<1x2x128xf32, #tpu.memory_space<vmem>>, vector<1x1x128xf32>,
    %88 = arith.mulf %82, %82 : vector<256x128xf32>
    %cst_93 = arith.constant dense<0.000000e+00> : vector<128xf32>
    %89 = vector.multi_reduction <add>, %88, %cst_93 [0] : vector<256x128xf32> to vector<128xf32>
    %90 = vector.shape_cast %89 : vector<128xf32> to vector<1x128xf32>
    %c0_94 = arith.constant 0 : index
    %c1_95 = arith.constant 1 : index
    %c0_96 = arith.constant 0 : index
    %91 = vector.load %arg6[%c0_94, %c1_95, %c0_96] : memref<1x2x128xf32, #tpu.memory_space<vmem>>, vector<1x1x128xf32>
    %92 = vector.shape_cast %91 : vector<1x1x128xf32> to vector<1x128xf32>
    %93 = vector.shape_cast %90 : vector<1x128xf32> to vector<1x1x128xf32>
    tpu.vector_store %arg6[%c0_94, %c1_95, %c0_96], %93 {strides = array<i32>} : memref<1x2x128xf32, #tpu.memory_space<vmem>>, vector<1x1x128xf32>,
    return
  }
  func.func @transform_0(%arg0: i32) -> (i32, i32, i32, i32) {
    %c0_i32 = arith.constant 0 : i32
    %c0_i32_0 = arith.constant 0 : i32
    %c0_i32_1 = arith.constant 0 : i32
    %c0_i32_2 = arith.constant 0 : i32
    return %arg0, %c0_i32, %c0_i32_0, %c0_i32_1 : i32, i32, i32, i32
  }
  func.func @transform_1(%arg0: i32) -> (i32, i32, i32) {
    %c0_i32 = arith.constant 0 : i32
    %c0_i32_0 = arith.constant 0 : i32
    %c0_i32_1 = arith.constant 0 : i32
    %c0_i32_2 = arith.constant 0 : i32
    return %c0_i32, %c0_i32_0, %c0_i32_1 : i32, i32, i32
  }
  func.func @transform_2(%arg0: i32) -> (i32, i32) {
    %c0_i32 = arith.constant 0 : i32
    %c0_i32_0 = arith.constant 0 : i32
    %c0_i32_1 = arith.constant 0 : i32
    return %c0_i32, %c0_i32_0 : i32, i32
  }
  func.func @transform_3(%arg0: i32) -> (i32, i32, i32, i32) {
    %c0_i32 = arith.constant 0 : i32
    %c0_i32_0 = arith.constant 0 : i32
    %c0_i32_1 = arith.constant 0 : i32
    %c0_i32_2 = arith.constant 0 : i32
    return %arg0, %c0_i32, %c0_i32_0, %c0_i32_1 : i32, i32, i32, i32
  }
  func.func @transform_4(%arg0: i32) -> (i32, i32, i32) {
    %c0_i32 = arith.constant 0 : i32
    %c0_i32_0 = arith.constant 0 : i32
    %c0_i32_1 = arith.constant 0 : i32
    return %arg0, %c0_i32, %c0_i32_0 : i32, i32, i32
  }
  func.func @transform_5(%arg0: i32) -> (i32, i32, i32) {
    %c0_i32 = arith.constant 0 : i32
    %c0_i32_0 = arith.constant 0 : i32
    %c0_i32_1 = arith.constant 0 : i32
    return %arg0, %c0_i32, %c0_i32_0 : i32, i32, i32
  }
}

</mosaic_0001>

<bundles_post_ra>
// kernel: tpu_custom_call.1
= control target key start
LH: loop header
LB: loop body
LE: loop exit
PB: predicated region body
PF: predicated region fallthrough
CT: control target
= control target key end

     0   :  { %11 = vsyncpa [#allocation4], 0  ;;  %s10810_s0 = inlined_call_operand.hbm [shape: bf16[2,16,16,128], index: 0, kind: input, shape index: {}]   ;;  %s10811_s1 = inlined_call_operand.hbm [shape: bf16[9,128,128], index: 1, kind: input, shape index: {}]   ;;  %s10812_s2 = inlined_call_operand.hbm [shape: bf16[128,128], index: 2, kind: input, shape index: {}]   ;;  %s10813_s3 = inlined_call_operand.hbm [shape: bf16[2,16,16,128], index: 3, kind: output, shape index: {0}]   ;;  %s10814_s4 = inlined_call_operand.hbm [shape: f32[2,2,128], index: 4, kind: output, shape index: {1}]   ;;  %s10815_s5 = inlined_call_operand.hbm [shape: f32[2,2,128], index: 5, kind: output, shape index: {2}]  }
   0x1   :  { %13 = vsyncpa [#allocation4 + $0x1], 0 }
   0x2   :  { %14 = vsyncpa [#allocation7], 0 }
   0x3   :  { %15 = vsyncpa [#allocation5], 0 }
   0x4   :  { %17 = vsyncpa [#allocation5 + $0x1], 0 }
   0x5   :  { %18 = vsyncpa [#allocation11], 0 }
   0x6   :  { %20 = vsyncpa [#allocation11 + $0x1], 0  ;;  %s8294_s18 = smov 0   ;;  %s8296_s19 = smov 0  }
   0x7   :  { %s8298_s20 = smov 0   ;;  %s8300_s21 = smov 0  }
   0x8 LB: > { %s8315_s22 = sadd.s32 4294967295, %s8251_s21   ;;  %s10817_s23 = sadd.s32 4294967294, %s8251_s21   ;;  %s8251_s21 = sphi %s8300_s21, %s10962_s21   ;;  %s8247_s20 = sphi %s8298_s20, %s10961_s20   ;;  %s8243_s19 = sphi %s8296_s19, %s10960_s19   ;;  %s8239_s18 = sphi %s8294_s18, %s10959_s18  }
   0x9   : > { %p46_p0 = scmp.ne.s32.totalorder %s8243_s19, %s8239_s18  ;;  %p10816_p1 = scmp.eq.s32.totalorder %s8315_s22, 0 }
   0xa   : > { %p112_p2 = scmp.eq.s32.totalorder %s8315_s22, 1  ;;  %p118_p3 = scmp.eq.s32.totalorder %s10817_s23, 1 }
   0xb   : > { %p8326_p4 = por %p10816_p1, %p46_p0  ;;  %p6577_p5 = scmp.ge.s32.totalorder %s8251_s21, 1 }
   0xc   : > { %p8331_p6 = por %p118_p3, %p46_p0  ;;  %p177_p7 = scmp.lt.s32.totalorder %s8251_s21, 3 }
   0xd   : > { %s10825_s24 = scalar_select %p8326_p4, 1, 0 }
   0xe   : > { %s10826_s25 = scalar_select %p8331_p6, 1, 0 }
   0xf   : > { %p8336_p8 = pnand %p6577_p5, %p177_p7  ;;  %s8253_s27 = smov [#allocation6]  }
  0x10   : > { %s189_s28 = sshll.u32 %s8253_s27, 4  ;;  %s8254_s30 = smov [#allocation8]   ;;  %s190_s28 = int_to_ptr.vmem [resolvable:$true] %s189_s28 }
  0x11   : > { %s10827_s26 = scalar_select %p8336_p8, 1, 0 }
  0x12   : > { %p7785_p9 = pneg %p8336_p8  ;;  %s202_s6 = sshll.u32 %s8254_s30, 4  ;;  %s203_s6 = int_to_ptr.vmem [resolvable:$true] %s202_s6 }
  0x13   : > { %s8058_s7 = scalar_lea.vmem %s190_s28, 9216  ;;  %p8066_p5 = scmp.lt.s32.totalorder %s190_s28, %s190_s28 }
  0x14   : > { %p8345_p11 = pnand %p7785_p9, %p10816_p1  ;;  %p8059_p13 = scmp.ne.s32.totalorder %s190_s28, %s8058_s7 }
  0x15   : > { %p8067_p7 = scmp.lt.s32.totalorder %s8058_s7, %s8058_s7 }
  0x16   : > { %p8049_p12 = pneg %p8345_p11 }
  0x17   : > { %p8068_p10 = por %p8067_p7, %p8066_p5 }
  0x18   : > { %p8061_p0 = pnand %p8059_p13, %p8049_p12 }
  0x1a   : > { %p8062_p3 = pneg %p8061_p0 }
  0x1c   : > { %p8069_p9 = pnand %p8068_p10, %p8062_p3 }
  0x1e   : > { %8072 = shalt.err (!%p8069_p9)
}
  0x1f   : > { %s10818_s8 = smov 64   ;;  %s8256_s9 = smov 4  }
  0x20   : > { %7788 = dma.hbm_to_vmem [thread:$0]  (!%p8345_p11), %s10811_s1, 9216, %s190_s28, [#allocation7], %s10818_s8, %s10818_s8, %s8256_s9  }
  0x21   : > { %s8084_s12 = scalar_lea.vmem %s203_s6, 1024  ;;  %p8092_p10 = scmp.lt.s32.totalorder %s203_s6, %s203_s6 }
  0x22   : > { %p8085_p13 = scmp.ne.s32.totalorder %s203_s6, %s8084_s12  ;;  %p8093_p3 = scmp.lt.s32.totalorder %s8084_s12, %s8084_s12 }
  0x24   : > { %p8087_p0 = pnand %p8085_p13, %p8049_p12  ;;  %p8094_p7 = por %p8093_p3, %p8092_p10 }
  0x26   : > { %p8088_p5 = pneg %p8087_p0 }
  0x28   : > { %p8095_p9 = pnand %p8094_p7, %p8088_p5 }
  0x2a   : > { %8098 = shalt.err (!%p8095_p9)
}
  0x2b   : > { %7791 = dma.hbm_to_vmem [thread:$0]  (!%p8345_p11), %s10812_s2, 1024, %s203_s6, [#allocation7], %s10818_s8, %s10818_s8, %s8256_s9  }
  0x2c   : > { %s8374_s15 = sadd.s32 1, %s8251_s21   ;;  %s33_s16 = sadd.s32 1, %s8247_s20 }
  0x2d   : > { %s30_s17 = ssub.s32 %s8251_s21, %s8374_s15  ;;  %p40_p12 = scmp.ne.s32.totalorder %s8247_s20, %s8243_s19 }
  0x2e   : > { %p31_p13 = scmp.eq.s32.totalorder %s30_s17, 0  ;;  %p41_p0 = scmp.eq.s32.totalorder %s8251_s21, 0 }
  0x2f   : > { %p8384_p5 = por %p112_p2, %p40_p12  ;;  %p7808_p10 = scmp.lt.s32.totalorder %s8251_s21, 2 }
  0x30   : > { %s8390_s28 = scalar_select %p31_p13, %s8247_s20, %s33_s16  }
  0x31   : > { %s10829_s27 = scalar_select %p8384_p5, 1, 0 }
  0x32   : > { %p42_p3 = por %p41_p0, %p40_p12  ;;  %s216_s29 = sand.u32 1, %s8247_s20  }
  0x33   : > { %s6581_s30 = sshll.u32 %s216_s29, 7  ;;  %s6920_s6 = sshll.u32 %s8251_s21, 11 }
  0x34   : > { %s8397_s11 = scalar_lea.hbm %s10810_s0, %s6920_s6  ;;  %s220_s12 = scalar_lea.vmem [#allocation3], %s6581_s30 }
  0x35   : > { %s227_s13 = sshll.u32 %s220_s12, 4  ;;  %p8401_p2 = pnand %p7808_p10, %p42_p3  ;;  %s8399_s13 = int_to_ptr.vmem [resolvable:$true] %s227_s13 }
  0x36   : > { %s8405_s16 = scalar_lea.sflag [#allocation4], %s216_s29  ;;  %s8099_s17 = scalar_lea.hbm %s8397_s11, 2048 }
  0x37   : > { %p8100_p11 = scmp.ne.s32.totalorder %s8397_s11, %s8099_s17  ;;  %p8101_p7 = pneg %p8401_p2 }
  0x38   : > { %s8104_s30 = scalar_lea.hbm %s10810_s0, 4096  ;;  %p8105_p13 = scmp.lt.s32.totalorder %s8397_s11, %s10810_s0 }
  0x39   : > { %p8102_p9 = pnand %p8101_p7, %p8100_p11  ;;  %p8106_p0 = scmp.lt.s32.totalorder %s8104_s30, %s8099_s17 }
  0x3b   : > { %p8103_p12 = pneg %p8102_p9  ;;  %p8107_p10 = por %p8106_p0, %p8105_p13 }
  0x3d   : > { %p8108_p3 = pnand %p8107_p10, %p8103_p12 }
  0x3f   : > { %8111 = shalt.err (!%p8108_p3)
}
  0x40   : > { %s8112_s29 = scalar_lea.vmem %s8399_s13, 2048  ;;  %s8257_s23 = smov [#allocation3]  }
  0x41   : > { %p8113_p1 = scmp.ne.s32.totalorder %s8399_s13, %s8112_s29  ;;  %s8117_s8 = sshll.u32 %s8257_s23, 4  ;;  %s8118_s8 = int_to_ptr.vmem [resolvable:$false] %s8117_s8 }
  0x42   : > { %s8119_s6 = scalar_lea.vmem %s8118_s8, 4096  ;;  %p8120_p9 = scmp.lt.s32.totalorder %s8399_s13, %s8118_s8 }
  0x43   : > { %p8115_p6 = pnand %p8113_p1, %p8101_p7  ;;  %p8121_p5 = scmp.lt.s32.totalorder %s8119_s6, %s8112_s29 }
  0x45   : > { %p8116_p11 = pneg %p8115_p6  ;;  %p8122_p4 = por %p8121_p5, %p8120_p9 }
  0x47   : > { %p8123_p8 = pnand %p8122_p4, %p8116_p11 }
  0x49   : > { %8126 = shalt.err (!%p8123_p8)
}
  0x4a   : > { %s10831_s17 = smov 64   ;;  %p10832_p1 = scmp.ne.s32.totalorder %s10827_s26, 0 }
  0x4b   : > { %7795 = dma.hbm_to_vmem [thread:$0]  (!%p8401_p2), %s8397_s11, 2048, %s8399_s13, %s8405_s16, %s10831_s17, %s10831_s17, %s8256_s9  }
  0x4c   : > { %239 = sbr.rel (%p10832_p1) target bundleno = 779 (0x30b), region = 32 }
  0x51   : > { %s8432_s23 = sand.u32 1, %s8243_s19   ;;  %p10833_p4 = scmp.ne.s32.totalorder %s10825_s24, 0 }
  0x52   : > { %s6585_s8 = sshll.u32 %s8432_s23, 7  ;;  %s242_s7 = scalar_lea.sflag [#allocation4], %s8432_s23 }
  0x53   : > { %s8438_s14 = scalar_lea.vmem [#allocation3], %s6585_s8 }
  0x54   : > { %8222 = dma.done.wait (%p10833_p4), %s242_s7, 2048  }
  0x55   : > { %8224 = vsyncadd (%p10833_p4), %s242_s7, 4294965248  ;;  %p10834_p6 = scmp.eq.s32.totalorder %s8315_s22, 0 }
  0x57   : > { %8226 = dma.done.wait (%p10834_p6), [#allocation7], 10240   ;;  %p10835_p8 = pmov %p10834_p6 }
  0x58   : > { %v8258_v0 = vmov 0   ;;  %v7851_v1 = vld [vmem:[#allocation6 + $0x78] sm:$0xff]   ;;  %v7853_v3 = vld [vmem:[#allocation6 + $0x70] sm:$0xff]   ;;  %v7855_v5 = vld [vmem:[#allocation6 + $0x68] sm:$0xff]   ;;  %vm332_vm0 = vsmask.f32 256 }
  0x59   : > { %8228 = vsyncadd (%p10835_p8), [#allocation7], 4294957056  ;;  %323 = vst [vmem:[#allocation2] sm:$0xf] %v8258_v0  ;;  %v7852_v2 = vld [vmem:[#allocation6 + $0x38] sm:$0xff]   ;;  %7289 = vmatprep.subr.bf16.mxu0 %v7851_v1  ;;  %v7854_v4 = vld [vmem:[#allocation6 + $0x30] sm:$0xff]  }
  0x5a   : > { %324 = vst [vmem:[#allocation2 + $0x4] sm:$0xf] %v8258_v0  ;;  %325 = vst [vmem:[#allocation2 + $0x8] sm:$0x1] %v8258_v0  ;;  %7337 = vmatprep.subr.bf16.mxu1 %v7852_v2  ;;  %7290 = vmatpush3.bf16.msra.mxu0 %v7851_v1  ;;  %v7856_v6 = vld [vmem:[#allocation6 + $0x28] sm:$0xff]   ;;  %v7857_v7 = vld [vmem:[#allocation6 + $0x60] sm:$0xff]  }
  0x5b   : > { %327 = vst [vmem:[#allocation2 + $0xcc] sm:$0xf] %v8258_v0  ;;  %328 = vst [vmem:[#allocation2 + $0xd0] sm:$0xf] %v8258_v0  ;;  %7338 = vmatpush3.bf16.msra.mxu1 %v7852_v2  ;;  %7291 = vmatprep.subr.bf16.mxu0 %v7853_v3  ;;  %vm331_vm1 = vcmask 1040384   ;;  %v7858_v8 = vld [vmem:[#allocation6 + $0x20] sm:$0xff]  }
  0x5c   : > { %329 = vst [vmem:[#allocation2 + $0xd4] sm:$0x1] %v8258_v0  ;;  %7339 = vmatprep.subr.bf16.mxu1 %v7854_v4  ;;  %vm932_vm2 = vsmask.f32 3328  ;;  %vm933_vm3 = vsmask.f32 7440  ;;  %vm8450_vm4 = vmand %vm331_vm1, %vm332_vm0 }
  0x5d   : > { %vm382_vm5 = vsmask.f32 7938  ;;  %v7859_v10 = vld [vmem:[#allocation6 + $0x58] sm:$0xff]   ;;  %vm432_vm6 = vsmask.f32 4368  ;;  %v7861_v12 = vld [vmem:[#allocation6 + $0x50] sm:$0xff]   ;;  %vm8468_vm9 = vmor %vm932_vm2, %vm933_vm3 }
  0x5e   : > { %7292 = vmatpush3.bf16.msra.mxu0 %v7853_v3  ;;  %v7860_v11 = vld [vmem:[#allocation6 + $0x18] sm:$0xff]   ;;  %v7862_v13 = vld [vmem:[#allocation6 + $0x10] sm:$0xff]   ;;  %vm754_vm7 = vcmask 1043456   ;;  %v291_v21 = vld [vmem:[%s8438_s14] sm:$0xf]  ;;  %vm1962_vm12 = vcmask 1042432  }
  0x5f   : > { %7340 = vmatpush3.bf16.msra.mxu1 %v7854_v4  ;;  %7293 = vmatprep.subr.bf16.mxu0 %v7855_v5  ;;  %vm8457_vm8 = vmand %vm331_vm1, %vm382_vm5  ;;  %v7863_v23 = vld [vmem:[#allocation6 + $0x48] sm:$0xff]   ;;  %v292_v26 = vld [vmem:[%s8438_s14 + $0x4] sm:$0xf]  ;;  %v435_v36 = vshrl.u32 %v291_v21, 16  ;;  %v438_v40 = vshll.u32 %v291_v21, 16  ;;  %vm1963_vm13 = vcmask 1046532  }
  0x60   : > { %7341 = vmatprep.subr.bf16.mxu1 %v7856_v6  ;;  %v868_v14 = vld [vmem:[#allocation2] sm:$0xf]  ;;  %v334_v27 = vld [vmem:[#allocation2 + $0xc] sm:$0x1]  ;;  %v384_v32 = vld [vmem:[#allocation2 + $0x14] sm:$0x1] }
  0x61   : > { %v869_v15 = vld [vmem:[#allocation2 + $0x4] sm:$0xf]  ;;  %v916_v16 = vld [vmem:[#allocation2 + $0x8] sm:$0x1]  ;;  %v936_v17 = vshrl.u32 %v868_v14, 16  ;;  %v939_v18 = vshll.u32 %v868_v14, 16  ;;  %vm8475_vm10 = vmor %vm332_vm0, %vm432_vm6 }
  0x62   : > { %7294 = vmatpush3.bf16.msra.mxu0 %v7855_v5  ;;  %v945_v19 = vshll.u32 %v869_v15, 16  ;;  %v949_v20 = vshrl.u32 %v869_v15, 16  ;;  %v955_v24 = vshll.u32 %v916_v16, 16  ;;  %v6615_v25 = vcombine.low %v868_v14, %v869_v15  ;;  %v7864_v37 = vld [vmem:[#allocation6 + $0x8] sm:$0xff]   ;;  %v7865_v45 = vld [vmem:[#allocation6 + $0x40] sm:$0xff]   ;;  %vm8487_vm11 = vmand %vm754_vm7, %vm382_vm5  ;;  %s10612_s24 = scalar_lea.vmem [#allocation9], %s6585_s8 }
  0x63   : > { %7342 = vmatpush3.bf16.msra.mxu1 %v7856_v6  ;;  %7295 = vmatprep.subr.bf16.mxu0 %v7857_v7  ;;  %v938_v28 = vrot.slane %v936_v17, 4  ;;  %v941_v29 = vrot.slane %v939_v18, 5  ;;  %v335_v34 = vsel %vm8450_vm4, 0, %v334_v27  ;;  %v385_v35 = vsel %vm8457_vm8, 0, %v384_v32  ;;  %v293_v49 = vld [vmem:[%s8438_s14 + $0x8] sm:$0xf]  ;;  %vm8852_vm14 = vmor %vm1962_vm12, %vm1963_vm13 }
  0x64   : > { %7343 = vmatprep.subr.bf16.mxu1 %v7858_v8  ;;  %v947_v30 = vrot.slane %v945_v19, 5  ;;  %v951_v31 = vrot.slane %v949_v20, 4  ;;  %v957_v33 = vrot.slane %v955_v24, 5  ;;  %7353 = vmatprep.mubr.bf16.mxu1 %v6615_v25  ;;  %336 = vst [vmem:[#allocation2 + $0xc] sm:$0x1] %v335_v34  ;;  %v443_v41 = vshrl.u32 %v292_v26, 16 }
  0x65   : > { %v942_v38 = vor.u32 %v941_v29, %v938_v28  ;;  %386 = vst [vmem:[#allocation2 + $0x14] sm:$0x1] %v385_v35  ;;  %v437_v43 = vrot.slane %v435_v36, 7  ;;  %v446_v44 = vshll.u32 %v292_v26, 16  ;;  %v294_v53 = vld [vmem:[%s8438_s14 + $0xc] sm:$0xf] }
  0x66   : > { %7296 = vmatpush3.bf16.msra.mxu0 %v7857_v7  ;;  %v952_v39 = vor.u32 %v951_v31, %v947_v30  ;;  %v445_v48 = vrot.slane %v443_v41, 7  ;;  %v337_v54 = vld [vmem:[#allocation2 + $0x18] sm:$0x1]  ;;  %v452_v55 = vshrl.u32 %v293_v49, 16  ;;  %v387_v61 = vld [vmem:[#allocation2 + $0x20] sm:$0x1] }
  0x67   : > { %7344 = vmatpush3.bf16.msra.mxu1 %v7858_v8  ;;  %7297 = vmatprep.subr.bf16.mxu0 %v7859_v10  ;;  %v943_v46 = vrot.slane %v942_v38, 4  ;;  %v440_v51 = vor.u32 %v438_v40, %v437_v43  ;;  %v441_v52 = vrot.slane %v437_v43, 4  ;;  %v7866_v56 = vld [vmem:[#allocation6] sm:$0xff]   ;;  %v295_v62 = vld [vmem:[%s8438_s14 + $0x10] sm:$0xf]  ;;  %v338_v1 = vsel %vm8450_vm4, 0, %v337_v54 }
  0x68   : > { %7345 = vmatprep.subr.bf16.mxu1 %v7860_v11  ;;  %v953_v47 = vrot.slane %v952_v39, 4  ;;  %v448_v59 = vor.u32 %v446_v44, %v445_v48  ;;  %v450_v60 = vrot.slane %v445_v48, 4  ;;  %v388_v2 = vsel %vm8457_vm8, 0, %v387_v61  ;;  %v296_v4 = vld [vmem:[%s8438_s14 + $0x14] sm:$0xf]  ;;  %v8498_v6 = vld [vmem:[#allocation6 + $0xb8] sm:$0xff]  }
  0x69   : > { %v948_v57 = vsel %vm8468_vm9, %v943_v46, %v947_v30  ;;  %v454_v3 = vrot.slane %v452_v55, 7  ;;  %339 = vst [vmem:[#allocation2 + $0x18] sm:$0x1] %v338_v1  ;;  %389 = vst [vmem:[#allocation2 + $0x20] sm:$0x1] %v388_v2  ;;  %v455_v7 = vshll.u32 %v293_v49, 16 }
  0x6a   : > { %7298 = vmatpush3.bf16.msra.mxu0 %v7859_v10  ;;  %v958_v58 = vsel %vm8468_vm9, %v953_v47, %v957_v33  ;;  %v449_v5 = vsel %vm8475_vm10, %v441_v52, %v448_v59  ;;  %v460_v8 = vshrl.u32 %v294_v53, 16  ;;  %v463_v10 = vshll.u32 %v294_v53, 16  ;;  %v8500_v14 = vld [vmem:[#allocation6 + $0xf8] sm:$0xff]   ;;  %v390_v20 = vld [vmem:[#allocation2 + $0x2c] sm:$0x1]  ;;  %s6953_s26 = sshll.u32 %s8315_s22, 11 }
  0x6b   : > { %7346 = vmatpush3.bf16.msra.mxu1 %v7860_v11  ;;  %7299 = vmatprep.subr.bf16.mxu0 %v7861_v12  ;;  %v6591_v63 = vcombine.low %v948_v57, %v958_v58  ;;  %v340_v11 = vld [vmem:[#allocation2 + $0x24] sm:$0x1]  ;;  %759 = vst [vmem:[#allocation2 + $0x10] sm:$0xf] %v449_v5  ;;  %v458_v18 = vrot.slane %v454_v3, 4  ;;  %v391_v21 = vsel %vm8457_vm8, 0, %v390_v20  ;;  %v457_v26 = vor.u32 %v455_v7, %v454_v3  ;;  %s10698_s16 = scalar_lea.hbm %s10813_s3, %s6953_s26 }
  0x6c   : > { %7347 = vmatprep.subr.bf16.mxu1 %v7862_v13  ;;  %v341_v15 = vsel %vm8450_vm4, 0, %v340_v11  ;;  %v462_v19 = vrot.slane %v460_v8, 7  ;;  %v472_v24 = vshll.u32 %v295_v62, 16  ;;  %v477_v25 = vshrl.u32 %v296_v4, 16  ;;  %392 = vst [vmem:[#allocation2 + $0x2c] sm:$0x1] %v391_v21 }
  0x6d   : > { %7305 = vmatprep.mubr.bf16.mxu0 %v6591_v63  ;;  %342 = vst [vmem:[#allocation2 + $0x24] sm:$0x1] %v341_v15  ;;  %v480_v29 = vshll.u32 %v296_v4, 16  ;;  %v8512_v32 = vld [vmem:[%s8438_s14 + $0x18] sm:$0xf]  ;;  %v7874_v7 = vld [vmem:[#allocation6 + $0xf0] sm:$0xff]  }
  0x6e   : > { %7300 = vmatpush3.bf16.msra.mxu0 %v7861_v12  ;;  %v756_v12 = vld [vmem:[#allocation2 + $0xc] sm:$0xf]  ;;  %v465_v27 = vor.u32 %v463_v10, %v462_v19  ;;  %v467_v28 = vrot.slane %v462_v19, 4  ;;  %v479_v31 = vrot.slane %v477_v25, 7  ;;  %v8515_v33 = vld [vmem:[%s8438_s14 + $0x1c] sm:$0xf] }
  0x6f   : > { %7348 = vmatpush3.bf16.msra.mxu1 %v7862_v13  ;;  %7301 = vmatprep.subr.bf16.mxu0 %v7863_v23  ;;  %v760_v13 = vld [vmem:[#allocation2 + $0x14] sm:$0x1]  ;;  %v757_v16 = vsel %vm8487_vm11, %v440_v51, %v756_v12  ;;  %v343_v35 = vld [vmem:[#allocation2 + $0x30] sm:$0x1]  ;;  %v393_v36 = vld [vmem:[#allocation2 + $0x38] sm:$0x1] }
  0x70   : > { %7349 = vmatprep.subr.bf16.mxu1 %v7864_v37  ;;  %v761_v17 = vsel %vm8450_vm4, %v450_v60, %v760_v13  ;;  %758 = vst [vmem:[#allocation2 + $0xc] sm:$0xf] %v757_v16  ;;  %v466_v34 = vsel %vm8475_vm10, %v458_v18, %v465_v27  ;;  %v763_v38 = vld [vmem:[#allocation2 + $0x18] sm:$0xf]  ;;  %v767_v39 = vld [vmem:[#allocation2 + $0x20] sm:$0x1]  ;;  %v482_v43 = vor.u32 %v480_v29, %v479_v31 }
  0x71   : > { %762 = vst [vmem:[#allocation2 + $0x14] sm:$0x1] %v761_v17  ;;  %766 = vst [vmem:[#allocation2 + $0x1c] sm:$0xf] %v466_v34  ;;  %v484_v44 = vrot.slane %v479_v31, 4  ;;  %v764_v46 = vsel %vm8487_vm11, %v457_v26, %v763_v38  ;;  %v768_v47 = vsel %vm8450_vm4, %v467_v28, %v767_v39  ;;  %v344_v48 = vsel %vm8450_vm4, 0, %v343_v35 }
  0x72   : > { %7302 = vmatpush3.bf16.msra.mxu0 %v7863_v23  ;;  %v469_v23 = vshrl.u32 %v295_v62, 16  ;;  %v394_v49 = vsel %vm8457_vm8, 0, %v393_v36  ;;  %765 = vst [vmem:[#allocation2 + $0x18] sm:$0xf] %v764_v46  ;;  %769 = vst [vmem:[#allocation2 + $0x20] sm:$0x1] %v768_v47 }
  0x73   : > { %7350 = vmatpush3.bf16.msra.mxu1 %v7864_v37  ;;  %7303 = vmatprep.subr.bf16.mxu0 %v7865_v45  ;;  %v486_v37 = vshrl.u32 %v8512_v32, 16  ;;  %345 = vst [vmem:[#allocation2 + $0x30] sm:$0x1] %v344_v48  ;;  %395 = vst [vmem:[#allocation2 + $0x38] sm:$0x1] %v394_v49  ;;  %v489_v55 = vshll.u32 %v8512_v32, 16 }
  0x74   : > { %7351 = vmatprep.subr.bf16.mxu1 %v7866_v56  ;;  %v471_v30 = vrot.slane %v469_v23, 7  ;;  %v770_v54 = vld [vmem:[#allocation2 + $0x24] sm:$0xf]  ;;  %v494_v60 = vshrl.u32 %v8515_v33, 16  ;;  %v774_v2 = vld [vmem:[#allocation2 + $0x2c] sm:$0x1] }
  0x75   : > { %v8534_v59 = vrot.slane %v486_v37, 7  ;;  %v775_v5 = vsel %vm8450_vm4, %v484_v44, %v774_v2  ;;  %v497_v8 = vshll.u32 %v8515_v33, 16  ;;  %v346_v10 = vld [vmem:[#allocation2 + $0x3c] sm:$0x1]  ;;  %v396_v15 = vld [vmem:[#allocation2 + $0x44] sm:$0x1] }
  0x76   : > { %7304 = vmatpush3.bf16.msra.mxu0 %v7865_v45  ;;  %v474_v40 = vor.u32 %v472_v24, %v471_v30  ;;  %v475_v41 = vrot.slane %v471_v30, 4  ;;  %v871_v45 = vld [vmem:[#allocation2 + $0x10] sm:$0xf]  ;;  %776 = vst [vmem:[#allocation2 + $0x2c] sm:$0x1] %v775_v5  ;;  %v8541_v19 = vrot.slane %v494_v60, 7 }
  0x77   : > { %7352 = vmatpush3.bf16.msra.mxu1 %v7866_v56  ;;  %7385 = vmatprep.subr.bf16.mxu0 %v8498_v6  ;;  %v969_v51 = vshll.u32 %v871_v45, 16  ;;  %v973_v52 = vshrl.u32 %v871_v45, 16  ;;  %v870_v56 = vld [vmem:[#allocation2 + $0xc] sm:$0xf]  ;;  %v492_v18 = vrot.slane %v8534_v59, 4  ;;  %v347_v20 = vsel %vm8450_vm4, 0, %v346_v10 }
  0x78   : > { %7433 = vmatprep.subr.bf16.mxu1 %v8500_v14  ;;  %v483_v53 = vsel %vm8475_vm10, %v475_v41, %v482_v43  ;;  %v917_v57 = vld [vmem:[#allocation2 + $0x14] sm:$0x1]  ;;  %v771_v58 = vsel %vm8487_vm11, %v474_v40, %v770_v54  ;;  %v960_v61 = vshrl.u32 %v870_v56, 16  ;;  %v963_v62 = vshll.u32 %v870_v56, 16  ;;  %v873_v17 = vld [vmem:[#allocation2 + $0x1c] sm:$0xf] }
  0x79   : > { %773 = vst [vmem:[#allocation2 + $0x28] sm:$0xf] %v483_v53  ;;  %v971_v63 = vrot.slane %v969_v51, 5  ;;  %v975_v1 = vrot.slane %v973_v52, 4  ;;  %772 = vst [vmem:[#allocation2 + $0x24] sm:$0xf] %v771_v58  ;;  %v6616_v4 = vcombine.low %v870_v56, %v871_v45  ;;  %v491_v29 = vor.u32 %v489_v55, %v8534_v59 }
  0x7a   : > { %v979_v3 = vshll.u32 %v917_v57, 16  ;;  %v962_v11 = vrot.slane %v960_v61, 4  ;;  %v965_v12 = vrot.slane %v963_v62, 5  ;;  %v993_v24 = vshll.u32 %v873_v17, 16  ;;  %348 = vst [vmem:[#allocation2 + $0x3c] sm:$0x1] %v347_v20 }
  0x7b   : > { %v976_v13 = vor.u32 %v975_v1, %v971_v63  ;;  %7354 = vmatmul.mubr.bf16.vlgmr.msra.gmra.mxu1 %v6616_v4  ;;  %v997_v25 = vshrl.u32 %v873_v17, 16  ;;  %v7878_v26 = vld [vmem:[#allocation6 + $0xe8] sm:$0xff]   ;;  %v872_v27 = vld [vmem:[#allocation2 + $0x18] sm:$0xf]  ;;  %v499_v30 = vor.u32 %v497_v8, %v8541_v19  ;;  %v501_v31 = vrot.slane %v8541_v19, 4  ;;  %v7873_v47 = vld [vmem:[#allocation6 + $0xb0] sm:$0xff]  }
  0x7c   : > { %v981_v16 = vrot.slane %v979_v3, 5  ;;  %v966_v21 = vor.u32 %v965_v12, %v962_v11  ;;  %7434 = vmatpush3.bf16.msra.mxu1 %v8500_v14  ;;  %v918_v28 = vld [vmem:[#allocation2 + $0x20] sm:$0x1]  ;;  %v397_v32 = vsel %vm8457_vm8, 0, %v396_v15  ;;  %v984_v34 = vshrl.u32 %v872_v27, 16  ;;  %v7882_v61 = vld [vmem:[#allocation6 + $0xe0] sm:$0xff]  }
  0x7d   : > { %v977_v23 = vrot.slane %v976_v13, 4  ;;  %7435 = vmatprep.subr.bf16.mxu1 %v7874_v7  ;;  %v987_v35 = vshll.u32 %v872_v27, 16  ;;  %398 = vst [vmem:[#allocation2 + $0x44] sm:$0x1] %v397_v32  ;;  %v995_v37 = vrot.slane %v993_v24, 5  ;;  %v999_v38 = vrot.slane %v997_v25, 4 }
  0x7e   : > { %v967_v33 = vrot.slane %v966_v21, 4  ;;  %v1003_v39 = vshll.u32 %v918_v28, 16  ;;  %v6617_v40 = vcombine.low %v872_v27, %v873_v17  ;;  %v986_v44 = vrot.slane %v984_v34, 4  ;;  %v919_v52 = vld [vmem:[#allocation2 + $0x2c] sm:$0x1]  ;;  %v7886_v21 = vld [vmem:[#allocation6 + $0xd8] sm:$0xff]  }
  0x7f   : > { %v982_v14 = vsel %vm8468_vm9, %v977_v23, %v981_v16  ;;  %v989_v45 = vrot.slane %v987_v35, 5  ;;  %v1000_v49 = vor.u32 %v999_v38, %v995_v37  ;;  %v777_v54 = vld [vmem:[#allocation2 + $0x30] sm:$0xf]  ;;  %v299_v55 = vld [vmem:[%s8438_s14 + $0x20] sm:$0xf]  ;;  %v1027_v1 = vshll.u32 %v919_v52, 16 }
  0x80   : > { %v875_v36 = vld [vmem:[#allocation2 + $0x28] sm:$0xf]  ;;  %v874_v41 = vld [vmem:[#allocation2 + $0x24] sm:$0xf]  ;;  %v972_v43 = vsel %vm8468_vm9, %v967_v33, %v971_v63  ;;  %7436 = vmatpush3.bf16.msra.mxu1 %v7874_v7  ;;  %v1005_v51 = vrot.slane %v1003_v39, 5  ;;  %7357 = vmatprep.mubr.bf16.mxu1 %v6617_v40  ;;  %v500_v8 = vsel %vm8475_vm10, %v492_v18, %v499_v30  ;;  %v778_v13 = vsel %vm8487_vm11, %v491_v29, %v777_v54  ;;  %v8574_v28 = vld [vmem:[#allocation6 + $0xa0] sm:$0xff]  }
  0x81   : > { %v1008_v46 = vshrl.u32 %v874_v41, 16  ;;  %v6592_v48 = vcombine.low %v972_v43, %v982_v14  ;;  %v1011_v53 = vshll.u32 %v874_v41, 16  ;;  %7437 = vmatprep.subr.bf16.mxu1 %v7878_v26  ;;  %v990_v56 = vor.u32 %v989_v45, %v986_v44  ;;  %v8557_v60 = vld [vmem:[%s8438_s14 + $0x24] sm:$0xf]  ;;  %v781_v3 = vld [vmem:[#allocation2 + $0x38] sm:$0x1] }
  0x82   : > { %v1017_v58 = vshll.u32 %v875_v36, 16  ;;  %v1021_v59 = vshrl.u32 %v875_v36, 16  ;;  %v1001_v62 = vrot.slane %v1000_v49, 4  ;;  %v6618_v2 = vcombine.low %v874_v41, %v875_v36  ;;  %780 = vst [vmem:[#allocation2 + $0x34] sm:$0xf] %v500_v8  ;;  %v7890_v38 = vld [vmem:[#allocation6 + $0xd0] sm:$0xff]  }
  0x83   : > { %v1010_v57 = vrot.slane %v1008_v46, 4  ;;  %7306 = vmatmul.mubr.bf16.vlgmr.msra.gmra.mxu0 %v6592_v48  ;;  %v1013_v63 = vrot.slane %v1011_v53, 5  ;;  %v991_v4 = vrot.slane %v990_v56, 4  ;;  %v1029_v12 = vrot.slane %v1027_v1, 5  ;;  %779 = vst [vmem:[#allocation2 + $0x30] sm:$0xf] %v778_v13 }
  0x84   : > { %7386 = vmatpush3.bf16.msra.mxu0 %v8498_v6  ;;  %v1019_v5 = vrot.slane %v1017_v58, 5  ;;  %v1023_v7 = vrot.slane %v1021_v59, 4  ;;  %7438 = vmatpush3.bf16.msra.mxu1 %v7878_v26  ;;  %v1006_v10 = vsel %vm8468_vm9, %v1001_v62, %v1005_v51  ;;  %v7877_v6 = vld [vmem:[#allocation6 + $0xa8] sm:$0xff]   ;;  %v782_v17 = vsel %vm8450_vm4, %v501_v31, %v781_v3  ;;  %v349_v20 = vld [vmem:[#allocation2 + $0x48] sm:$0x1]  ;;  %v8592_v52 = vld [vmem:[#allocation6 + $0x98] sm:$0xff]  }
  0x85   : > { %v1014_v11 = vor.u32 %v1013_v63, %v1010_v57  ;;  %7358 = vmatmul.mubr.bf16.gmra.mxu1 %v6618_v2  ;;  %7387 = vmatprep.subr.bf16.mxu0 %v7873_v47  ;;  %v996_v15 = vsel %vm8468_vm9, %v991_v4, %v995_v37  ;;  %v503_v18 = vshrl.u32 %v299_v55, 16  ;;  %v8571_v19 = vld [vmem:[%s8438_s14 + $0x28] sm:$0xf]  ;;  %783 = vst [vmem:[#allocation2 + $0x38] sm:$0x1] %v782_v17  ;;  %v506_v25 = vshll.u32 %v299_v55, 16 }
  0x86   : > { %v1024_v16 = vor.u32 %v1023_v7, %v1019_v5  ;;  %7439 = vmatprep.subr.bf16.mxu1 %v7882_v61  ;;  %v6593_v23 = vcombine.low %v996_v15, %v1006_v10  ;;  %v511_v26 = vshrl.u32 %v8557_v60, 16  ;;  %v399_v27 = vld [vmem:[#allocation2 + $0x50] sm:$0x1]  ;;  %v514_v31 = vshll.u32 %v8557_v60, 16  ;;  %v784_v32 = vld [vmem:[#allocation2 + $0x3c] sm:$0xf] }
  0x87   : > { %v1015_v24 = vrot.slane %v1014_v11, 4  ;;  %v505_v30 = vrot.slane %v503_v18, 7  ;;  %v350_v33 = vsel %vm8450_vm4, 0, %v349_v20  ;;  %v8582_v35 = vld [vmem:[%s8438_s14 + $0x2c] sm:$0xf]  ;;  %v400_v36 = vsel %vm8457_vm8, 0, %v399_v27 }
  0x88   : > { %v1025_v29 = vrot.slane %v1024_v16, 4  ;;  %7388 = vmatpush3.bf16.msra.mxu0 %v7873_v47  ;;  %7440 = vmatpush3.bf16.msra.mxu1 %v7882_v61  ;;  %v513_v34 = vrot.slane %v511_v26, 7  ;;  %351 = vst [vmem:[#allocation2 + $0x48] sm:$0x1] %v350_v33  ;;  %v520_v37 = vshrl.u32 %v8571_v19, 16  ;;  %v523_v44 = vshll.u32 %v8571_v19, 16 }
  0x89   : > { %7309 = vmatprep.mubr.bf16.mxu0 %v6593_v23  ;;  %v1020_v14 = vsel %vm8468_vm9, %v1015_v24, %v1019_v5  ;;  %7389 = vmatprep.subr.bf16.mxu0 %v7877_v6  ;;  %v508_v40 = vor.u32 %v506_v25, %v505_v30  ;;  %v509_v41 = vrot.slane %v505_v30, 4  ;;  %v788_v43 = vld [vmem:[#allocation2 + $0x44] sm:$0x1]  ;;  %401 = vst [vmem:[#allocation2 + $0x50] sm:$0x1] %v400_v36  ;;  %v528_v55 = vshrl.u32 %v8582_v35, 16 }
  0x8a   : > { %v1030_v39 = vsel %vm8468_vm9, %v1025_v29, %v1029_v12  ;;  %v352_v45 = vld [vmem:[#allocation2 + $0x54] sm:$0x1]  ;;  %7441 = vmatprep.subr.bf16.mxu1 %v7886_v21  ;;  %v516_v47 = vor.u32 %v514_v31, %v513_v34  ;;  %v518_v48 = vrot.slane %v513_v34, 4  ;;  %v8590_v49 = vrot.slane %v520_v37, 7  ;;  %v402_v51 = vld [vmem:[#allocation2 + $0x5c] sm:$0x1] }
  0x8b   : > { %v6594_v46 = vcombine.low %v1020_v14, %v1030_v39  ;;  %v877_v53 = vld [vmem:[#allocation2 + $0x34] sm:$0xf]  ;;  %v785_v54 = vsel %vm8487_vm11, %v508_v40, %v784_v32  ;;  %v531_v56 = vshll.u32 %v8582_v35, 16  ;;  %v8599_v57 = vld [vmem:[%s8438_s14 + $0x30] sm:$0xf]  ;;  %v353_v58 = vsel %vm8450_vm4, 0, %v352_v45 }
  0x8c   : > { %7390 = vmatpush3.bf16.msra.mxu0 %v7877_v6  ;;  %7442 = vmatpush3.bf16.msra.mxu1 %v7886_v21  ;;  %v8603_v59 = vld [vmem:[#allocation6 + $0xc8] sm:$0xff]   ;;  %v876_v60 = vld [vmem:[#allocation2 + $0x30] sm:$0xf]  ;;  %v1041_v61 = vshll.u32 %v877_v53, 16  ;;  %v1045_v62 = vshrl.u32 %v877_v53, 16  ;;  %v517_v63 = vsel %vm8475_vm10, %v509_v41, %v516_v47  ;;  %v789_v1 = vsel %vm8450_vm4, %v518_v48, %v788_v43  ;;  %v7889_v25 = vld [vmem:[#allocation6 + $0x90] sm:$0xff]  }
  0x8d   : > { %7310 = vmatmul.mubr.bf16.gmra.mxu0 %v6594_v46  ;;  %786 = vst [vmem:[#allocation2 + $0x3c] sm:$0xf] %v785_v54  ;;  %354 = vst [vmem:[#allocation2 + $0x54] sm:$0x1] %v353_v58  ;;  %7391 = vmatprep.subr.bf16.mxu0 %v8574_v28  ;;  %v920_v2 = vld [vmem:[#allocation2 + $0x38] sm:$0x1]  ;;  %v6619_v5 = vcombine.low %v876_v60, %v877_v53  ;;  %v525_v7 = vor.u32 %v523_v44, %v8590_v49 }
  0x8e   : > { %v1032_v3 = vshrl.u32 %v876_v60, 16  ;;  %v1035_v4 = vshll.u32 %v876_v60, 16  ;;  %787 = vst [vmem:[#allocation2 + $0x40] sm:$0xf] %v517_v63  ;;  %790 = vst [vmem:[#allocation2 + $0x44] sm:$0x1] %v789_v1  ;;  %7443 = vmatprep.subr.bf16.mxu1 %v7890_v38 }
  0x8f   : > { %v1043_v8 = vrot.slane %v1041_v61, 5  ;;  %v1047_v10 = vrot.slane %v1045_v62, 4  ;;  %v1051_v11 = vshll.u32 %v920_v2, 16  ;;  %v526_v12 = vrot.slane %v8590_v49, 4  ;;  %v8613_v13 = vld [vmem:[%s8438_s14 + $0x34] sm:$0xf]  ;;  %7361 = vmatprep.mubr.bf16.mxu1 %v6619_v5 }
  0x90   : > { %v1034_v6 = vrot.slane %v1032_v3, 4  ;;  %v1037_v15 = vrot.slane %v1035_v4, 5  ;;  %v530_v16 = vrot.slane %v528_v55, 7  ;;  %v791_v17 = vld [vmem:[#allocation2 + $0x48] sm:$0xf]  ;;  %v403_v18 = vsel %vm8457_vm8, 0, %v402_v51  ;;  %7392 = vmatpush3.bf16.msra.mxu0 %v8574_v28  ;;  %7444 = vmatpush3.bf16.msra.mxu1 %v7890_v38 }
  0x91   : > { %v1048_v19 = vor.u32 %v1047_v10, %v1043_v8  ;;  %v1053_v20 = vrot.slane %v1051_v11, 5  ;;  %v792_v21 = vsel %vm8487_vm11, %v525_v7, %v791_v17  ;;  %v795_v23 = vld [vmem:[#allocation2 + $0x50] sm:$0x1]  ;;  %404 = vst [vmem:[#allocation2 + $0x5c] sm:$0x1] %v403_v18  ;;  %v537_v24 = vshrl.u32 %v8599_v57, 16  ;;  %7393 = vmatprep.subr.bf16.mxu0 %v8592_v52  ;;  %7445 = vmatprep.subr.bf16.mxu1 %v8603_v59 }
  0x92   : > { %v1038_v26 = vor.u32 %v1037_v15, %v1034_v6  ;;  %v533_v27 = vor.u32 %v531_v56, %v530_v16  ;;  %v535_v29 = vrot.slane %v530_v16, 4  ;;  %793 = vst [vmem:[#allocation2 + $0x48] sm:$0xf] %v792_v21  ;;  %v540_v30 = vshll.u32 %v8599_v57, 16  ;;  %v355_v28 = vld [vmem:[#allocation2 + $0x60] sm:$0x1] }
  0x93   : > { %v7898_v31 = vld [vmem:[#allocation6 + $0xc0] sm:$0xff]   ;;  %v1049_v32 = vrot.slane %v1048_v19, 4  ;;  %v8624_v33 = vrot.slane %v537_v24, 7  ;;  %v545_v14 = vshrl.u32 %v8613_v13, 16  ;;  %v548_v34 = vshll.u32 %v8613_v13, 16  ;;  %v7893_v54 = vld [vmem:[#allocation6 + $0x88] sm:$0xff]  }
  0x94   : > { %v1039_v35 = vrot.slane %v1038_v26, 4  ;;  %v878_v36 = vld [vmem:[#allocation2 + $0x3c] sm:$0xf]  ;;  %v534_v37 = vsel %vm8475_vm10, %v526_v12, %v533_v27  ;;  %v796_v38 = vsel %vm8450_vm4, %v535_v29, %v795_v23  ;;  %v356_v39 = vsel %vm8450_vm4, 0, %v355_v28  ;;  %v405_v40 = vld [vmem:[#allocation2 + $0x68] sm:$0x1]  ;;  %7394 = vmatpush3.bf16.msra.mxu0 %v8592_v52  ;;  %7446 = vmatpush3.bf16.msra.mxu1 %v8603_v59 }
  0x95   : > { %v1054_v41 = vsel %vm8468_vm9, %v1049_v32, %v1053_v20  ;;  %v879_v43 = vld [vmem:[#allocation2 + $0x40] sm:$0xf]  ;;  %v921_v44 = vld [vmem:[#allocation2 + $0x44] sm:$0x1]  ;;  %v1056_v45 = vshrl.u32 %v878_v36, 16  ;;  %v1059_v46 = vshll.u32 %v878_v36, 16  ;;  %v542_v47 = vor.u32 %v540_v30, %v8624_v33  ;;  %7395 = vmatprep.subr.bf16.mxu0 %v7889_v25  ;;  %7447 = vmatprep.subr.bf16.mxu1 %v7898_v31 }
  0x96   : > { %794 = vst [vmem:[#allocation2 + $0x4c] sm:$0xf] %v534_v37  ;;  %797 = vst [vmem:[#allocation2 + $0x50] sm:$0x1] %v796_v38  ;;  %v1044_v48 = vsel %vm8468_vm9, %v1039_v35, %v1043_v8  ;;  %v1065_v49 = vshll.u32 %v879_v43, 16  ;;  %v1069_v51 = vshrl.u32 %v879_v43, 16  ;;  %v6620_v58 = vcombine.low %v878_v36, %v879_v43 }
  0x97   : > { %357 = vst [vmem:[#allocation2 + $0x60] sm:$0x1] %v356_v39  ;;  %v1075_v52 = vshll.u32 %v921_v44, 16  ;;  %v798_v53 = vld [vmem:[#allocation2 + $0x54] sm:$0xf]  ;;  %v6595_v55 = vcombine.low %v1044_v48, %v1054_v41  ;;  %v1058_v56 = vrot.slane %v1056_v45, 4 }
  0x98   : > { %v1061_v57 = vrot.slane %v1059_v46, 5  ;;  %v8642_v60 = vld [vmem:[%s8438_s14 + $0x38] sm:$0xf]  ;;  %v1067_v62 = vrot.slane %v1065_v49, 5  ;;  %v1071_v63 = vrot.slane %v1069_v51, 4  ;;  %v543_v59 = vrot.slane %v8624_v33, 4  ;;  %7396 = vmatpush3.bf16.msra.mxu0 %v7889_v25  ;;  %7362 = vmatmul.mubr.bf16.gmra.mxu1 %v6620_v58 }
  0x99   : > { %v7902_v61 = vld [vmem:[#allocation6 + $0x178] sm:$0xff]   ;;  %v1077_v1 = vrot.slane %v1075_v52, 5  ;;  %v7897_v2 = vld [vmem:[#allocation6 + $0x80] sm:$0xff]   ;;  %7313 = vmatprep.mubr.bf16.mxu0 %v6595_v55  ;;  %v880_v4 = vld [vmem:[#allocation2 + $0x48] sm:$0xf]  ;;  %v547_v5 = vrot.slane %v545_v14, 7  ;;  %v799_v7 = vsel %vm8487_vm11, %v542_v47, %v798_v53  ;;  %7397 = vmatprep.subr.bf16.mxu0 %v7893_v54 }
  0x9a   : > { %v1062_v3 = vor.u32 %v1061_v57, %v1058_v56  ;;  %v406_v8 = vsel %vm8457_vm8, 0, %v405_v40  ;;  %v1072_v10 = vor.u32 %v1071_v63, %v1067_v62  ;;  %v1080_v11 = vshrl.u32 %v880_v4, 16  ;;  %800 = vst [vmem:[#allocation2 + $0x54] sm:$0xf] %v799_v7  ;;  %7448 = vmatpush3.bf16.msra.mxu1 %v7898_v31  ;;  %v306_v17 = vld [vmem:[%s8438_s14 + $0x3c] sm:$0xf] }
  0x9b   : > { %v1083_v12 = vshll.u32 %v880_v4, 16  ;;  %407 = vst [vmem:[#allocation2 + $0x68] sm:$0x1] %v406_v8  ;;  %v554_v13 = vshrl.u32 %v8642_v60, 16  ;;  %v550_v15 = vor.u32 %v548_v34, %v547_v5  ;;  %v552_v16 = vrot.slane %v547_v5, 4  ;;  %7529 = vmatprep.subr.bf16.mxu1 %v7902_v61  ;;  %v7901_v30 = vld [vmem:[#allocation6 + $0x138] sm:$0xff]  }
  0x9c   : > { %v1063_v6 = vrot.slane %v1062_v3, 4  ;;  %v557_v18 = vshll.u32 %v8642_v60, 16  ;;  %v1073_v19 = vrot.slane %v1072_v10, 4  ;;  %v1082_v23 = vrot.slane %v1080_v11, 4  ;;  %7398 = vmatpush3.bf16.msra.mxu0 %v7893_v54  ;;  %v802_v29 = vld [vmem:[#allocation2 + $0x5c] sm:$0x1] }
  0x9d   : > { %v881_v20 = vld [vmem:[#allocation2 + $0x4c] sm:$0xf]  ;;  %v922_v21 = vld [vmem:[#allocation2 + $0x50] sm:$0x1]  ;;  %v1085_v25 = vrot.slane %v1083_v12, 5  ;;  %7399 = vmatprep.subr.bf16.mxu0 %v7897_v2  ;;  %v551_v33 = vsel %vm8475_vm10, %v543_v59, %v550_v15  ;;  %v803_v38 = vsel %vm8450_vm4, %v552_v16, %v802_v29  ;;  %v556_v39 = vrot.slane %v554_v13, 7 }
  0x9e   : > { %v1068_v24 = vsel %vm8468_vm9, %v1063_v6, %v1067_v62  ;;  %v1089_v26 = vshll.u32 %v881_v20, 16  ;;  %v1093_v27 = vshrl.u32 %v881_v20, 16  ;;  %v1078_v28 = vsel %vm8468_vm9, %v1073_v19, %v1077_v1  ;;  %801 = vst [vmem:[#allocation2 + $0x58] sm:$0xf] %v551_v33  ;;  %v358_v37 = vld [vmem:[#allocation2 + $0x6c] sm:$0x1] }
  0x9f   : > { %v1099_v31 = vshll.u32 %v922_v21, 16  ;;  %v6621_v32 = vcombine.low %v880_v4, %v881_v20  ;;  %v6596_v14 = vcombine.low %v1068_v24, %v1078_v28  ;;  %v1086_v34 = vor.u32 %v1085_v25, %v1082_v23  ;;  %v805_v41 = vld [vmem:[#allocation2 + $0x60] sm:$0xf]  ;;  %v408_v43 = vld [vmem:[#allocation2 + $0x74] sm:$0x1]  ;;  %s6397_s9 = sshll.u32 %s10612_s24, 4  ;;  %s10700_s9 = int_to_ptr.vmem [resolvable:$true] %s6397_s9 }
  0xa0   : > { %v1091_v35 = vrot.slane %v1089_v26, 5  ;;  %v1095_v36 = vrot.slane %v1093_v27, 4  ;;  %v562_v40 = vshrl.u32 %v306_v17, 16  ;;  %7400 = vmatpush3.bf16.msra.mxu0 %v7897_v2  ;;  %804 = vst [vmem:[#allocation2 + $0x5c] sm:$0x1] %v803_v38  ;;  %v565_v48 = vshll.u32 %v306_v17, 16 }
  0xa1   : > { %7365 = vmatprep.mubr.bf16.mxu1 %v6621_v32  ;;  %7314 = vmatmul.mubr.bf16.gmra.mxu0 %v6596_v14  ;;  %v1087_v44 = vrot.slane %v1086_v34, 4  ;;  %v1101_v46 = vrot.slane %v1099_v31, 5  ;;  %v882_v47 = vld [vmem:[#allocation2 + $0x54] sm:$0xf]  ;;  %v559_v52 = vor.u32 %v557_v18, %v556_v39  ;;  %v560_v53 = vrot.slane %v556_v39, 4  ;;  %s6374_s30 = scalar_lea.sflag [#allocation5], %s8432_s23 }
  0xa2   : > { %v1096_v45 = vor.u32 %v1095_v36, %v1091_v35  ;;  %7481 = vmatprep.subr.bf16.mxu0 %v7901_v30  ;;  %v1104_v49 = vshrl.u32 %v882_v47, 16  ;;  %v1107_v51 = vshll.u32 %v882_v47, 16  ;;  %v307_v54 = vld [vmem:[%s8438_s14 + $0x40] sm:$0xf]  ;;  %v564_v57 = vrot.slane %v562_v40, 7  ;;  %s8127_s10 = scalar_lea.vmem %s10700_s9, 2048 }
  0xa3   : > { %v1092_v55 = vsel %vm8468_vm9, %v1087_v44, %v1091_v35  ;;  %v308_v58 = vld [vmem:[%s8438_s14 + $0x44] sm:$0xf]  ;;  %v359_v60 = vsel %vm8450_vm4, 0, %v358_v37  ;;  %v806_v63 = vsel %vm8487_vm11, %v559_v52, %v805_v41  ;;  %v409_v1 = vsel %vm8457_vm8, 0, %v408_v43  ;;  %v809_v4 = vld [vmem:[#allocation2 + $0x68] sm:$0x1]  ;;  %p8128_p5 = scmp.ne.s32.totalorder %s10700_s9, %s8127_s10 }
  0xa4   : > { %v1097_v56 = vrot.slane %v1096_v45, 4  ;;  %v1106_v61 = vrot.slane %v1104_v49, 4  ;;  %v1109_v62 = vrot.slane %v1107_v51, 5  ;;  %360 = vst [vmem:[#allocation2 + $0x6c] sm:$0x1] %v359_v60  ;;  %v567_v2 = vor.u32 %v565_v48, %v564_v57  ;;  %p10955_p2 = scmp.ne.s32.totalorder %s10829_s27, 0 }
  0xa5   : > { %v569_v3 = vrot.slane %v564_v57, 4  ;;  %807 = vst [vmem:[#allocation2 + $0x60] sm:$0xf] %v806_v63  ;;  %410 = vst [vmem:[#allocation2 + $0x74] sm:$0x1] %v409_v1  ;;  %v571_v5 = vshrl.u32 %v307_v54, 16 }
  0xa6   : > { %v1102_v59 = vsel %vm8468_vm9, %v1097_v56, %v1101_v46  ;;  %v361_v7 = vld [vmem:[#allocation2 + $0x78] sm:$0x1]  ;;  %v1110_v11 = vor.u32 %v1109_v62, %v1106_v61  ;;  %v574_v12 = vshll.u32 %v307_v54, 16  ;;  %v579_v13 = vshrl.u32 %v308_v58, 16  ;;  %v309_v18 = vld [vmem:[%s8438_s14 + $0x48] sm:$0xf]  ;;  %p8129_p7 = pnand %p8128_p5, %p10955_p2 }
  0xa7   : > { %v6597_v8 = vcombine.low %v1092_v55, %v1102_v59  ;;  %v8672_v10 = vld [vmem:[#allocation2 + $0x58] sm:$0xf]  ;;  %v568_v17 = vsel %vm8475_vm10, %v560_v53, %v567_v2  ;;  %v8680_v19 = vld [vmem:[#allocation2 + $0x5c] sm:$0x1]  ;;  %v810_v21 = vsel %vm8450_vm4, %v569_v3, %v809_v4  ;;  %v573_v23 = vrot.slane %v571_v5, 7  ;;  %s8259_s12 = smov [#allocation9]  }
  0xa8   : > { %v1113_v6 = vshll.u32 %v8672_v10, 16  ;;  %v1117_v15 = vshrl.u32 %v8672_v10, 16  ;;  %v6622_v16 = vcombine.low %v882_v47, %v8672_v10  ;;  %v1111_v20 = vrot.slane %v1110_v11, 4  ;;  %808 = vst [vmem:[#allocation2 + $0x64] sm:$0xf] %v568_v17  ;;  %p8130_p12 = pneg %p8129_p7  ;;  %s8131_s29 = sshll.u32 %s8259_s12, 4  ;;  %s8132_s29 = int_to_ptr.vmem [resolvable:$false] %s8131_s29 }
  0xa9   : > { %7317 = vmatprep.mubr.bf16.mxu0 %v6597_v8  ;;  %v581_v24 = vrot.slane %v579_v13, 7  ;;  %v1123_v27 = vshll.u32 %v8680_v19, 16  ;;  %811 = vst [vmem:[#allocation2 + $0x68] sm:$0x1] %v810_v21  ;;  %v582_v29 = vshll.u32 %v308_v58, 16  ;;  %v576_v28 = vor.u32 %v574_v12, %v573_v23  ;;  %s8133_s6 = scalar_lea.vmem %s8132_s29, 4096  ;;  %p8134_p13 = scmp.lt.s32.totalorder %s10700_s9, %s8132_s29 }
  0xaa   : > { %v1115_v25 = vrot.slane %v1113_v6, 5  ;;  %v1119_v26 = vrot.slane %v1117_v15, 4  ;;  %7366 = vmatmul.mubr.bf16.gmra.mxu1 %v6622_v16  ;;  %v411_v30 = vld [vmem:[#allocation2 + $0x80] sm:$0x1]  ;;  %v577_v31 = vrot.slane %v573_v23, 4  ;;  %v362_v33 = vsel %vm8450_vm4, 0, %v361_v7  ;;  %p8135_p0 = scmp.lt.s32.totalorder %s8133_s6, %s8127_s10 }
  0xab   : > { %v586_v32 = vrot.slane %v581_v24, 4  ;;  %v1125_v34 = vrot.slane %v1123_v27, 5  ;;  %v584_v35 = vor.u32 %v582_v29, %v581_v24  ;;  %v812_v36 = vld [vmem:[#allocation2 + $0x6c] sm:$0xf]  ;;  %v310_v37 = vld [vmem:[%s8438_s14 + $0x4c] sm:$0xf] }
  0xac   : > { %v1120_v14 = vor.u32 %v1119_v26, %v1115_v25  ;;  %363 = vst [vmem:[#allocation2 + $0x78] sm:$0x1] %v362_v33  ;;  %v1116_v38 = vsel %vm8468_vm9, %v1111_v20, %v1115_v25  ;;  %v884_v39 = vld [vmem:[#allocation2 + $0x60] sm:$0xf]  ;;  %v813_v40 = vsel %vm8487_vm11, %v576_v28, %v812_v36  ;;  %v816_v41 = vld [vmem:[#allocation2 + $0x74] sm:$0x1]  ;;  %p8136_p10 = por %p8135_p0, %p8134_p13 }
  0xad   : > { %v412_v43 = vsel %vm8457_vm8, 0, %v411_v30  ;;  %v588_v44 = vshrl.u32 %v309_v18, 16  ;;  %v1128_v46 = vshrl.u32 %v884_v39, 16  ;;  %v1131_v47 = vshll.u32 %v884_v39, 16  ;;  %814 = vst [vmem:[#allocation2 + $0x6c] sm:$0xf] %v813_v40 }
  0xae   : > { %v1121_v45 = vrot.slane %v1120_v14, 4  ;;  %v585_v48 = vsel %vm8475_vm10, %v577_v31, %v584_v35  ;;  %413 = vst [vmem:[#allocation2 + $0x80] sm:$0x1] %v412_v43  ;;  %v817_v49 = vsel %vm8450_vm4, %v586_v32, %v816_v41  ;;  %v591_v52 = vshll.u32 %v309_v18, 16  ;;  %v364_v54 = vld [vmem:[#allocation2 + $0x84] sm:$0x1]  ;;  %p8137_p3 = pnand %p8136_p10, %p8130_p12 }
  0xaf   : > { %815 = vst [vmem:[#allocation2 + $0x70] sm:$0xf] %v585_v48  ;;  %v590_v51 = vrot.slane %v588_v44, 7  ;;  %v596_v53 = vshrl.u32 %v310_v37, 16  ;;  %v8700_v56 = vld [vmem:[#allocation2 + $0x64] sm:$0xf] }
  0xb0   : > { %v1126_v55 = vsel %vm8468_vm9, %v1121_v45, %v1125_v34  ;;  %v1130_v57 = vrot.slane %v1128_v46, 4  ;;  %v1133_v58 = vrot.slane %v1131_v47, 5  ;;  %818 = vst [vmem:[#allocation2 + $0x74] sm:$0x1] %v817_v49  ;;  %v599_v60 = vshll.u32 %v310_v37, 16 }
  0xb1   : > { %v6598_v61 = vcombine.low %v1116_v38, %v1126_v55  ;;  %v8702_v62 = vld [vmem:[#allocation2 + $0x68] sm:$0x1]  ;;  %v1137_v63 = vshll.u32 %v8700_v56, 16  ;;  %v1141_v1 = vshrl.u32 %v8700_v56, 16  ;;  %v6623_v59 = vcombine.low %v884_v39, %v8700_v56  ;;  %v414_v2 = vld [vmem:[#allocation2 + $0x8c] sm:$0x1] }
  0xb2   : > { %v1134_v3 = vor.u32 %v1133_v58, %v1130_v57  ;;  %v1147_v4 = vshll.u32 %v8702_v62, 16  ;;  %v593_v5 = vor.u32 %v591_v52, %v590_v51  ;;  %v594_v7 = vrot.slane %v590_v51, 4  ;;  %v311_v8 = vld [vmem:[%s8438_s14 + $0x50] sm:$0xf]  ;;  %v312_v32 = vld [vmem:[%s8438_s14 + $0x54] sm:$0xf] }
  0xb3   : > { %7318 = vmatmul.mubr.bf16.gmra.mxu0 %v6598_v61  ;;  %v1139_v11 = vrot.slane %v1137_v63, 5  ;;  %v1143_v12 = vrot.slane %v1141_v1, 4  ;;  %7369 = vmatprep.mubr.bf16.mxu1 %v6623_v59  ;;  %v598_v13 = vrot.slane %v596_v53, 7  ;;  %v819_v6 = vld [vmem:[#allocation2 + $0x78] sm:$0xf]  ;;  %v365_v15 = vsel %vm8450_vm4, 0, %v364_v54 }
  0xb4   : > { %v1135_v16 = vrot.slane %v1134_v3, 4  ;;  %v1149_v17 = vrot.slane %v1147_v4, 5  ;;  %v820_v18 = vsel %vm8487_vm11, %v593_v5, %v819_v6  ;;  %366 = vst [vmem:[#allocation2 + $0x84] sm:$0x1] %v365_v15  ;;  %v415_v20 = vsel %vm8457_vm8, 0, %v414_v2 }
  0xb5   : > { %v1144_v21 = vor.u32 %v1143_v12, %v1139_v11  ;;  %v886_v23 = vld [vmem:[#allocation2 + $0x6c] sm:$0xf]  ;;  %v601_v24 = vor.u32 %v599_v60, %v598_v13  ;;  %v603_v25 = vrot.slane %v598_v13, 4  ;;  %821 = vst [vmem:[#allocation2 + $0x78] sm:$0xf] %v820_v18  ;;  %v605_v27 = vshrl.u32 %v311_v8, 16 }
  0xb6   : > { %v823_v26 = vld [vmem:[#allocation2 + $0x80] sm:$0x1]  ;;  %416 = vst [vmem:[#allocation2 + $0x8c] sm:$0x1] %v415_v20  ;;  %v1140_v29 = vsel %vm8468_vm9, %v1135_v16, %v1139_v11  ;;  %v8717_v30 = vld [vmem:[#allocation2 + $0x70] sm:$0xf] }
  0xb7   : > { %v1152_v28 = vshrl.u32 %v886_v23, 16  ;;  %v1155_v31 = vshll.u32 %v886_v23, 16  ;;  %v608_v33 = vshll.u32 %v311_v8, 16  ;;  %v367_v14 = vld [vmem:[#allocation2 + $0x90] sm:$0x1]  ;;  %v1145_v34 = vrot.slane %v1144_v21, 4 }
  0xb8   : > { %v8720_v35 = vld [vmem:[#allocation2 + $0x74] sm:$0x1]  ;;  %v1161_v36 = vshll.u32 %v8717_v30, 16  ;;  %v1165_v37 = vshrl.u32 %v8717_v30, 16  ;;  %v6624_v38 = vcombine.low %v886_v23, %v8717_v30  ;;  %v602_v43 = vsel %vm8475_vm10, %v594_v7, %v601_v24  ;;  %v313_v53 = vld [vmem:[%s8438_s14 + $0x58] sm:$0xf] }
  0xb9   : > { %v1154_v39 = vrot.slane %v1152_v28, 4  ;;  %v1157_v40 = vrot.slane %v1155_v31, 5  ;;  %v1171_v41 = vshll.u32 %v8720_v35, 16  ;;  %v1150_v44 = vsel %vm8468_vm9, %v1145_v34, %v1149_v17  ;;  %822 = vst [vmem:[#allocation2 + $0x7c] sm:$0xf] %v602_v43 }
  0xba   : > { %v1163_v45 = vrot.slane %v1161_v36, 5  ;;  %v1167_v46 = vrot.slane %v1165_v37, 4  ;;  %7370 = vmatmul.mubr.bf16.gmra.mxu1 %v6624_v38  ;;  %v824_v47 = vsel %vm8450_vm4, %v603_v25, %v823_v26  ;;  %v6599_v48 = vcombine.low %v1140_v29, %v1150_v44  ;;  %v417_v54 = vld [vmem:[#allocation2 + $0x98] sm:$0x1]  ;;  %v314_v20 = vld [vmem:[%s8438_s14 + $0x5c] sm:$0xf] }
  0xbb   : > { %v1158_v49 = vor.u32 %v1157_v40, %v1154_v39  ;;  %v1173_v51 = vrot.slane %v1171_v41, 5  ;;  %825 = vst [vmem:[#allocation2 + $0x80] sm:$0x1] %v824_v47  ;;  %v607_v52 = vrot.slane %v605_v27, 7  ;;  %v613_v57 = vshrl.u32 %v312_v32, 16 }
  0xbc   : > { %v1168_v55 = vor.u32 %v1167_v46, %v1163_v45  ;;  %v616_v58 = vshll.u32 %v312_v32, 16  ;;  %v826_v60 = vld [vmem:[#allocation2 + $0x84] sm:$0xf]  ;;  %v368_v61 = vsel %vm8450_vm4, 0, %v367_v14  ;;  %7321 = vmatprep.mubr.bf16.mxu0 %v6599_v48  ;;  %v888_v1 = vld [vmem:[#allocation2 + $0x78] sm:$0xf] }
  0xbd   : > { %v1159_v63 = vrot.slane %v1158_v49, 4  ;;  %v610_v59 = vor.u32 %v608_v33, %v607_v52  ;;  %v611_v2 = vrot.slane %v607_v52, 4  ;;  %369 = vst [vmem:[#allocation2 + $0x90] sm:$0x1] %v368_v61  ;;  %v1176_v4 = vshrl.u32 %v888_v1, 16 }
  0xbe   : > { %v1169_v3 = vrot.slane %v1168_v55, 4  ;;  %v1179_v5 = vshll.u32 %v888_v1, 16  ;;  %v615_v7 = vrot.slane %v613_v57, 7  ;;  %v418_v12 = vsel %vm8457_vm8, 0, %v417_v54  ;;  %v830_v18 = vld [vmem:[#allocation2 + $0x8c] sm:$0x1] }
  0xbf   : > { %v1164_v8 = vsel %vm8468_vm9, %v1159_v63, %v1163_v45  ;;  %v827_v11 = vsel %vm8487_vm11, %v610_v59, %v826_v60  ;;  %v622_v13 = vshrl.u32 %v313_v53, 16  ;;  %v1178_v15 = vrot.slane %v1176_v4, 4  ;;  %419 = vst [vmem:[#allocation2 + $0x98] sm:$0x1] %v418_v12  ;;  %v370_v27 = vld [vmem:[#allocation2 + $0x9c] sm:$0x1] }
  0xc0   : > { %v1174_v6 = vsel %vm8468_vm9, %v1169_v3, %v1173_v51  ;;  %v1181_v16 = vrot.slane %v1179_v5, 5  ;;  %v618_v17 = vor.u32 %v616_v58, %v615_v7  ;;  %828 = vst [vmem:[#allocation2 + $0x84] sm:$0xf] %v827_v11  ;;  %v8744_v23 = vld [vmem:[#allocation2 + $0x7c] sm:$0xf]  ;;  %v620_v24 = vrot.slane %v615_v7, 4 }
  0xc1   : > { %v6600_v21 = vcombine.low %v1164_v8, %v1174_v6  ;;  %v624_v25 = vrot.slane %v622_v13, 7  ;;  %v625_v26 = vshll.u32 %v313_v53, 16  ;;  %v1185_v31 = vshll.u32 %v8744_v23, 16  ;;  %v315_v14 = vld [vmem:[%s8438_s14 + $0x60] sm:$0xf] }
  0xc2   : > { %v8746_v29 = vld [vmem:[#allocation2 + $0x80] sm:$0x1]  ;;  %v1182_v28 = vor.u32 %v1181_v16, %v1178_v15  ;;  %v1189_v32 = vshrl.u32 %v8744_v23, 16  ;;  %v6625_v33 = vcombine.low %v888_v1, %v8744_v23  ;;  %v420_v34 = vld [vmem:[#allocation2 + $0xa4] sm:$0x1]  ;;  %v619_v37 = vsel %vm8475_vm10, %v611_v2, %v618_v17 }
  0xc3   : > { %7322 = vmatmul.mubr.bf16.gmra.mxu0 %v6600_v21  ;;  %v1195_v36 = vshll.u32 %v8746_v29, 16  ;;  %v831_v38 = vsel %vm8450_vm4, %v620_v24, %v830_v18  ;;  %v627_v39 = vor.u32 %v625_v26, %v624_v25  ;;  %v1187_v41 = vrot.slane %v1185_v31, 5  ;;  %829 = vst [vmem:[#allocation2 + $0x88] sm:$0xf] %v619_v37  ;;  %v316_v45 = vld [vmem:[%s8438_s14 + $0x64] sm:$0xf] }
  0xc4   : > { %v1183_v40 = vrot.slane %v1182_v28, 4  ;;  %v1191_v43 = vrot.slane %v1189_v32, 4  ;;  %7373 = vmatprep.mubr.bf16.mxu1 %v6625_v33  ;;  %832 = vst [vmem:[#allocation2 + $0x8c] sm:$0x1] %v831_v38  ;;  %v833_v44 = vld [vmem:[#allocation2 + $0x90] sm:$0xf] }
  0xc5   : > { %v628_v46 = vrot.slane %v624_v25, 4  ;;  %v630_v47 = vshrl.u32 %v314_v20, 16  ;;  %v633_v48 = vshll.u32 %v314_v20, 16  ;;  %v834_v49 = vsel %vm8487_vm11, %v627_v39, %v833_v44  ;;  %v373_v6 = vld [vmem:[#allocation2 + $0xa8] sm:$0x1] }
  0xc6   : > { %v1192_v51 = vor.u32 %v1191_v43, %v1187_v41  ;;  %v1197_v52 = vrot.slane %v1195_v36, 5  ;;  %835 = vst [vmem:[#allocation2 + $0x90] sm:$0xf] %v834_v49  ;;  %v371_v53 = vsel %vm8450_vm4, 0, %v370_v27  ;;  %v421_v54 = vsel %vm8457_vm8, 0, %v420_v34 }
  0xc7   : > { %v1188_v55 = vsel %vm8468_vm9, %v1183_v40, %v1187_v41  ;;  %v890_v57 = vld [vmem:[#allocation2 + $0x84] sm:$0xf]  ;;  %v632_v58 = vrot.slane %v630_v47, 7  ;;  %v837_v60 = vld [vmem:[#allocation2 + $0x98] sm:$0x1]  ;;  %v639_v61 = vshrl.u32 %v315_v14, 16 }
  0xc8   : > { %372 = vst [vmem:[#allocation2 + $0x9c] sm:$0x1] %v371_v53  ;;  %422 = vst [vmem:[#allocation2 + $0xa4] sm:$0x1] %v421_v54  ;;  %v1193_v63 = vrot.slane %v1192_v51, 4  ;;  %v1200_v1 = vshrl.u32 %v890_v57, 16 }
  0xc9   : > { %v1203_v59 = vshll.u32 %v890_v57, 16  ;;  %v642_v2 = vshll.u32 %v315_v14, 16  ;;  %v635_v3 = vor.u32 %v633_v48, %v632_v58  ;;  %v637_v4 = vrot.slane %v632_v58, 4  ;;  %v423_v24 = vld [vmem:[#allocation2 + $0xb0] sm:$0x1] }
  0xca   : > { %v641_v5 = vrot.slane %v639_v61, 7  ;;  %v647_v7 = vshrl.u32 %v316_v45, 16  ;;  %v1198_v8 = vsel %vm8468_vm9, %v1193_v63, %v1197_v52  ;;  %v1202_v11 = vrot.slane %v1200_v1, 4  ;;  %v8768_v16 = vld [vmem:[#allocation2 + $0x88] sm:$0xf] }
  0xcb   : > { %v1205_v12 = vrot.slane %v1203_v59, 5  ;;  %v650_v13 = vshll.u32 %v316_v45, 16  ;;  %v6601_v15 = vcombine.low %v1188_v55, %v1198_v8  ;;  %v8770_v17 = vld [vmem:[#allocation2 + $0x8c] sm:$0x1]  ;;  %v636_v18 = vsel %vm8475_vm10, %v628_v46, %v635_v3  ;;  %v317_v34 = vld [vmem:[%s8438_s14 + $0x68] sm:$0xf] }
  0xcc   : > { %v838_v20 = vsel %vm8450_vm4, %v637_v4, %v837_v60  ;;  %v644_v21 = vor.u32 %v642_v2, %v641_v5  ;;  %v1209_v26 = vshll.u32 %v8768_v16, 16  ;;  %v1213_v27 = vshrl.u32 %v8768_v16, 16  ;;  %836 = vst [vmem:[#allocation2 + $0x94] sm:$0xf] %v636_v18  ;;  %v318_v36 = vld [vmem:[%s8438_s14 + $0x6c] sm:$0xf] }
  0xcd   : > { %v1206_v25 = vor.u32 %v1205_v12, %v1202_v11  ;;  %v1219_v28 = vshll.u32 %v8770_v17, 16  ;;  %839 = vst [vmem:[#allocation2 + $0x98] sm:$0x1] %v838_v20  ;;  %7325 = vmatprep.mubr.bf16.mxu0 %v6601_v15  ;;  %v6626_v31 = vcombine.low %v890_v57, %v8768_v16  ;;  %v892_v32 = vld [vmem:[#allocation2 + $0x90] sm:$0xf]  ;;  %v645_v33 = vrot.slane %v641_v5, 4 }
  0xce   : > { %v649_v14 = vrot.slane %v647_v7, 7  ;;  %v374_v37 = vsel %vm8450_vm4, 0, %v373_v6  ;;  %v1211_v39 = vrot.slane %v1209_v26, 5  ;;  %v1215_v40 = vrot.slane %v1213_v27, 4  ;;  %v376_v44 = vld [vmem:[#allocation2 + $0xb4] sm:$0x1] }
  0xcf   : > { %v1207_v38 = vrot.slane %v1206_v25, 4  ;;  %v1221_v41 = vrot.slane %v1219_v28, 5  ;;  %v840_v43 = vld [vmem:[#allocation2 + $0x9c] sm:$0xf]  ;;  %375 = vst [vmem:[#allocation2 + $0xa8] sm:$0x1] %v374_v37  ;;  %7374 = vmatmul.mubr.bf16.gmra.mxu1 %v6626_v31 }
  0xd0   : > { %v1224_v45 = vshrl.u32 %v892_v32, 16  ;;  %v1227_v46 = vshll.u32 %v892_v32, 16  ;;  %v652_v47 = vor.u32 %v650_v13, %v649_v14  ;;  %v654_v48 = vrot.slane %v649_v14, 4  ;;  %v844_v49 = vld [vmem:[#allocation2 + $0xa4] sm:$0x1] }
  0xd1   : > { %v1212_v51 = vsel %vm8468_vm9, %v1207_v38, %v1211_v39  ;;  %v1216_v52 = vor.u32 %v1215_v40, %v1211_v39  ;;  %v841_v53 = vsel %vm8487_vm11, %v644_v21, %v840_v43  ;;  %v424_v54 = vsel %vm8457_vm8, 0, %v423_v24  ;;  %v426_v2 = vld [vmem:[#allocation2 + $0xbc] sm:$0x1]  ;;  %v319_v24 = vld [vmem:[%s8438_s14 + $0x70] sm:$0xf] }
  0xd2   : > { %v1226_v55 = vrot.slane %v1224_v45, 4  ;;  %v1229_v57 = vrot.slane %v1227_v46, 5  ;;  %v653_v58 = vsel %vm8475_vm10, %v645_v33, %v652_v47  ;;  %842 = vst [vmem:[#allocation2 + $0x9c] sm:$0xf] %v841_v53  ;;  %v845_v60 = vsel %vm8450_vm4, %v654_v48, %v844_v49  ;;  %425 = vst [vmem:[#allocation2 + $0xb0] sm:$0x1] %v424_v54 }
  0xd3   : > { %v1217_v61 = vrot.slane %v1216_v52, 4  ;;  %843 = vst [vmem:[#allocation2 + $0xa0] sm:$0xf] %v653_v58  ;;  %846 = vst [vmem:[#allocation2 + $0xa4] sm:$0x1] %v845_v60  ;;  %v656_v63 = vshrl.u32 %v317_v34, 16 }
  0xd4   : > { %v659_v1 = vshll.u32 %v317_v34, 16  ;;  %v664_v59 = vshrl.u32 %v318_v36, 16  ;;  %v8794_v3 = vld [vmem:[#allocation2 + $0x94] sm:$0xf]  ;;  %v8796_v4 = vld [vmem:[#allocation2 + $0x98] sm:$0x1]  ;;  %v1230_v5 = vor.u32 %v1229_v57, %v1226_v55 }
  0xd5   : > { %v667_v7 = vshll.u32 %v318_v36, 16  ;;  %v377_v8 = vsel %vm8450_vm4, 0, %v376_v44  ;;  %v1222_v11 = vsel %vm8468_vm9, %v1217_v61, %v1221_v41  ;;  %v1233_v12 = vshll.u32 %v8794_v3, 16  ;;  %v320_v58 = vld [vmem:[%s8438_s14 + $0x74] sm:$0xf] }
  0xd6   : > { %v1237_v13 = vshrl.u32 %v8794_v3, 16  ;;  %v1243_v6 = vshll.u32 %v8796_v4, 16  ;;  %378 = vst [vmem:[#allocation2 + $0xb4] sm:$0x1] %v377_v8  ;;  %v6602_v15 = vcombine.low %v1212_v51, %v1222_v11  ;;  %v1231_v18 = vrot.slane %v1230_v5, 4 }
  0xd7   : > { %v6627_v20 = vcombine.low %v892_v32, %v8794_v3  ;;  %v658_v21 = vrot.slane %v656_v63, 7  ;;  %v1235_v25 = vrot.slane %v1233_v12, 5  ;;  %v666_v27 = vrot.slane %v664_v59, 7  ;;  %v847_v28 = vld [vmem:[#allocation2 + $0xa8] sm:$0xf] }
  0xd8   : > { %v1239_v26 = vrot.slane %v1237_v13, 4  ;;  %7326 = vmatmul.mubr.bf16.gmra.mxu0 %v6602_v15  ;;  %v1245_v31 = vrot.slane %v1243_v6, 5  ;;  %v427_v34 = vsel %vm8457_vm8, 0, %v426_v2  ;;  %v673_v32 = vshrl.u32 %v319_v24, 16  ;;  %v9122_v50 = vld [vmem:[#allocation2 + $0x20] sm:$0x1] }
  0xd9   : > { %7377 = vmatprep.mubr.bf16.mxu1 %v6627_v20  ;;  %v661_v33 = vor.u32 %v659_v1, %v658_v21  ;;  %v662_v14 = vrot.slane %v658_v21, 4  ;;  %v894_v37 = vld [vmem:[#allocation2 + $0x9c] sm:$0xf]  ;;  %v669_v38 = vor.u32 %v667_v7, %v666_v27  ;;  %v671_v39 = vrot.slane %v666_v27, 4  ;;  %v851_v40 = vld [vmem:[#allocation2 + $0xb0] sm:$0x1] }
  0xda   : > { %v1240_v36 = vor.u32 %v1239_v26, %v1235_v25  ;;  %428 = vst [vmem:[#allocation2 + $0xbc] sm:$0x1] %v427_v34  ;;  %v1236_v41 = vsel %vm8468_vm9, %v1231_v18, %v1235_v25  ;;  %v8811_v43 = vld [vmem:[#allocation2 + $0xa0] sm:$0xf]  ;;  %v8813_v44 = vld [vmem:[#allocation2 + $0xa4] sm:$0x1] }
  0xdb   : > { %v1248_v45 = vshrl.u32 %v894_v37, 16  ;;  %v1251_v46 = vshll.u32 %v894_v37, 16  ;;  %v848_v47 = vsel %vm8487_vm11, %v661_v33, %v847_v28  ;;  %v1257_v49 = vshll.u32 %v8811_v43, 16  ;;  %v8016_v42 = vld [vmem:[#allocation2 + $0x38] sm:$0x1] }
  0xdc   : > { %v1241_v48 = vrot.slane %v1240_v36, 4  ;;  %v1261_v51 = vshrl.u32 %v8811_v43, 16  ;;  %v1267_v52 = vshll.u32 %v8813_v44, 16  ;;  %849 = vst [vmem:[#allocation2 + $0xa8] sm:$0xf] %v848_v47  ;;  %v6628_v55 = vcombine.low %v894_v37, %v8811_v43 }
  0xdd   : > { %v1250_v53 = vrot.slane %v1248_v45, 4  ;;  %v1253_v54 = vrot.slane %v1251_v46, 5  ;;  %v670_v57 = vsel %vm8475_vm10, %v662_v14, %v669_v38  ;;  %v1259_v61 = vrot.slane %v1257_v49, 5  ;;  %v854_v21 = vld [vmem:[#allocation2 + $0xb4] sm:$0xf] }
  0xde   : > { %v1246_v60 = vsel %vm8468_vm9, %v1241_v48, %v1245_v31  ;;  %v1263_v63 = vrot.slane %v1261_v51, 4  ;;  %v1269_v1 = vrot.slane %v1267_v52, 5  ;;  %850 = vst [vmem:[#allocation2 + $0xac] sm:$0xf] %v670_v57  ;;  %7378 = vmatmul.mubr.bf16.gmra.mxu1 %v6628_v55  ;;  %v852_v5 = vsel %vm8450_vm4, %v671_v39, %v851_v40  ;;  %v1914_v39 = vld [vmem:[#allocation2] sm:$0xe] }
  0xdf   : > { %v6603_v59 = vcombine.low %v1236_v41, %v1246_v60  ;;  %v1254_v2 = vor.u32 %v1253_v54, %v1250_v53  ;;  %v675_v7 = vrot.slane %v673_v32, 7  ;;  %853 = vst [vmem:[#allocation2 + $0xb0] sm:$0x1] %v852_v5  ;;  %v676_v11 = vshll.u32 %v319_v24, 16  ;;  %v7995_v40 = vld [vmem:[#allocation2 + $0x4] sm:$0xf] }
  0xe0   : > { %v1264_v8 = vor.u32 %v1263_v63, %v1259_v61  ;;  %v681_v12 = vshrl.u32 %v320_v58, 16  ;;  %v684_v13 = vshll.u32 %v320_v58, 16  ;;  %v1967_v32 = vrot.slane %v7995_v40, 5  ;;  %v1915_v53 = vld [vmem:[#allocation2 + $0xc] sm:$0xe] }
  0xe1   : > { %7329 = vmatprep.mubr.bf16.mxu0 %v6603_v59  ;;  %v1255_v6 = vrot.slane %v1254_v2, 4  ;;  %v678_v18 = vor.u32 %v676_v11, %v675_v7  ;;  %v679_v27 = vrot.slane %v675_v7, 4  ;;  %v858_v14 = vld [vmem:[#allocation2 + $0xbc] sm:$0x1]  ;;  %v7996_v54 = vld [vmem:[#allocation2 + $0x10] sm:$0xf] }
  0xe2   : > { %v1265_v15 = vrot.slane %v1264_v8, 4  ;;  %v683_v20 = vrot.slane %v681_v12, 7  ;;  %v1974_v55 = vrot.slane %v7996_v54, 5  ;;  %v8846_v63 = vld [vmem:[#allocation2 + $0x18] sm:$0xe]  ;;  %v6639_v7 = vrot.slane %v1914_v39, 9 }
  0xe3   : > { %v1260_v25 = vsel %vm8468_vm9, %v1255_v6, %v1259_v61  ;;  %v896_v26 = vld [vmem:[#allocation2 + $0xa8] sm:$0xf]  ;;  %v855_v38 = vsel %vm8487_vm11, %v678_v18, %v854_v21  ;;  %v7998_v12 = vld [vmem:[#allocation2 + $0x14] sm:$0x1]  ;;  %v7999_v18 = vld [vmem:[#allocation2 + $0x1c] sm:$0xf] }
  0xe4   : > { %v1270_v28 = vsel %vm8468_vm9, %v1265_v15, %v1269_v1  ;;  %v1272_v31 = vshrl.u32 %v896_v26, 16  ;;  %v1275_v24 = vshll.u32 %v896_v26, 16  ;;  %v686_v33 = vor.u32 %v684_v13, %v683_v20  ;;  %856 = vst [vmem:[#allocation2 + $0xb4] sm:$0xf] %v855_v38  ;;  %v8848_v1 = vld [vmem:[#allocation2 + $0x24] sm:$0xe] }
  0xe5   : > { %v6604_v34 = vcombine.low %v1260_v25, %v1270_v28  ;;  %v8832_v36 = vld [vmem:[#allocation2 + $0xac] sm:$0xf]  ;;  %v688_v37 = vrot.slane %v683_v20, 4  ;;  %v7997_v8 = vld [vmem:[#allocation2 + $0x8] sm:$0x1]  ;;  %v1977_v13 = vrot.slane %v7998_v12, 5 }
  0xe6   : > { %v1274_v41 = vrot.slane %v1272_v31, 4  ;;  %v1277_v45 = vrot.slane %v1275_v24, 5  ;;  %v1281_v46 = vshll.u32 %v8832_v36, 16  ;;  %v1285_v47 = vshrl.u32 %v8832_v36, 16  ;;  %v8838_v48 = vld [vmem:[#allocation2 + $0xb0] sm:$0x1] }
  0xe7   : > { %7330 = vmatmul.mubr.bf16.gmra.mxu0 %v6604_v34  ;;  %v6629_v49 = vcombine.low %v896_v26, %v8832_v36  ;;  %v687_v51 = vsel %vm8475_vm10, %v679_v27, %v686_v33  ;;  %v859_v52 = vsel %vm8450_vm4, %v688_v37, %v858_v14  ;;  %v1291_v61 = vshll.u32 %v8838_v48, 16  ;;  %v8000_v24 = vld [vmem:[#allocation2 + $0x20] sm:$0x1]  ;;  %v8001_v34 = vld [vmem:[#allocation2 + $0x28] sm:$0xf] }
  0xe8   : > { %v1278_v57 = vor.u32 %v1277_v45, %v1274_v41  ;;  %v1283_v58 = vrot.slane %v1281_v46, 5  ;;  %v1287_v60 = vrot.slane %v1285_v47, 4  ;;  %857 = vst [vmem:[#allocation2 + $0xb8] sm:$0xf] %v687_v51  ;;  %860 = vst [vmem:[#allocation2 + $0xbc] sm:$0x1] %v859_v52  ;;  %v8864_v41 = vsel %vm8852_vm14, %v6639_v7, %v1967_v32 }
  0xe9   : > { %7381 = vmatprep.mubr.bf16.mxu1 %v6629_v49  ;;  %v1293_v5 = vrot.slane %v1291_v61, 5  ;;  %v1970_v11 = vrot.slane %v7997_v8, 5  ;;  %v1969_v15 = vrot.slane %v1967_v32, 4  ;;  %v1981_v20 = vrot.slane %v7999_v18, 5  ;;  %v7899_v45 = vld [vmem:[#allocation2 + $0xc] sm:$0xff]  }
  0xea   : > { %v1279_v59 = vrot.slane %v1278_v57, 4  ;;  %v1288_v2 = vor.u32 %v1287_v60, %v1283_v58  ;;  %v6640_v26 = vrot.slane %v1915_v53, 9  ;;  %v1976_v27 = vrot.slane %v1974_v55, 4  ;;  %v1918_v46 = vld [vmem:[#allocation2 + $0x30] sm:$0xe] }
  0xeb   : > { %v898_v28 = vld [vmem:[#allocation2 + $0xb4] sm:$0xf]  ;;  %v6641_v31 = vrot.slane %v8846_v63, 9  ;;  %v1984_v33 = vrot.slane %v8000_v24, 5  ;;  %v6642_v14 = vrot.slane %v8848_v1, 9  ;;  %v1988_v37 = vrot.slane %v8001_v34, 5 }
  0xec   : > { %v1284_v21 = vsel %vm8468_vm9, %v1279_v59, %v1283_v58  ;;  %v1289_v25 = vrot.slane %v1288_v2, 4  ;;  %v1296_v39 = vshrl.u32 %v898_v28, 16  ;;  %v1299_v40 = vshll.u32 %v898_v28, 16  ;;  %v8002_v54 = vld [vmem:[#allocation2 + $0x34] sm:$0xf] }
  0xed   : > { %v8872_v52 = vsel %vm8852_vm14, %v1969_v15, %v1970_v11  ;;  %v1983_v53 = vrot.slane %v1981_v20, 4  ;;  %v1995_v57 = vrot.slane %v8002_v54, 5  ;;  %v8880_v59 = vsel %vm8852_vm14, %v6640_v26, %v1974_v55  ;;  %v8003_v2 = vld [vmem:[#allocation2 + $0x2c] sm:$0x1]  ;;  %v1919_v15 = vld [vmem:[#allocation2 + $0x3c] sm:$0xe] }
  0xee   : > { %v1294_v38 = vsel %vm8468_vm9, %v1289_v25, %v1293_v5  ;;  %v1298_v58 = vrot.slane %v1296_v39, 4  ;;  %v1301_v60 = vrot.slane %v1299_v40, 5  ;;  %v1991_v5 = vrot.slane %v8003_v2, 5  ;;  %v8004_v24 = vld [vmem:[#allocation2 + $0x38] sm:$0x1] }
  0xef   : > { %v6605_v47 = vcombine.low %v1284_v21, %v1294_v38  ;;  %v8866_v49 = vld [vmem:[#allocation2 + $0xb8] sm:$0xf]  ;;  %v8868_v51 = vld [vmem:[#allocation2 + $0xbc] sm:$0x1]  ;;  %v1990_v12 = vrot.slane %v1988_v37, 4  ;;  %v6655_v18 = vcombine.low %v8864_v41, %v8872_v52  ;;  %v6643_v21 = vrot.slane %v1918_v46, 9 }
  0xf0   : > { %v1305_v61 = vshll.u32 %v8866_v49, 16  ;;  %v1309_v32 = vshrl.u32 %v8866_v49, 16  ;;  %v1315_v63 = vshll.u32 %v8868_v51, 16  ;;  %v6630_v1 = vcombine.low %v898_v28, %v8866_v49  ;;  %v8005_v55 = vld [vmem:[#allocation2 + $0x40] sm:$0xf] }
  0xf1   : > { %7333 = vmatprep.mubr.bf16.mxu0 %v6605_v47  ;;  %v1302_v7 = vor.u32 %v1301_v60, %v1298_v58  ;;  %v1997_v25 = vrot.slane %v1995_v57, 4  ;;  %v1998_v34 = vrot.slane %v8004_v24, 5  ;;  %v2002_v26 = vrot.slane %v8005_v55, 5  ;;  %v1920_v40 = vld [vmem:[#allocation2 + $0x48] sm:$0xe] }
  0xf2   : > { %v1307_v8 = vrot.slane %v1305_v61, 5  ;;  %v1311_v11 = vrot.slane %v1309_v32, 4  ;;  %7382 = vmatmul.mubr.bf16.gmra.mxu1 %v6630_v1  ;;  %v1317_v39 = vrot.slane %v1315_v63, 5  ;;  %v8886_v47 = vsel %vm8852_vm14, %v1976_v27, %v1977_v13  ;;  %v8006_v46 = vld [vmem:[#allocation2 + $0x4c] sm:$0xf]  ;;  %v7900_v61 = vld [vmem:[#allocation2 + $0x18] sm:$0xff]  }
  0xf3   : > { %v1303_v28 = vrot.slane %v1302_v7, 4  ;;  %7449 = vmatprep.mubr.bf16.mxu1 %v7899_v45  ;;  %v8890_v54 = vsel %vm8852_vm14, %v6641_v31, %v1981_v20  ;;  %v8894_v41 = vsel %vm8852_vm14, %v6642_v14, %v1988_v37  ;;  %v2009_v52 = vrot.slane %v8006_v46, 5  ;;  %v8896_v58 = vld [vmem:[#allocation2 + $0x54] sm:$0xe]  ;;  %v7903_v27 = vld [vmem:[#allocation2 + $0x24] sm:$0xff]  }
  0xf4   : > { %v1312_v38 = vor.u32 %v1311_v11, %v1307_v8  ;;  %v8902_v13 = vsel %vm8852_vm14, %v1983_v53, %v1984_v33  ;;  %v8906_v20 = vsel %vm8852_vm14, %v1990_v12, %v1991_v5  ;;  %v8910_v31 = vsel %vm8852_vm14, %v6643_v21, %v1995_v57  ;;  %v8007_v32 = vld [vmem:[#allocation2 + $0x44] sm:$0x1]  ;;  %v8916_v1 = vld [vmem:[#allocation2 + $0x60] sm:$0xe]  ;;  %v7906_v53 = vld [vmem:[#allocation6 + $0x170] sm:$0xff]  }
  0xf5   : > { %v1308_v45 = vsel %vm8468_vm9, %v1303_v28, %v1307_v8  ;;  %v8914_v14 = vsel %vm8852_vm14, %v1997_v25, %v1998_v34  ;;  %v6644_v37 = vrot.slane %v1919_v15, 9  ;;  %v2005_v63 = vrot.slane %v8007_v32, 5  ;;  %v8008_v12 = vld [vmem:[#allocation2 + $0x50] sm:$0x1]  ;;  %v1924_v15 = vld [vmem:[#allocation2 + $0x78] sm:$0xe] }
  0xf6   : > { %v1313_v60 = vrot.slane %v1312_v38, 4  ;;  %v2004_v2 = vrot.slane %v2002_v26, 4  ;;  %v6645_v5 = vrot.slane %v1920_v40, 9  ;;  %v2016_v7 = vrot.slane %v8672_v10, 5  ;;  %v8930_v38 = vld [vmem:[#allocation6 + $0x168] sm:$0xff]  }
  0xf7   : > { %v6656_v57 = vcombine.low %v8880_v59, %v8886_v47  ;;  %v2011_v11 = vrot.slane %v2009_v52, 4  ;;  %v2012_v21 = vrot.slane %v8008_v12, 5  ;;  %v6657_v25 = vcombine.low %v8890_v54, %v8902_v13  ;;  %v8939_v47 = vld [vmem:[#allocation2 + $0x6c] sm:$0xe]  ;;  %v8009_v54 = vld [vmem:[#allocation6 + $0x178] sm:$0xff]  }
  0xf8   : > { %v1318_v33 = vsel %vm8468_vm9, %v1313_v60, %v1317_v39  ;;  %v6658_v24 = vcombine.low %v8894_v41, %v8906_v20  ;;  %v6659_v34 = vcombine.low %v8910_v31, %v8914_v14  ;;  %v6646_v28 = vrot.slane %v8896_v58, 9  ;;  %v2785_v14 = vld [vmem:[#allocation2 + $0xc] sm:$0xf] }
  0xf9   : > { %v6606_v8 = vcombine.low %v1308_v45, %v1318_v33  ;;  %v8934_v59 = vrot.slane %v2016_v7, 4  ;;  %v2019_v39 = vrot.slane %v8680_v19, 5  ;;  %v6647_v55 = vrot.slane %v8916_v1, 9  ;;  %v7912_v1 = vld [vmem:[#allocation2 + $0x60] sm:$0xff]  }
  0xfa   : > { %7450 = vmatmul.mubr.bf16.vlgmr.msra.gmra.mxu1 %v7900_v61  ;;  %v2023_v40 = vrot.slane %v8700_v56, 5  ;;  %v8943_v46 = vsel %vm8852_vm14, %v6644_v37, %v2002_v26  ;;  %v8947_v58 = vsel %vm8852_vm14, %v6645_v5, %v2009_v52  ;;  %v6649_v45 = vrot.slane %v1924_v15, 9  ;;  %v1925_v61 = vld [vmem:[#allocation2 + $0x84] sm:$0xe]  ;;  %v7904_v52 = vld [vmem:[#allocation2 + $0x30] sm:$0xff]  }
  0xfb   : > { %7334 = vmatmul.mubr.bf16.gmra.mxu0 %v6606_v8  ;;  %7530 = vmatpush3.bf16.msra.mxu1 %v8009_v54  ;;  %v2037_v60 = vrot.slane %v8744_v23, 5  ;;  %v8952_v13 = vsel %vm8852_vm14, %v2004_v2, %v2005_v63  ;;  %v2030_v37 = vrot.slane %v8717_v30, 5  ;;  %v6648_v32 = vrot.slane %v8939_v47, 9  ;;  %v7905_v63 = vld [vmem:[#allocation6 + $0x130] sm:$0xff]   ;;  %v7907_v2 = vld [vmem:[#allocation2 + $0x3c] sm:$0xff]   ;;  %v7917_v47 = vld [vmem:[#allocation6 + $0x118] sm:$0xff]  }
  0xfc   : > { %7401 = vmatprep.mubr.bf16.mxu0 %v6655_v18  ;;  %7453 = vmatprep.mubr.bf16.mxu1 %v7903_v27  ;;  %v8956_v18 = vsel %vm8852_vm14, %v2011_v11, %v2012_v21  ;;  %v2040_v33 = vrot.slane %v8746_v29, 5  ;;  %v6650_v8 = vrot.slane %v1925_v61, 9  ;;  %v2044_v11 = vrot.slane %v8768_v16, 5  ;;  %v1926_v54 = vld [vmem:[#allocation2 + $0x90] sm:$0xe]  ;;  %v7914_v16 = vld [vmem:[#allocation6 + $0x160] sm:$0xff]  }
  0xfd   : > { %7531 = vmatprep.subr.bf16.mxu1 %v7906_v53  ;;  %v8963_v23 = vsel %vm8852_vm14, %v6649_v45, %v2037_v60  ;;  %v2039_v27 = vrot.slane %v2037_v60, 4  ;;  %v2047_v12 = vrot.slane %v8770_v17, 5  ;;  %v8973_v15 = vrot.slane %v2023_v40, 4  ;;  %v9094_v56 = vld [vmem:[#allocation2 + $0x14] sm:$0x1] }
  0xfe   : > { %v2051_v45 = vrot.slane %v8794_v3, 5  ;;  %v8983_v17 = vrot.slane %v2030_v37, 4  ;;  %v8989_v60 = vsel %vm8852_vm14, %v6650_v8, %v2044_v11  ;;  %v2046_v61 = vrot.slane %v2044_v11, 4  ;;  %v1927_v3 = vld [vmem:[#allocation2 + $0x9c] sm:$0xe] }
  0xff   : > { %7532 = vmatpush3.bf16.msra.mxu1 %v7906_v53  ;;  %v8977_v29 = vsel %vm8852_vm14, %v2039_v27, %v2040_v33  ;;  %v6651_v27 = vrot.slane %v1926_v54, 9  ;;  %v2054_v21 = vrot.slane %v8796_v4, 5  ;;  %v2058_v5 = vrot.slane %v8811_v43, 5  ;;  %v8010_v53 = vld [vmem:[#allocation6 + $0x138] sm:$0xff]   ;;  %v7909_v4 = vld [vmem:[#allocation6 + $0x128] sm:$0xff]  }
 0x100   : > { %7533 = vmatprep.subr.bf16.mxu1 %v8930_v38  ;;  %v2053_v33 = vrot.slane %v2051_v45, 4  ;;  %v8997_v26 = vsel %vm8852_vm14, %v6646_v28, %v2016_v7  ;;  %v9001_v8 = vsel %vm8852_vm14, %v2046_v61, %v2047_v12  ;;  %v6652_v11 = vrot.slane %v1927_v3, 9  ;;  %v7908_v12 = vld [vmem:[#allocation2 + $0x48] sm:$0xff]  }
 0x101   : > { %v2061_v54 = vrot.slane %v8813_v44, 5  ;;  %v9008_v10 = vsel %vm8852_vm14, %v6651_v27, %v2051_v45  ;;  %v9019_v44 = vsel %vm8852_vm14, %v8934_v59, %v2019_v39  ;;  %v2068_v59 = vrot.slane %v8838_v48, 5  ;;  %v7913_v45 = vld [vmem:[#allocation6 + $0x120] sm:$0xff]   ;;  %v7918_v48 = vld [vmem:[#allocation6 + $0x158] sm:$0xff]  }
 0x102   : > { %7454 = vmatmul.mubr.bf16.gmra.mxu1 %v7904_v52  ;;  %v9012_v7 = vsel %vm8852_vm14, %v2053_v33, %v2054_v21  ;;  %v9025_v28 = vsel %vm8852_vm14, %v6652_v11, %v2058_v5  ;;  %v1928_v52 = vld [vmem:[#allocation2 + $0xa8] sm:$0xe]  ;;  %v2065_v21 = vrot.slane %v8832_v36, 5  ;;  %v6661_v39 = vcombine.low %v8947_v58, %v8956_v18  ;;  %v2791_v58 = vld [vmem:[#allocation2 + $0x24] sm:$0xf] }
 0x103   : > { %7402 = vmatmul.mubr.bf16.vlgmr.msra.gmra.mxu0 %v6656_v57  ;;  %v2060_v57 = vrot.slane %v2058_v5, 4  ;;  %7457 = vmatprep.mubr.bf16.mxu1 %v7907_v2  ;;  %v6653_v19 = vrot.slane %v1928_v52, 9  ;;  %v7911_v5 = vld [vmem:[#allocation2 + $0x54] sm:$0xff]   ;;  %v2072_v61 = vrot.slane %v8866_v49, 5  ;;  %v2075_v27 = vrot.slane %v8868_v51, 5  ;;  %v9048_v51 = vld [vmem:[#allocation6 + $0x150] sm:$0xff]  }
 0x104   : > { %7482 = vmatpush3.bf16.msra.mxu0 %v8010_v53  ;;  %7405 = vmatprep.mubr.bf16.mxu0 %v6657_v25  ;;  %v1929_v53 = vld [vmem:[#allocation2 + $0xb4] sm:$0xe]  ;;  %v6662_v36 = vcombine.low %v8997_v26, %v9019_v44  ;;  %v2067_v3 = vrot.slane %v2065_v21, 4  ;;  %v9080_v41 = vsel %vm8852_vm14, %v6647_v55, %v2023_v40  ;;  %v9088_v20 = vsel %vm8852_vm14, %v6648_v32, %v2030_v37  ;;  %v7925_v18 = vld [vmem:[#allocation6 + $0x108] sm:$0xff]  }
 0x105   : > { %7483 = vmatprep.subr.bf16.mxu0 %v7905_v63  ;;  %7534 = vmatpush3.bf16.msra.mxu1 %v8930_v38  ;;  %v9030_v2 = vsel %vm8852_vm14, %v2060_v57, %v2061_v54  ;;  %v9044_v33 = vsel %vm8852_vm14, %v6653_v19, %v2065_v21  ;;  %v6654_v11 = vrot.slane %v1929_v53, 9  ;;  %v321_v54 = vld [vmem:[%s8438_s14 + $0x78] sm:$0xf]  ;;  %v322_v57 = vld [vmem:[%s8438_s14 + $0x7c] sm:$0xf]  ;;  %v2074_v52 = vrot.slane %v2072_v61, 4 }
 0x106   : > { %7535 = vmatprep.subr.bf16.mxu1 %v7914_v16  ;;  %v379_v38 = vld [vmem:[#allocation2 + $0xc0] sm:$0x1]  ;;  %v690_v25 = vshrl.u32 %v321_v54, 16  ;;  %v693_v49 = vshll.u32 %v321_v54, 16  ;;  %v698_v43 = vshrl.u32 %v322_v57, 16  ;;  %v701_v53 = vshll.u32 %v322_v57, 16 }
 0x107   : > { %v9056_v19 = vsel %vm8852_vm14, %v6654_v11, %v2072_v61  ;;  %v380_v21 = vsel %vm8450_vm4, 0, %v379_v38  ;;  %v10849_v55 = vrot.slane %v8720_v35, 5  ;;  %v9117_v11 = vld [vmem:[#allocation2 + $0x1c] sm:$0xf]  ;;  %v7921_v54 = vld [vmem:[#allocation6 + $0x110] sm:$0xff]   ;;  %v7926_v57 = vld [vmem:[#allocation6 + $0x148] sm:$0xff]  }
 0x108   : > { %7484 = vmatpush3.bf16.msra.mxu0 %v7905_v63  ;;  %v9052_v63 = vsel %vm8852_vm14, %v2067_v3, %v2068_v59  ;;  %v9067_v59 = vsel %vm8852_vm14, %v2074_v52, %v2075_v27  ;;  %381 = vst [vmem:[#allocation2 + $0xc0] sm:$0x1] %v380_v21  ;;  %v692_v3 = vrot.slane %v690_v25, 7  ;;  %v9069_v61 = vrot.slane %v698_v43, 7  ;;  %v2788_v27 = vld [vmem:[#allocation2 + $0x18] sm:$0xf] }
 0x109   : > { %7485 = vmatprep.subr.bf16.mxu0 %v7909_v4  ;;  %7536 = vmatpush3.bf16.msra.mxu1 %v7914_v16  ;;  %v6669_v16 = vcombine.low %v9044_v33, %v9052_v63  ;;  %v6670_v31 = vcombine.low %v9056_v19, %v9067_v59  ;;  %v9108_v40 = vsel %vm8852_vm14, %v8983_v17, %v10849_v55  ;;  %v2834_v43 = vshrl.u32 %v2785_v14, 16  ;;  %v9344_v59 = vld [vmem:[#allocation2 + $0x74] sm:$0x1] }
 0x10a   : > { %7458 = vmatmul.mubr.bf16.gmra.mxu1 %v7908_v12  ;;  %v696_v37 = vrot.slane %v692_v3, 4  ;;  %v703_v32 = vor.u32 %v701_v53, %v9069_v61  ;;  %7537 = vmatprep.subr.bf16.mxu1 %v7918_v48  ;;  %v3539_v12 = vld [vmem:[#allocation2 + $0xc] sm:$0xe]  ;;  %v695_v35 = vor.u32 %v693_v49, %v692_v3  ;;  %v2853_v17 = vshll.u32 %v9094_v56, 16 }
 0x10b   : > { %7406 = vmatmul.mubr.bf16.gmra.mxu0 %v6658_v24  ;;  %v9092_v24 = vld [vmem:[#allocation2 + $0x10] sm:$0xf]  ;;  %7461 = vmatprep.mubr.bf16.mxu1 %v7911_v5  ;;  %v2836_v52 = vrot.slane %v2834_v43, 4  ;;  %v6727_v3 = vrot.slane %v3539_v12, 9  ;;  %v10850_v43 = vcombine.low %v8943_v46, %v8952_v13  ;;  %v6664_v46 = vcombine.low %v9088_v20, %v9108_v40  ;;  %v3543_v40 = vld [vmem:[#allocation2 + $0x3c] sm:$0xe] }
 0x10c   : > { %7409 = vmatprep.mubr.bf16.mxu0 %v6659_v34  ;;  %7486 = vmatpush3.bf16.msra.mxu0 %v7909_v4  ;;  %v10848_v34 = vrot.slane %v8702_v62, 5  ;;  %v7915_v4 = vld [vmem:[#allocation2 + $0x6c] sm:$0xff]   ;;  %v2837_v62 = vshll.u32 %v2785_v14, 16  ;;  %v2843_v25 = vshll.u32 %v9092_v24, 16  ;;  %v704_v5 = vsel %vm8475_vm10, %v696_v37, %v703_v32 }
 0x10d   : > { %7487 = vmatprep.subr.bf16.mxu0 %v7913_v45  ;;  %7538 = vmatpush3.bf16.msra.mxu1 %v7918_v48  ;;  %v3605_v38 = vrot.slane %v9092_v24, 5  ;;  %864 = vst [vmem:[#allocation2 + $0xc4] sm:$0xf] %v704_v5  ;;  %v2855_v53 = vrot.slane %v2853_v17, 5  ;;  %v2858_v37 = vshrl.u32 %v2788_v27, 16  ;;  %v2861_v32 = vshll.u32 %v2788_v27, 16 }
 0x10e   : > { %v9101_v30 = vsel %vm8852_vm14, %v8973_v15, %v10848_v34  ;;  %v2847_v15 = vshrl.u32 %v9092_v24, 16  ;;  %7539 = vmatprep.subr.bf16.mxu1 %v9048_v51  ;;  %v2839_v21 = vrot.slane %v2837_v62, 5  ;;  %v9120_v48 = vrot.slane %v2843_v25, 5  ;;  %v9156_v27 = vld [vmem:[#allocation2 + $0x28] sm:$0xf] }
 0x10f   : > { %v3607_v14 = vrot.slane %v3605_v38, 4  ;;  %v3608_v24 = vrot.slane %v9094_v56, 5  ;;  %v861_v34 = vld [vmem:[#allocation2 + $0xc0] sm:$0xf]  ;;  %v6663_v62 = vcombine.low %v9080_v41, %v9101_v30  ;;  %v2871_v56 = vshrl.u32 %v9117_v11, 16 }
 0x110   : > { %7488 = vmatpush3.bf16.msra.mxu0 %v7913_v45  ;;  %v2849_v49 = vrot.slane %v2847_v15, 4  ;;  %v2840_v45 = vor.u32 %v2839_v21, %v2836_v52  ;;  %v862_v25 = vsel %vm8487_vm11, %v695_v35, %v861_v34  ;;  %v2867_v15 = vshll.u32 %v9117_v11, 16  ;;  %v3540_v41 = vld [vmem:[#allocation2 + $0x18] sm:$0xe]  ;;  %v7919_v21 = vld [vmem:[#allocation2 + $0x84] sm:$0xff]  }
 0x111   : > { %7489 = vmatprep.subr.bf16.mxu0 %v7917_v47  ;;  %863 = vst [vmem:[#allocation2 + $0xc0] sm:$0xf] %v862_v25  ;;  %v2860_v12 = vrot.slane %v2858_v37, 4  ;;  %7540 = vmatpush3.bf16.msra.mxu1 %v9048_v51  ;;  %v2863_v0 = vrot.slane %v2861_v32, 5  ;;  %v2873_v35 = vrot.slane %v2871_v56, 4  ;;  %v2877_v5 = vshll.u32 %v9122_v50, 16 }
 0x112   : > { %v2850_v55 = vor.u32 %v2849_v49, %v9120_v48  ;;  %7462 = vmatmul.mubr.bf16.gmra.mxu1 %v7912_v1  ;;  %v2841_v13 = vrot.slane %v2840_v45, 4  ;;  %v9141_v30 = vrot.slane %v2867_v15, 5  ;;  %7541 = vmatprep.subr.bf16.mxu1 %v7926_v57  ;;  %v9153_v51 = vsel %vm8852_vm14, %v3607_v14, %v3608_v24  ;;  %v7916_v52 = vld [vmem:[#allocation2 + $0x78] sm:$0xff]   ;;  %v9162_v14 = vld [vmem:[#allocation6 + $0x1f8] sm:$0xff]   ;;  %v9164_v24 = vld [vmem:[#allocation2 + $0x2c] sm:$0x1] }
 0x113   : > { %7410 = vmatmul.mubr.bf16.gmra.mxu0 %v10850_v43  ;;  %7465 = vmatprep.mubr.bf16.mxu1 %v7915_v4  ;;  %v3612_v17 = vrot.slane %v9117_v11, 5  ;;  %v2864_v34 = vor.u32 %v2863_v0, %v2860_v12  ;;  %v6728_v45 = vrot.slane %v3540_v41, 9  ;;  %v3615_v37 = vrot.slane %v9122_v50, 5  ;;  %v3541_v15 = vld [vmem:[#allocation2 + $0x24] sm:$0xe] }
 0x114   : > { %7413 = vmatprep.mubr.bf16.mxu0 %v6661_v39  ;;  %v2851_v1 = vrot.slane %v2850_v55, 4  ;;  %7490 = vmatpush3.bf16.msra.mxu0 %v7917_v47  ;;  %v7930_v39 = vld [vmem:[#allocation6 + $0x140] sm:$0xff]   ;;  %v2846_v4 = vsel %vm8468_vm9, %v2841_v13, %v9120_v48  ;;  %v9149_v47 = vsel %vm8852_vm14, %v6727_v3, %v3605_v38  ;;  %v2874_v48 = vor.u32 %v2873_v35, %v9141_v30  ;;  %v2794_v12 = vld [vmem:[#allocation2 + $0x30] sm:$0xf]  ;;  %v9172_v41 = vld [vmem:[#allocation2 + $0x34] sm:$0xf] }
 0x115   : > { %7491 = vmatprep.subr.bf16.mxu0 %v7921_v54  ;;  %v7929_v55 = vld [vmem:[#allocation6 + $0x100] sm:$0xff]   ;;  %v2879_v38 = vrot.slane %v2877_v5, 5  ;;  %v3614_v3 = vrot.slane %v3612_v17, 4  ;;  %v2882_v11 = vshrl.u32 %v2791_v58, 16  ;;  %7542 = vmatpush3.bf16.msra.mxu1 %v7926_v57  ;;  %v2865_v32 = vrot.slane %v2864_v34, 4 }
 0x116   : > { %v2856_v49 = vsel %vm8468_vm9, %v2851_v1, %v2855_v53  ;;  %v2875_v43 = vrot.slane %v2874_v48, 4  ;;  %v2885_v25 = vshll.u32 %v2791_v58, 16  ;;  %v2891_v53 = vshll.u32 %v9156_v27, 16  ;;  %7543 = vmatprep.subr.bf16.mxu1 %v7930_v39  ;;  %v9193_v58 = vld [vmem:[#allocation2 + $0x38] sm:$0x1] }
 0x117   : > { %v9167_v56 = vcombine.low %v2846_v4, %v2856_v49  ;;  %v6743_v50 = vcombine.low %v9149_v47, %v9153_v51  ;;  %v2884_v13 = vrot.slane %v2882_v11, 4  ;;  %v2895_v1 = vshrl.u32 %v9156_v27, 16 }
 0x118   : > { %7492 = vmatpush3.bf16.msra.mxu0 %v7921_v54  ;;  %v9179_v54 = vsel %vm8852_vm14, %v6728_v45, %v3612_v17  ;;  %v9183_v57 = vsel %vm8852_vm14, %v3614_v3, %v3615_v37  ;;  %v2887_v0 = vrot.slane %v2885_v25, 5  ;;  %v2901_v35 = vshll.u32 %v9164_v24, 16  ;;  %v7920_v45 = vld [vmem:[#allocation2 + $0x90] sm:$0xff]  }
 0x119   : > { %7493 = vmatprep.subr.bf16.mxu0 %v7925_v18  ;;  %v2870_v5 = vsel %vm8468_vm9, %v2865_v32, %v9141_v30  ;;  %v2880_v26 = vsel %vm8468_vm9, %v2875_v43, %v2879_v38  ;;  %v9191_v44 = vrot.slane %v2891_v53, 5  ;;  %7544 = vmatpush3.bf16.msra.mxu1 %v7930_v39  ;;  %v6729_v17 = vrot.slane %v3541_v15, 9  ;;  %v3542_v43 = vld [vmem:[#allocation2 + $0x30] sm:$0xe] }
 0x11a   : > { %7466 = vmatmul.mubr.bf16.gmra.mxu1 %v7916_v52  ;;  %v2888_v4 = vor.u32 %v2887_v0, %v2884_v13  ;;  %v3619_v52 = vrot.slane %v9156_v27, 5  ;;  %7625 = vmatprep.subr.bf16.mxu1 %v9162_v14  ;;  %v2906_v49 = vshrl.u32 %v2794_v12, 16  ;;  %v2909_v34 = vshll.u32 %v2794_v12, 16 }
 0x11b   : > { %7414 = vmatmul.mubr.bf16.gmra.mxu0 %v6662_v36  ;;  %7469 = vmatprep.mubr.bf16.mxu1 %v7919_v21  ;;  %v2897_v36 = vrot.slane %v2895_v1, 4  ;;  %v9197_v21 = vld [vmem:[#allocation6 + $0x1b8] sm:$0xff]   ;;  %v2915_v48 = vshll.u32 %v9172_v41, 16  ;;  %v2903_v38 = vrot.slane %v2901_v35, 5  ;;  %v2919_v27 = vshrl.u32 %v9172_v41, 16 }
 0x11c   : > { %7417 = vmatprep.mubr.bf16.mxu0 %v6663_v62  ;;  %7494 = vmatpush3.bf16.msra.mxu0 %v7925_v18  ;;  %v3622_v62 = vrot.slane %v9164_v24, 5  ;;  %v7923_v18 = vld [vmem:[#allocation2 + $0x9c] sm:$0xff]   ;;  %v2889_v39 = vrot.slane %v2888_v4, 4  ;;  %v3621_v3 = vrot.slane %v3619_v52, 4  ;;  %v2908_v24 = vrot.slane %v2906_v49, 4 }
 0x11d   : > { %7495 = vmatprep.subr.bf16.mxu0 %v7929_v55  ;;  %v2898_v30 = vor.u32 %v2897_v36, %v9191_v44  ;;  %v2911_v11 = vrot.slane %v2909_v34, 5  ;;  %v9203_v32 = vrot.slane %v2915_v48, 5  ;;  %v9205_v25 = vcombine.low %v2870_v5, %v2880_v26  ;;  %v2797_v1 = vld [vmem:[#allocation2 + $0x3c] sm:$0xf]  ;;  %v9222_v5 = vld [vmem:[#allocation2 + $0x40] sm:$0xf] }
 0x11e   : > { %v6744_v53 = vcombine.low %v9179_v54, %v9183_v57  ;;  %v2921_v15 = vrot.slane %v2919_v27, 4  ;;  %v2925_v13 = vshll.u32 %v9193_v58, 16  ;;  %v2894_v12 = vsel %vm8468_vm9, %v2889_v39, %v9191_v44  ;;  %v7924_v39 = vld [vmem:[#allocation2 + $0xa8] sm:$0xff]  }
 0x11f   : > { %v2899_v37 = vrot.slane %v2898_v30, 4  ;;  %v9216_v0 = vsel %vm8852_vm14, %v6729_v17, %v3619_v52  ;;  %v2912_v35 = vor.u32 %v2911_v11, %v2908_v24  ;;  %v6730_v36 = vrot.slane %v3542_v43, 9  ;;  %v2799_v17 = vld [vmem:[#allocation2 + $0x44] sm:$0x1]  ;;  %v7927_v24 = vld [vmem:[#allocation2 + $0xb4] sm:$0xff]  }
 0x120   : > { %7496 = vmatpush3.bf16.msra.mxu0 %v7929_v55  ;;  %v9220_v55 = vsel %vm8852_vm14, %v3621_v3, %v3622_v62  ;;  %v2922_v44 = vor.u32 %v2921_v15, %v9203_v32  ;;  %v3626_v4 = vrot.slane %v9172_v41, 5  ;;  %v10851_v52 = vcombine.low %v8963_v23, %v8977_v29 }
 0x121   : > { %7577 = vmatprep.subr.bf16.mxu0 %v9197_v21  ;;  %v2904_v26 = vsel %vm8468_vm9, %v2899_v37, %v2903_v38  ;;  %v2913_v62 = vrot.slane %v2912_v35, 4  ;;  %v2927_v30 = vrot.slane %v2925_v13, 5  ;;  %v2930_v49 = vshrl.u32 %v2797_v1, 16 }
 0x122   : > { %7470 = vmatmul.mubr.bf16.gmra.mxu1 %v7920_v45  ;;  %v2933_v20 = vshll.u32 %v2797_v1, 16  ;;  %v3628_v34 = vrot.slane %v3626_v4, 4  ;;  %v3629_v48 = vrot.slane %v9193_v58, 5  ;;  %v2939_v45 = vshll.u32 %v9222_v5, 16  ;;  %v2800_v58 = vld [vmem:[#allocation2 + $0x48] sm:$0xf] }
 0x123   : > { %7418 = vmatmul.mubr.bf16.gmra.mxu0 %v6664_v46  ;;  %7473 = vmatprep.mubr.bf16.mxu1 %v7923_v18  ;;  %v2923_v46 = vrot.slane %v2922_v44, 4  ;;  %v6745_v41 = vcombine.low %v9216_v0, %v9220_v55  ;;  %v2932_v38 = vrot.slane %v2930_v49, 4  ;;  %v2943_v23 = vshrl.u32 %v9222_v5, 16  ;;  %v2801_v1 = vld [vmem:[#allocation2 + $0x4c] sm:$0xf] }
 0x124   : > { %7421 = vmatprep.mubr.bf16.mxu0 %v10851_v52  ;;  %v2935_v3 = vrot.slane %v2933_v20, 5  ;;  %v9239_v29 = vcombine.low %v2894_v12, %v2904_v26  ;;  %v9243_v18 = vsel %vm8852_vm14, %v6730_v36, %v3626_v4  ;;  %v9245_v27 = vrot.slane %v2939_v45, 5  ;;  %v2802_v52 = vld [vmem:[#allocation2 + $0x50] sm:$0x1] }
 0x125   : > { %v2949_v37 = vshll.u32 %v2799_v17, 16  ;;  %v2918_v11 = vsel %vm8468_vm9, %v2913_v62, %v9203_v32  ;;  %v2928_v43 = vsel %vm8468_vm9, %v2923_v46, %v2927_v30  ;;  %v2945_v13 = vrot.slane %v2943_v23, 4 }
 0x126   : > { %v2936_v15 = vor.u32 %v2935_v3, %v2932_v38  ;;  %v9254_v12 = vsel %vm8852_vm14, %v3628_v34, %v3629_v48  ;;  %v6731_v35 = vrot.slane %v3543_v40, 9  ;;  %v3633_v26 = vrot.slane %v9222_v5, 5  ;;  %v3544_v38 = vld [vmem:[#allocation2 + $0x48] sm:$0xe]  ;;  %v7928_v3 = vld [vmem:[#allocation2 + $0xc0] sm:$0xff]  }
 0x127   : > { %v3636_v44 = vrot.slane %v2799_v17, 5  ;;  %v2946_v4 = vor.u32 %v2945_v13, %v9245_v27  ;;  %v2954_v49 = vshrl.u32 %v2800_v58, 16  ;;  %v2957_v32 = vshll.u32 %v2800_v58, 16 }
 0x128   : > { %v2937_v36 = vrot.slane %v2936_v15, 4  ;;  %v10852_v62 = vcombine.low %v8989_v60, %v9001_v8  ;;  %v2951_v30 = vrot.slane %v2949_v37, 5  ;;  %v3635_v20 = vrot.slane %v3633_v26, 4  ;;  %v2803_v37 = vld [vmem:[#allocation2 + $0x54] sm:$0xf] }
 0x129   : > { %v2963_v46 = vshll.u32 %v2801_v1, 16  ;;  %v2967_v34 = vshrl.u32 %v2801_v1, 16  ;;  %v10853_v40 = vcombine.low %v9008_v10, %v9012_v7  ;;  %v9264_v5 = vcombine.low %v2918_v11, %v2928_v43  ;;  %v2804_v11 = vld [vmem:[#allocation2 + $0x58] sm:$0xf] }
 0x12a   : > { %7474 = vmatmul.mubr.bf16.gmra.mxu1 %v7924_v39  ;;  %v2947_v17 = vrot.slane %v2946_v4, 4  ;;  %v2956_v48 = vrot.slane %v2954_v49, 4  ;;  %v2959_v45 = vrot.slane %v2957_v32, 5  ;;  %v6746_v60 = vcombine.low %v9243_v18, %v9254_v12  ;;  %v7935_v18 = vld [vmem:[#allocation6 + $0x1a8] sm:$0xff]  }
 0x12b   : > { %7422 = vmatmul.mubr.bf16.gmra.mxu0 %v10852_v62  ;;  %7477 = vmatprep.mubr.bf16.mxu1 %v7927_v24  ;;  %v2965_v8 = vrot.slane %v2963_v46, 5  ;;  %v2969_v39 = vrot.slane %v2967_v34, 4  ;;  %v2973_v23 = vshll.u32 %v2802_v52, 16  ;;  %v2942_v10 = vsel %vm8468_vm9, %v2937_v36, %v9245_v27  ;;  %v2805_v62 = vld [vmem:[#allocation2 + $0x5c] sm:$0x1] }
 0x12c   : > { %7425 = vmatprep.mubr.bf16.mxu0 %v10853_v40  ;;  %v9273_v7 = vsel %vm8852_vm14, %v6731_v35, %v3633_v26  ;;  %v9277_v58 = vsel %vm8852_vm14, %v3635_v20, %v3636_v44  ;;  %v2960_v24 = vor.u32 %v2959_v45, %v2956_v48  ;;  %v2952_v43 = vsel %vm8468_vm9, %v2947_v17, %v2951_v30  ;;  %v3545_v45 = vld [vmem:[#allocation2 + $0x54] sm:$0xe] }
 0x12d   : > { %v2970_v15 = vor.u32 %v2969_v39, %v2965_v8  ;;  %v6732_v13 = vrot.slane %v3544_v38, 9  ;;  %v3640_v4 = vrot.slane %v2801_v1, 5  ;;  %v2975_v32 = vrot.slane %v2973_v23, 5  ;;  %v2806_v39 = vld [vmem:[#allocation2 + $0x60] sm:$0xf] }
 0x12e   : > { %v2961_v49 = vrot.slane %v2960_v24, 4  ;;  %v2978_v27 = vshrl.u32 %v2803_v37, 16  ;;  %v2981_v36 = vshll.u32 %v2803_v37, 16  ;;  %v3643_v26 = vrot.slane %v2802_v52, 5  ;;  %v2807_v37 = vld [vmem:[#allocation2 + $0x64] sm:$0xf] }
 0x12f   : > { %v2971_v46 = vrot.slane %v2970_v15, 4  ;;  %v3642_v35 = vrot.slane %v3640_v4, 4  ;;  %v2987_v34 = vshll.u32 %v2804_v11, 16  ;;  %v6747_v44 = vcombine.low %v9273_v7, %v9277_v58 }
 0x130   : > { %v2980_v20 = vrot.slane %v2978_v27, 4  ;;  %v2983_v40 = vrot.slane %v2981_v36, 5  ;;  %v2991_v48 = vshrl.u32 %v2804_v11, 16  ;;  %v10854_v30 = vcombine.low %v9025_v28, %v9030_v2 }
 0x131   : > { %v9286_v1 = vcombine.low %v2942_v10, %v2952_v43  ;;  %v9290_v17 = vsel %vm8852_vm14, %v6732_v13, %v3640_v4  ;;  %v9292_v52 = vrot.slane %v2987_v34, 5  ;;  %v2997_v38 = vshll.u32 %v2805_v62, 16  ;;  %v3546_v43 = vld [vmem:[#allocation2 + $0x60] sm:$0xe] }
 0x132   : > { %7478 = vmatmul.mubr.bf16.gmra.mxu1 %v7928_v3  ;;  %v2966_v28 = vsel %vm8468_vm9, %v2961_v49, %v2965_v8  ;;  %v2976_v2 = vsel %vm8468_vm9, %v2971_v46, %v2975_v32  ;;  %v2984_v3 = vor.u32 %v2983_v40, %v2980_v20  ;;  %v2993_v23 = vrot.slane %v2991_v48, 4  ;;  %v2809_v32 = vld [vmem:[#allocation2 + $0x6c] sm:$0xf] }
 0x133   : > { %7426 = vmatmul.mubr.bf16.gmra.mxu0 %v10854_v30  ;;  %7545 = vmatprep.mubr.bf16.mxu1 %v6743_v50  ;;  %v9306_v10 = vsel %vm8852_vm14, %v3642_v35, %v3643_v26  ;;  %v6733_v24 = vrot.slane %v3545_v45, 9  ;;  %v3647_v33 = vrot.slane %v2804_v11, 5  ;;  %v3650_v63 = vrot.slane %v2805_v62, 5  ;;  %v7934_v11 = vld [vmem:[#allocation6 + $0x1f0] sm:$0xff]  }
 0x134   : > { %7429 = vmatprep.mubr.bf16.mxu0 %v6669_v16  ;;  %v9308_v16 = vld [vmem:[#allocation2 + $0x68] sm:$0x1]  ;;  %v2985_v47 = vrot.slane %v2984_v3, 4  ;;  %v2994_v51 = vor.u32 %v2993_v23, %v9292_v52  ;;  %v3002_v50 = vshrl.u32 %v2806_v39, 16  ;;  %v3005_v8 = vshll.u32 %v2806_v39, 16 }
 0x135   : > { %v2999_v15 = vrot.slane %v2997_v38, 5  ;;  %v3649_v13 = vrot.slane %v3647_v33, 4  ;;  %v3011_v4 = vshll.u32 %v2807_v37, 16  ;;  %v3015_v49 = vshrl.u32 %v2807_v37, 16  ;;  %v9329_v38 = vld [vmem:[#allocation2 + $0x70] sm:$0xf] }
 0x136   : > { %v9311_v27 = vcombine.low %v2966_v28, %v2976_v2  ;;  %v2995_v36 = vrot.slane %v2994_v51, 4  ;;  %v3004_v46 = vrot.slane %v3002_v50, 4  ;;  %v3007_v35 = vrot.slane %v3005_v8, 5  ;;  %v2812_v51 = vld [vmem:[#allocation2 + $0x78] sm:$0xf] }
 0x137   : > { %v6748_v62 = vcombine.low %v9290_v17, %v9306_v10  ;;  %v9315_v26 = vrot.slane %v3011_v4, 5  ;;  %v3017_v34 = vrot.slane %v3015_v49, 4  ;;  %v3021_v20 = vshll.u32 %v9308_v16, 16  ;;  %v7933_v4 = vld [vmem:[#allocation6 + $0x1b0] sm:$0xff]  }
 0x138   : > { %v2990_v40 = vsel %vm8468_vm9, %v2985_v47, %v9292_v52  ;;  %v9323_v48 = vsel %vm8852_vm14, %v6733_v24, %v3647_v33  ;;  %v9327_v45 = vsel %vm8852_vm14, %v3649_v13, %v3650_v63  ;;  %v3008_v30 = vor.u32 %v3007_v35, %v3004_v46  ;;  %v9337_v52 = vld [vmem:[#allocation6 + $0x1e8] sm:$0xff]  }
 0x139   : > { %v3000_v39 = vsel %vm8468_vm9, %v2995_v36, %v2999_v15  ;;  %v3018_v28 = vor.u32 %v3017_v34, %v9315_v26  ;;  %v6734_v2 = vrot.slane %v3546_v43, 9  ;;  %v3654_v3 = vrot.slane %v2807_v37, 5  ;;  %v9382_v34 = vld [vmem:[#allocation2 + $0x80] sm:$0x1] }
 0x13a   : > { %7546 = vmatmul.mubr.bf16.vlgmr.msra.gmra.mxu1 %v6744_v53  ;;  %v3009_v23 = vrot.slane %v3008_v30, 4  ;;  %v3023_v19 = vrot.slane %v3021_v20, 5  ;;  %v3029_v54 = vshll.u32 %v2809_v32, 16  ;;  %v3657_v24 = vrot.slane %v9308_v16, 5  ;;  %v9363_v16 = vld [vmem:[#allocation2 + $0x7c] sm:$0xf] }
 0x13b   : > { %7430 = vmatmul.mubr.bf16.gmra.mxu0 %v6670_v31  ;;  %7626 = vmatpush3.bf16.msra.mxu1 %v9162_v14  ;;  %v3026_v31 = vshrl.u32 %v2809_v32, 16  ;;  %v3019_v57 = vrot.slane %v3018_v28, 4  ;;  %v3656_v53 = vrot.slane %v3654_v3, 4  ;;  %v3035_v37 = vshll.u32 %v9329_v38, 16  ;;  %v9377_v35 = vpop.f32.mrf.mxu1  ;;  %v7938_v30 = vld [vmem:[#allocation6 + $0x1e0] sm:$0xff]  }
 0x13c   : > { %7497 = vmatprep.mubr.bf16.mxu0 %v9167_v56  ;;  %7549 = vmatprep.mubr.bf16.mxu1 %v6745_v41  ;;  %v3547_v56 = vld [vmem:[#allocation2 + $0x6c] sm:$0xe]  ;;  %v6749_v14 = vcombine.low %v9323_v48, %v9327_v45  ;;  %v3031_v63 = vrot.slane %v3029_v54, 5  ;;  %v3039_v47 = vshrl.u32 %v9329_v38, 16  ;;  %v9354_v50 = vcombine.low %v2990_v40, %v3000_v39  ;;  %v9474_v45 = vld [vmem:[#allocation2 + $0x98] sm:$0x1] }
 0x13d   : > { %7627 = vmatprep.subr.bf16.mxu1 %v7934_v11  ;;  %v3028_v33 = vrot.slane %v3026_v31, 4  ;;  %v9358_v0 = vsel %vm8852_vm14, %v6734_v2, %v3654_v3  ;;  %v9360_v55 = vrot.slane %v3035_v37, 5  ;;  %v3045_v41 = vshll.u32 %v9344_v59, 16  ;;  %v2815_v31 = vld [vmem:[#allocation2 + $0x84] sm:$0xf]  ;;  %v9402_v54 = vpop.f32.mrf.mxu1 }
 0x13e   : > { %v3014_v8 = vsel %vm8468_vm9, %v3009_v23, %v9315_v26  ;;  %v3024_v43 = vsel %vm8468_vm9, %v3019_v57, %v3023_v19  ;;  %v3041_v13 = vrot.slane %v3039_v47, 4  ;;  %v9373_v49 = vsel %vm8852_vm14, %v3656_v53, %v3657_v24  ;;  %v9417_v53 = vld [vmem:[#allocation2 + $0x88] sm:$0xf]  ;;  %v7937_v24 = vld [vmem:[#allocation6 + $0x1a0] sm:$0xff]  }
 0x13f   : > { %7628 = vmatpush3.bf16.msra.mxu1 %v7934_v11  ;;  %v3032_v15 = vor.u32 %v3031_v63, %v3028_v33  ;;  %v6735_v32 = vrot.slane %v3547_v56, 9  ;;  %v3661_v36 = vrot.slane %v9329_v38, 5  ;;  %v3664_v46 = vrot.slane %v9344_v59, 5  ;;  %v3548_v59 = vld [vmem:[#allocation2 + $0x78] sm:$0xe] }
 0x140   : > { %7629 = vmatprep.subr.bf16.mxu1 %v9337_v52  ;;  %v3042_v26 = vor.u32 %v3041_v13, %v9360_v55  ;;  %v3050_v20 = vshrl.u32 %v2812_v51, 16  ;;  %v3053_v40 = vshll.u32 %v2812_v51, 16  ;;  %v3047_v38 = vrot.slane %v3045_v41, 5  ;;  %v9423_v63 = vld [vmem:[#allocation2 + $0x8c] sm:$0x1] }
 0x141   : > { %v9379_v11 = vrot.slane %v3032_v15, 4  ;;  %v3663_v39 = vrot.slane %v3661_v36, 4  ;;  %v3059_v28 = vshll.u32 %v9363_v16, 16  ;;  %v3063_v2 = vshrl.u32 %v9363_v16, 16 }
 0x142   : > { %7550 = vmatmul.mubr.bf16.gmra.mxu1 %v6746_v60  ;;  %v9392_v3 = vcombine.low %v3014_v8, %v3024_v43  ;;  %v3043_v23 = vrot.slane %v3042_v26, 4  ;;  %v3052_v19 = vrot.slane %v3050_v20, 4  ;;  %v6750_v12 = vcombine.low %v9358_v0, %v9373_v49  ;;  %v9425_v8 = vld [vmem:[#allocation2 + $0x84] sm:$0xe] }
 0x143   : > { %7498 = vmatmul.mubr.bf16.vlgmr.msra.gmra.mxu0 %v9205_v25  ;;  %v3055_v25 = vrot.slane %v3053_v40, 5  ;;  %7553 = vmatprep.mubr.bf16.mxu1 %v6747_v44  ;;  %v9399_v60 = vrot.slane %v3059_v28, 5  ;;  %v3038_v7 = vsel %vm8468_vm9, %v9379_v11, %v9360_v55  ;;  %v9411_v58 = vsel %vm8852_vm14, %v6735_v32, %v3661_v36  ;;  %v9429_v36 = vpop.f32.mrf.mxu0  ;;  %v9455_v28 = vld [vmem:[#allocation2 + $0x94] sm:$0xf] }
 0x144   : > { %7578 = vmatpush3.bf16.msra.mxu0 %v9197_v21  ;;  %7501 = vmatprep.mubr.bf16.mxu0 %v9239_v29  ;;  %v3065_v21 = vrot.slane %v3063_v2, 4  ;;  %v3069_v29 = vshll.u32 %v9382_v34, 16  ;;  %v9415_v44 = vsel %vm8852_vm14, %v3663_v39, %v3664_v46  ;;  %v6736_v56 = vrot.slane %v3548_v59, 9  ;;  %v9431_v46 = vpop.f32.mrf.mxu1  ;;  %v2818_v39 = vld [vmem:[#allocation2 + $0x90] sm:$0xf]  ;;  %v7942_v2 = vld [vmem:[#allocation6 + $0x1d0] sm:$0xff]  }
 0x145   : > { %7579 = vmatprep.subr.bf16.mxu0 %v7933_v4  ;;  %7630 = vmatpush3.bf16.msra.mxu1 %v9337_v52  ;;  %v3056_v57 = vor.u32 %v3055_v25, %v3052_v19  ;;  %v3048_v52 = vsel %vm8468_vm9, %v3043_v23, %v3047_v38  ;;  %v3668_v33 = vrot.slane %v9363_v16, 5  ;;  %v3074_v55 = vshrl.u32 %v2815_v31, 16  ;;  %v7939_v23 = vld [vmem:[#allocation6 + $0x198] sm:$0xff]  }
 0x146   : > { %7631 = vmatprep.subr.bf16.mxu1 %v7938_v30  ;;  %v3066_v37 = vor.u32 %v3065_v21, %v9399_v60  ;;  %v3071_v51 = vrot.slane %v3069_v29, 5  ;;  %v3077_v41 = vshll.u32 %v2815_v31, 16  ;;  %v3671_v13 = vrot.slane %v9382_v34, 5 }
 0x147   : > { %v3057_v47 = vrot.slane %v3056_v57, 4  ;;  %v3670_v15 = vrot.slane %v3668_v33, 4  ;;  %v3083_v32 = vshll.u32 %v9417_v53, 16  ;;  %v6751_v16 = vcombine.low %v9411_v58, %v9415_v44 }
 0x148   : > { %7580 = vmatpush3.bf16.msra.mxu0 %v7933_v4  ;;  %v3067_v43 = vrot.slane %v3066_v37, 4  ;;  %v7940_v4 = vld [vmem:[#allocation6 + $0x1d8] sm:$0xff]   ;;  %v3076_v11 = vrot.slane %v3074_v55, 4  ;;  %v3079_v26 = vrot.slane %v3077_v41, 5  ;;  %v3087_v20 = vshrl.u32 %v9417_v53, 16 }
 0x149   : > { %7581 = vmatprep.subr.bf16.mxu0 %v7935_v18  ;;  %7632 = vmatpush3.bf16.msra.mxu1 %v7938_v30  ;;  %v9440_v34 = vcombine.low %v3038_v7, %v3048_v52  ;;  %v9444_v40 = vsel %vm8852_vm14, %v6736_v56, %v3668_v33  ;;  %v9446_v30 = vrot.slane %v3083_v32, 5  ;;  %v3093_v38 = vshll.u32 %v9423_v63, 16  ;;  %v3550_v52 = vld [vmem:[#allocation2 + $0x90] sm:$0xe] }
 0x14a   : > { %7554 = vmatmul.mubr.bf16.gmra.mxu1 %v6748_v62  ;;  %v3072_v17 = vsel %vm8468_vm9, %v3067_v43, %v3071_v51  ;;  %v3080_v10 = vor.u32 %v3079_v26, %v3076_v11  ;;  %v3089_v62 = vrot.slane %v3087_v20, 4  ;;  %v6737_v19 = vrot.slane %v9425_v8, 9  ;;  %7633 = vmatprep.subr.bf16.mxu1 %v7940_v4  ;;  %v2821_v51 = vld [vmem:[#allocation2 + $0x9c] sm:$0xf] }
 0x14b   : > { %7502 = vmatmul.mubr.bf16.gmra.mxu0 %v9264_v5  ;;  %v3062_v5 = vsel %vm8468_vm9, %v3057_v47, %v9399_v60  ;;  %7557 = vmatprep.mubr.bf16.mxu1 %v6749_v14  ;;  %v3675_v25 = vrot.slane %v9417_v53, 5  ;;  %v3678_v59 = vrot.slane %v9423_v63, 5  ;;  %v9469_v60 = vpop.f32.mrf.mxu1  ;;  %v3098_v14 = vshrl.u32 %v2818_v39, 16  ;;  %v7941_v47 = vld [vmem:[#allocation6 + $0x190] sm:$0xff]  }
 0x14c   : > { %7505 = vmatprep.mubr.bf16.mxu0 %v9286_v1  ;;  %7582 = vmatpush3.bf16.msra.mxu0 %v7935_v18  ;;  %v9462_v1 = vsel %vm8852_vm14, %v3670_v15, %v3671_v13  ;;  %v9467_v18 = vpop.f32.mrf.mxu0  ;;  %v9471_v21 = vrot.slane %v3080_v10, 4  ;;  %v3090_v48 = vor.u32 %v3089_v62, %v9446_v30  ;;  %v3101_v29 = vshll.u32 %v2818_v39, 16  ;;  %v9485_v15 = vld [vmem:[#allocation2 + $0xa0] sm:$0xf] }
 0x14d   : > { %7583 = vmatprep.subr.bf16.mxu0 %v7937_v24  ;;  %7634 = vmatpush3.bf16.msra.mxu1 %v7940_v4  ;;  %v3095_v31 = vrot.slane %v3093_v38, 5  ;;  %v3677_v7 = vrot.slane %v3675_v25, 4  ;;  %v3107_v57 = vshll.u32 %v9455_v28, 16  ;;  %v3111_v53 = vshrl.u32 %v9455_v28, 16  ;;  %v9489_v32 = vpop.f32.mrf.mxu1  ;;  %v9503_v38 = vld [vmem:[#allocation2 + $0xa4] sm:$0x1] }
 0x14e   : > { %v9478_v37 = vcombine.low %v3062_v5, %v3072_v17  ;;  %v3091_v56 = vrot.slane %v3090_v48, 4  ;;  %v3100_v33 = vrot.slane %v3098_v14, 4  ;;  %v3103_v63 = vrot.slane %v3101_v29, 5  ;;  %7635 = vmatprep.subr.bf16.mxu1 %v7942_v2  ;;  %v9487_v13 = vpop.f32.mrf.mxu0  ;;  %v7946_v48 = vld [vmem:[#allocation6 + $0x1c0] sm:$0xff]  }
 0x14f   : > { %v6752_v55 = vcombine.low %v9444_v40, %v9462_v1  ;;  %v9482_v41 = vrot.slane %v3107_v57, 5  ;;  %v3113_v8 = vrot.slane %v3111_v53, 4  ;;  %v3117_v43 = vshll.u32 %v9474_v45, 16  ;;  %v9527_v58 = vpop.f32.mrf.mxu1 }
 0x150   : > { %7584 = vmatpush3.bf16.msra.mxu0 %v7937_v24  ;;  %v7944_v24 = vld [vmem:[#allocation6 + $0x1c8] sm:$0xff]   ;;  %v3086_v4 = vsel %vm8468_vm9, %v9471_v21, %v9446_v30  ;;  %v9497_v11 = vsel %vm8852_vm14, %v6737_v19, %v3675_v25  ;;  %v9501_v26 = vsel %vm8852_vm14, %v3677_v7, %v3678_v59  ;;  %v3104_v20 = vor.u32 %v3103_v63, %v3100_v33  ;;  %v3551_v21 = vld [vmem:[#allocation2 + $0x9c] sm:$0xe]  ;;  %v9541_v7 = vld [vmem:[#allocation2 + $0xac] sm:$0xf] }
 0x151   : > { %7585 = vmatprep.subr.bf16.mxu0 %v7939_v23  ;;  %v3096_v30 = vsel %vm8468_vm9, %v3091_v56, %v3095_v31  ;;  %v3114_v39 = vor.u32 %v3113_v8, %v9482_v41  ;;  %v6738_v5 = vrot.slane %v3550_v52, 9  ;;  %v3682_v17 = vrot.slane %v9455_v28, 5  ;;  %7636 = vmatpush3.bf16.msra.mxu1 %v7942_v2  ;;  %v9525_v28 = vpop.f32.mrf.mxu0  ;;  %v2824_v31 = vld [vmem:[#allocation2 + $0xa8] sm:$0xf] }
 0x152   : > { %7558 = vmatmul.mubr.bf16.gmra.mxu1 %v6750_v12  ;;  %v9517_v10 = vrot.slane %v3104_v20, 4  ;;  %v3122_v0 = vshrl.u32 %v2821_v51, 16  ;;  %v3125_v49 = vshll.u32 %v2821_v51, 16  ;;  %v7943_v12 = vld [vmem:[#allocation6 + $0x188] sm:$0xff]   ;;  %v3685_v25 = vrot.slane %v9474_v45, 5  ;;  %7637 = vmatprep.subr.bf16.mxu1 %v7944_v24 }
 0x153   : > { %7506 = vmatmul.mubr.bf16.gmra.mxu0 %v9311_v27  ;;  %7561 = vmatprep.mubr.bf16.mxu1 %v6751_v16  ;;  %v9519_v27 = vrot.slane %v3117_v43, 5  ;;  %v9521_v62 = vrot.slane %v3114_v39, 4  ;;  %v3684_v19 = vrot.slane %v3682_v17, 4  ;;  %v6753_v44 = vcombine.low %v9497_v11, %v9501_v26  ;;  %v9557_v43 = vld [vmem:[#allocation2 + $0xb0] sm:$0x1]  ;;  %v9561_v11 = vpop.f32.mrf.mxu1 }
 0x154   : > { %7509 = vmatprep.mubr.bf16.mxu0 %v9354_v50  ;;  %7586 = vmatpush3.bf16.msra.mxu0 %v7939_v23  ;;  %v3131_v50 = vshll.u32 %v9485_v15, 16  ;;  %v3124_v16 = vrot.slane %v3122_v0, 4  ;;  %v3127_v59 = vrot.slane %v3125_v49, 5  ;;  %v3135_v23 = vshrl.u32 %v9485_v15, 16 }
 0x155   : > { %7587 = vmatprep.subr.bf16.mxu0 %v7941_v47  ;;  %v9532_v14 = vcombine.low %v3086_v4, %v3096_v30  ;;  %v9536_v2 = vsel %vm8852_vm14, %v6738_v5, %v3682_v17  ;;  %v3141_v29 = vshll.u32 %v9503_v38, 16  ;;  %v3110_v57 = vsel %vm8468_vm9, %v9517_v10, %v9482_v41  ;;  %7638 = vmatpush3.bf16.msra.mxu1 %v7944_v24  ;;  %v7945_v41 = vld [vmem:[#allocation6 + $0x180] sm:$0xff]   ;;  %v9559_v4 = vpop.f32.mrf.mxu0  ;;  %v2827_v10 = vld [vmem:[#allocation2 + $0xb4] sm:$0xf] }
 0x156   : > { %v9538_v45 = vrot.slane %v3131_v50, 5  ;;  %v3120_v53 = vsel %vm8468_vm9, %v9521_v62, %v9519_v27  ;;  %v3128_v52 = vor.u32 %v3127_v59, %v3124_v16  ;;  %v3137_v56 = vrot.slane %v3135_v23, 4  ;;  %7639 = vmatprep.subr.bf16.mxu1 %v7946_v48  ;;  %v9577_v62 = vld [vmem:[#allocation2 + $0xb8] sm:$0xf]  ;;  %v9592_v23 = vld [vmem:[#allocation2 + $0xbc] sm:$0x1] }
 0x157   : > { %v9553_v33 = vsel %vm8852_vm14, %v3684_v19, %v3685_v25  ;;  %v6739_v63 = vrot.slane %v3551_v21, 9  ;;  %v3689_v51 = vrot.slane %v9485_v15, 5  ;;  %v3692_v8 = vrot.slane %v9503_v38, 5  ;;  %v9566_v15 = vld [vmem:[#allocation8 + $0x38] sm:$0xff]   ;;  %v9586_v25 = vpop.f32.mrf.mxu1 }
 0x158   : > { %7588 = vmatpush3.bf16.msra.mxu0 %v7941_v47  ;;  %v3138_v26 = vor.u32 %v3137_v56, %v9538_v45  ;;  %v9564_v20 = vrot.slane %v3141_v29, 5  ;;  %v3146_v30 = vshrl.u32 %v2824_v31, 16  ;;  %v3149_v39 = vshll.u32 %v2824_v31, 16  ;;  %v3552_v47 = vld [vmem:[#allocation2 + $0xa8] sm:$0xe]  ;;  %v9594_v21 = vld [vmem:[#allocation6 + $0x238] sm:$0xff]  }
 0x159   : > { %7589 = vmatprep.subr.bf16.mxu0 %v7943_v12  ;;  %v3129_v24 = vrot.slane %v3128_v52, 4  ;;  %v3691_v38 = vrot.slane %v3689_v51, 4  ;;  %v3155_v5 = vshll.u32 %v9541_v7, 16  ;;  %v3159_v17 = vshrl.u32 %v9541_v7, 16  ;;  %7640 = vmatpush3.bf16.msra.mxu1 %v7946_v48  ;;  %v3553_v56 = vld [vmem:[#allocation2 + $0xb4] sm:$0xe] }
 0x15a   : > { %7562 = vmatmul.mubr.bf16.gmra.mxu1 %v6752_v55  ;;  %v3139_v27 = vrot.slane %v3138_v26, 4  ;;  %v3690_v0 = vsel %vm8852_vm14, %v6739_v63, %v3689_v51  ;;  %v3148_v49 = vrot.slane %v3146_v30, 4  ;;  %v3165_v19 = vshll.u32 %v9557_v43, 16  ;;  %7721 = vmatprep.subr.bf16.mxu1 %v9566_v15 }
 0x15b   : > { %7510 = vmatmul.mubr.bf16.gmra.mxu0 %v9392_v3  ;;  %7565 = vmatprep.mubr.bf16.mxu1 %v6753_v44  ;;  %v3151_v3 = vrot.slane %v3149_v39, 5  ;;  %v3693_v40 = vsel %vm8852_vm14, %v3691_v38, %v3692_v8  ;;  %v9581_v1 = vrot.slane %v3155_v5, 5  ;;  %v3161_v55 = vrot.slane %v3159_v17, 4  ;;  %v429_v8 = vld [vmem:[#allocation2 + $0xc8] sm:$0x1] }
 0x15c   : > { %7513 = vmatprep.mubr.bf16.mxu0 %v9440_v34  ;;  %7590 = vmatpush3.bf16.msra.mxu0 %v7943_v12  ;;  %v9584_v34 = vpop.f32.mrf.mxu0  ;;  %v9588_v50 = vcombine.low %v3110_v57, %v3120_v53  ;;  %v6754_v44 = vcombine.low %v9536_v2, %v9553_v33  ;;  %v6740_v59 = vrot.slane %v3552_v47, 9  ;;  %v3134_v12 = vsel %vm8468_vm9, %v3129_v24, %v9538_v45  ;;  %v2830_v47 = vld [vmem:[#allocation2 + $0xc0] sm:$0xf] }
 0x15d   : > { %v3152_v16 = vor.u32 %v3151_v3, %v3148_v49  ;;  %7591 = vmatprep.subr.bf16.mxu0 %v7945_v41  ;;  %v3144_v48 = vsel %vm8468_vm9, %v3139_v27, %v9564_v20  ;;  %v6755_v29 = vcombine.low %v3690_v0, %v3693_v40  ;;  %v3696_v2 = vrot.slane %v9541_v7, 5  ;;  %v9613_v7 = vpop.f32.mrf.mxu1  ;;  %v9622_v49 = vld [vmem:[#allocation2 + $0xc4] sm:$0xf] }
 0x15e   : > { %v3162_v31 = vor.u32 %v3161_v55, %v9581_v1  ;;  %v3699_v57 = vrot.slane %v9557_v43, 5  ;;  %v3170_v53 = vshrl.u32 %v2827_v10, 16  ;;  %v3173_v52 = vshll.u32 %v2827_v10, 16  ;;  %v9611_v26 = vpop.f32.mrf.mxu0 }
 0x15f   : > { %v9606_v33 = vrot.slane %v3165_v19, 5  ;;  %v3697_v63 = vsel %vm8852_vm14, %v6740_v59, %v3696_v2  ;;  %v3698_v45 = vrot.slane %v3696_v2, 4  ;;  %v3179_v51 = vshll.u32 %v9577_v62, 16 }
 0x160   : > { %7592 = vmatpush3.bf16.msra.mxu0 %v7945_v41  ;;  %v3153_v20 = vrot.slane %v3152_v16, 4  ;;  %v3172_v30 = vrot.slane %v3170_v53, 4  ;;  %v3175_v43 = vrot.slane %v3173_v52, 5  ;;  %v3183_v39 = vshrl.u32 %v9577_v62, 16  ;;  %v9626_v19 = vpop.f32.mrf.mxu0 }
 0x161   : > { %7673 = vmatprep.subr.bf16.mxu0 %v9594_v21  ;;  %v6715_v24 = vcombine.low %v3134_v12, %v3144_v48  ;;  %v3700_v38 = vsel %vm8852_vm14, %v3698_v45, %v3699_v57  ;;  %v3181_v41 = vrot.slane %v3179_v51, 5  ;;  %v3189_v5 = vshll.u32 %v9592_v23, 16  ;;  %v3554_v48 = vld [vmem:[#allocation2 + $0xc0] sm:$0xe] }
 0x162   : > { %7566 = vmatmul.mubr.bf16.gmra.mxu1 %v6754_v44  ;;  %v3163_v17 = vrot.slane %v3162_v31, 4  ;;  %v6756_v10 = vcombine.low %v3697_v63, %v3700_v38  ;;  %v3176_v27 = vor.u32 %v3175_v43, %v3172_v30  ;;  %v3185_v0 = vrot.slane %v3183_v39, 4  ;;  %v9628_v44 = vpop.f32.mrf.mxu1  ;;  %v4426_v30 = vld [vmem:[#allocation2 + $0x20] sm:$0x1]  ;;  %v9646_v43 = vpop.f32.mrf.mxu0 }
 0x163   : > { %7514 = vmatmul.mubr.bf16.gmra.mxu0 %v9478_v37  ;;  %7569 = vmatprep.mubr.bf16.mxu1 %v6755_v29  ;;  %v3191_v3 = vrot.slane %v3189_v5, 5  ;;  %v6741_v40 = vrot.slane %v3553_v56, 9  ;;  %v3703_v37 = vrot.slane %v9577_v62, 5  ;;  %v3706_v55 = vrot.slane %v9592_v23, 5  ;;  %v4424_v29 = vld [vmem:[#allocation2 + $0x18] sm:$0xf] }
 0x164   : > { %7517 = vmatprep.mubr.bf16.mxu0 %v9532_v14  ;;  %v3177_v16 = vrot.slane %v3176_v27, 4  ;;  %v3186_v59 = vor.u32 %v3185_v0, %v3181_v41  ;;  %v430_v14 = vsel %vm8457_vm8, 0, %v429_v8  ;;  %v3194_v12 = vshrl.u32 %v2830_v47, 16  ;;  %v4425_v56 = vld [vmem:[#allocation2 + $0x1c] sm:$0xf] }
 0x165   : > { %v3704_v2 = vsel %vm8852_vm14, %v6741_v40, %v3703_v37  ;;  %v3705_v31 = vrot.slane %v3703_v37, 4  ;;  %431 = vst [vmem:[#allocation2 + $0xc8] sm:$0x1] %v430_v14  ;;  %v3197_v62 = vshll.u32 %v2830_v47, 16  ;;  %v3203_v23 = vshll.u32 %v9622_v49, 16 }
 0x166   : > { %v3158_v57 = vsel %vm8468_vm9, %v3153_v20, %v9581_v1  ;;  %v3168_v22 = vsel %vm8468_vm9, %v3163_v17, %v9606_v33  ;;  %v3187_v53 = vrot.slane %v3186_v59, 4  ;;  %v3207_v52 = vshrl.u32 %v9622_v49, 16  ;;  %v9648_v1 = vpop.f32.mrf.mxu1  ;;  %v4427_v27 = vld [vmem:[#allocation2 + $0x24] sm:$0xf] }
 0x167   : > { %v3182_v63 = vsel %vm8468_vm9, %v3177_v16, %v3181_v41  ;;  %v3707_v45 = vsel %vm8852_vm14, %v3705_v31, %v3706_v55  ;;  %v3196_v51 = vrot.slane %v3194_v12, 4  ;;  %v3199_v8 = vrot.slane %v3197_v62, 5  ;;  %v9657_v55 = vld [vmem:[#allocation2 + $0x28] sm:$0xf]  ;;  %v9659_v12 = vpop.f32.mrf.mxu0 }
 0x168   : > { %v3192_v33 = vsel %vm8468_vm9, %v3187_v53, %v3191_v3  ;;  %v6757_v20 = vcombine.low %v3704_v2, %v3707_v45  ;;  %v9652_v39 = vrot.slane %v3203_v23, 5  ;;  %v3209_v47 = vrot.slane %v3207_v52, 4 }
 0x169   : > { %v705_v38 = vrot.slane %v9069_v61, 4  ;;  %v6742_v41 = vrot.slane %v3554_v48, 9  ;;  %v4473_v5 = vshrl.u32 %v4424_v29, 16  ;;  %v4476_v17 = vshll.u32 %v4424_v29, 16 }
 0x16a   : > { %7570 = vmatmul.mubr.bf16.gmra.mxu1 %v6756_v10  ;;  %v6716_v0 = vcombine.low %v3158_v57, %v3168_v22  ;;  %v6717_v40 = vcombine.low %v3182_v63, %v3192_v33  ;;  %v3710_v37 = vrot.slane %v9622_v49, 5  ;;  %v4482_v3 = vshll.u32 %v4425_v56, 16  ;;  %v9668_v49 = vld [vmem:[#allocation2 + $0x2c] sm:$0x1]  ;;  %v4430_v63 = vld [vmem:[#allocation2 + $0x30] sm:$0xf] }
 0x16b   : > { %7518 = vmatmul.mubr.bf16.gmra.mxu0 %v9588_v50  ;;  %7573 = vmatprep.mubr.bf16.mxu1 %v6757_v20  ;;  %v3200_v16 = vor.u32 %v3199_v8, %v3196_v51  ;;  %v4475_v59 = vrot.slane %v4473_v5, 4  ;;  %v4478_v14 = vrot.slane %v4476_v17, 5  ;;  %v4486_v61 = vshrl.u32 %v4425_v56, 16  ;;  %v9661_v50 = vpop.f32.mrf.mxu1  ;;  %v4431_v51 = vld [vmem:[#allocation2 + $0x34] sm:$0xf]  ;;  %v9679_v8 = vpop.f32.mrf.mxu0 }
 0x16c   : > { %7521 = vmatprep.mubr.bf16.mxu0 %v6715_v24  ;;  %10855 = vst [vmem:[#allocation17_spill] sm:$0xff] %v9661_v50  ;;  %v865_v10 = vld [vmem:[#allocation2 + $0xc8] sm:$0x1]  ;;  %v3210_v48 = vor.u32 %v3209_v47, %v9652_v39  ;;  %v4484_v24 = vrot.slane %v4482_v3, 5  ;;  %v4492_v29 = vshll.u32 %v4426_v30, 16  ;;  %v9666_v2 = vadd.f32 %v9377_v35, %v9429_v36 }
 0x16d   : > { %v866_v31 = vsel %vm8450_vm4, %v705_v38, %v865_v10  ;;  %v9674_v62 = vsel %vm8852_vm14, %v6742_v41, %v3710_v37  ;;  %v4479_v23 = vor.u32 %v4478_v14, %v4475_v59  ;;  %v4488_v57 = vrot.slane %v4486_v61, 4  ;;  %v9681_v30 = vpop.f32.mrf.mxu1  ;;  %v4432_v61 = vld [vmem:[#allocation2 + $0x38] sm:$0x1] }
 0x16e   : > { %867 = vst [vmem:[#allocation2 + $0xc8] sm:$0x1] %v866_v31  ;;  %v4494_v22 = vrot.slane %v4492_v29, 5  ;;  %v4497_v53 = vshrl.u32 %v4427_v27, 16  ;;  %v4500_v52 = vshll.u32 %v4427_v27, 16  ;;  %v4506_v56 = vshll.u32 %v9657_v55, 16 }
 0x16f   : > { %v4480_v35 = vrot.slane %v4479_v23, 4  ;;  %v4489_v36 = vor.u32 %v4488_v57, %v4484_v24  ;;  %v4510_v45 = vshrl.u32 %v9657_v55, 16  ;;  %v4516_v9 = vshll.u32 %v9668_v49, 16 }
 0x170   : > { %v3201_v33 = vrot.slane %v3200_v16, 4  ;;  %v4499_v20 = vrot.slane %v4497_v53, 4  ;;  %v4502_v47 = vrot.slane %v4500_v52, 5  ;;  %v9683_v38 = vrot.slane %v4506_v56, 5 }
 0x171   : > { %v3211_v41 = vrot.slane %v3210_v48, 4  ;;  %v3712_v5 = vrot.slane %v3710_v37, 4  ;;  %v4490_v17 = vrot.slane %v4489_v36, 4  ;;  %v4512_v27 = vrot.slane %v4510_v45, 4  ;;  %v9698_v48 = vpop.f32.mrf.mxu0  ;;  %v4433_v36 = vld [vmem:[#allocation2 + $0x3c] sm:$0xf] }
 0x172   : > { %v4485_v3 = vsel %vm8468_vm9, %v4480_v35, %v4484_v24  ;;  %v4503_v59 = vor.u32 %v4502_v47, %v4499_v20  ;;  %v9689_v14 = vadd.f32 %v9402_v54, %v9467_v18  ;;  %v9693_v16 = vadd.f32 %v9431_v46, %v9487_v13  ;;  %10856 = vst [vmem:[#allocation18_spill] sm:$0xff] %v9698_v48  ;;  %v9700_v24 = vpop.f32.mrf.mxu1 }
 0x173   : > { %7522 = vmatmul.mubr.bf16.gmra.mxu0 %v6716_v0  ;;  %v4495_v0 = vsel %vm8468_vm9, %v4490_v17, %v4494_v22  ;;  %v4513_v37 = vor.u32 %v4512_v27, %v9683_v38  ;;  %v4518_v10 = vrot.slane %v4516_v9, 5  ;;  %v3206_v54 = vsel %vm8468_vm9, %v3201_v33, %v9652_v39  ;;  %v9710_v33 = vld [vmem:[#allocation2 + $0x40] sm:$0xf]  ;;  %v9712_v20 = vpop.f32.mrf.mxu0 }
 0x174   : > { %7525 = vmatprep.mubr.bf16.mxu0 %v6717_v40  ;;  %v4521_v40 = vshrl.u32 %v4430_v63, 16  ;;  %v4504_v18 = vrot.slane %v4503_v59, 4  ;;  %v4524_v29 = vshll.u32 %v4430_v63, 16  ;;  %v4530_v46 = vshll.u32 %v4431_v51, 16 }
 0x175   : > { %v2832_v13 = vld [vmem:[#allocation2 + $0xc8] sm:$0x1]  ;;  %v4514_v31 = vrot.slane %v4513_v37, 4  ;;  %v4534_v57 = vshrl.u32 %v4431_v51, 16  ;;  %v4540_v22 = vshll.u32 %v4432_v61, 16  ;;  %v6791_v56 = vcombine.low %v4485_v3, %v4495_v0  ;;  %v9714_v51 = vpop.f32.mrf.mxu1 }
 0x176   : > { %v4523_v23 = vrot.slane %v4521_v40, 4  ;;  %v3213_v53 = vshll.u32 %v2832_v13, 16  ;;  %v3713_v52 = vrot.slane %v2832_v13, 5  ;;  %v4526_v35 = vrot.slane %v4524_v29, 5  ;;  %v9723_v0 = vld [vmem:[#allocation2 + $0x44] sm:$0x1] }
 0x177   : > { %v4509_v45 = vsel %vm8468_vm9, %v4504_v18, %v9683_v38  ;;  %v4519_v39 = vsel %vm8468_vm9, %v4514_v31, %v4518_v10  ;;  %v4532_v9 = vrot.slane %v4530_v46, 5  ;;  %v4536_v63 = vrot.slane %v4534_v57, 4  ;;  %v7947_v40 = vld [vmem:[#allocation2 + $0x18] sm:$0xff]   ;;  %v4436_v46 = vld [vmem:[#allocation2 + $0x48] sm:$0xf]  ;;  %v9733_v57 = vpop.f32.mrf.mxu0 }
 0x178   : > { %v3215_v47 = vrot.slane %v3213_v53, 5  ;;  %v3714_v17 = vsel %vm8852_vm14, %v3712_v5, %v3713_v52  ;;  %v4527_v27 = vor.u32 %v4526_v35, %v4523_v23  ;;  %v4542_v3 = vrot.slane %v4540_v22, 5  ;;  %v9735_v22 = vpop.f32.mrf.mxu1 }
 0x179   : > { %v6758_v59 = vcombine.low %v9674_v62, %v3714_v17  ;;  %v4537_v38 = vor.u32 %v4536_v63, %v4532_v9  ;;  %v9721_v61 = vadd.f32 %v9489_v32, %v9559_v4  ;;  %v4545_v37 = vshrl.u32 %v4433_v36, 16  ;;  %v9729_v32 = vld [vmem:[#allocation2 + $0x4c] sm:$0xf]  ;;  %v9731_v4 = vld [vmem:[#allocation2 + $0x50] sm:$0x1]  ;;  %10857 = vst [vmem:[#allocation19_spill] sm:$0xff] %v9735_v22 }
 0x17a   : > { %v3216_v10 = vsel %vm8468_vm9, %v3211_v41, %v3215_v47  ;;  %v4528_v18 = vrot.slane %v4527_v27, 4  ;;  %v4548_v29 = vshll.u32 %v4433_v36, 16  ;;  %v4554_v5 = vshll.u32 %v9710_v33, 16  ;;  %v4439_v27 = vld [vmem:[#allocation2 + $0x54] sm:$0xf] }
 0x17b   : > { %v6718_v13 = vcombine.low %v3206_v54, %v3216_v10  ;;  %7574 = vmatmul.mubr.bf16.gmra.mxu1 %v6758_v59  ;;  %v4538_v62 = vrot.slane %v4537_v38, 4  ;;  %v4547_v31 = vrot.slane %v4545_v37, 4  ;;  %v4558_v23 = vshrl.u32 %v9710_v33, 16  ;;  %v7948_v59 = vld [vmem:[#allocation2 + $0x24] sm:$0xff]  }
 0x17c   : > { %7641 = vmatprep.mubr.bf16.mxu1 %v6791_v56  ;;  %v4533_v41 = vsel %vm8468_vm9, %v4528_v18, %v4532_v9  ;;  %v4550_v53 = vrot.slane %v4548_v29, 5  ;;  %v9739_v52 = vrot.slane %v4554_v5, 5  ;;  %v4564_v54 = vshll.u32 %v9723_v0, 16  ;;  %v9753_v18 = vld [vmem:[#allocation2 + $0x58] sm:$0xf]  ;;  %v9755_v29 = vpop.f32.mrf.mxu0 }
 0x17d   : > { %7526 = vmatmul.mubr.bf16.gmra.mxu0 %v6718_v13  ;;  %v4543_v35 = vsel %vm8468_vm9, %v4538_v62, %v4542_v3  ;;  %v4560_v36 = vrot.slane %v4558_v23, 4  ;;  %v9746_v63 = vadd.f32 %v9527_v58, %v9584_v34  ;;  %v6792_v47 = vcombine.low %v4509_v45, %v4519_v39  ;;  %v9757_v58 = vpop.f32.mrf.mxu1  ;;  %v7957_v62 = vld [vmem:[#allocation6 + $0x228] sm:$0xff]  }
 0x17e   : > { %7593 = vmatprep.mubr.bf16.mxu0 %v7947_v40  ;;  %v6793_v56 = vcombine.low %v4533_v41, %v4543_v35  ;;  %v4551_v17 = vor.u32 %v4550_v53, %v4547_v31  ;;  %v9750_v9 = vadd.f32 %v9561_v11, %v9611_v26  ;;  %v4566_v37 = vrot.slane %v4564_v54, 5  ;;  %v7954_v40 = vld [vmem:[#allocation8 + $0x30] sm:$0xff]   ;;  %v7951_v31 = vld [vmem:[#allocation2 + $0x30] sm:$0xff]   ;;  %v9770_v54 = vld [vmem:[#allocation2 + $0x5c] sm:$0x1] }
 0x17f   : > { %v4561_v38 = vor.u32 %v4560_v36, %v9739_v52  ;;  %v4569_v10 = vshrl.u32 %v4436_v46, 16  ;;  %v4572_v3 = vshll.u32 %v4436_v46, 16  ;;  %v4578_v45 = vshll.u32 %v9729_v32, 16  ;;  %v7953_v35 = vld [vmem:[#allocation6 + $0x230] sm:$0xff]   ;;  %v9784_v22 = vld [vmem:[#allocation2 + $0x64] sm:$0xf] }
 0x180   : > { %10858 = vst [vmem:[#allocation20_spill] sm:$0xff] %v9750_v9  ;;  %v4552_v34 = vrot.slane %v4551_v17, 4  ;;  %v4582_v39 = vshrl.u32 %v9729_v32, 16  ;;  %v4588_v11 = vshll.u32 %v9731_v4, 16  ;;  %v9764_v46 = vadd.f32 %v9613_v7, %v9646_v43  ;;  %v9774_v7 = vpop.f32.mrf.mxu0  ;;  %v9776_v43 = vpop.f32.mrf.mxu1 }
 0x181   : > { %v4562_v26 = vrot.slane %v4561_v38, 4  ;;  %v4571_v5 = vrot.slane %v4569_v10, 4  ;;  %v4574_v13 = vrot.slane %v4572_v3, 5  ;;  %v4580_v41 = vrot.slane %v4578_v45, 5  ;;  %v9772_v3 = vld [vmem:[#allocation8 + $0x28] sm:$0xff]   ;;  %10860 = vst [vmem:[#allocation22_spill] sm:$0xff] %v9774_v7 }
 0x182   : > { %10859 = vst [vmem:[#allocation21_spill] sm:$0xff] %v9764_v46  ;;  %v4557_v23 = vsel %vm8468_vm9, %v4552_v34, %v9739_v52  ;;  %v4584_v53 = vrot.slane %v4582_v39, 4  ;;  %v4590_v17 = vrot.slane %v4588_v11, 5  ;;  %v4593_v38 = vshrl.u32 %v4439_v27, 16  ;;  %v4442_v39 = vld [vmem:[#allocation2 + $0x60] sm:$0xf] }
 0x183   : > { %7642 = vmatmul.mubr.bf16.vlgmr.msra.gmra.mxu1 %v6792_v47  ;;  %v4575_v36 = vor.u32 %v4574_v13, %v4571_v5  ;;  %v4596_v10 = vshll.u32 %v4439_v27, 16  ;;  %v4567_v52 = vsel %vm8468_vm9, %v4562_v26, %v4566_v37  ;;  %v4602_v47 = vshll.u32 %v9753_v18, 16  ;;  %v9796_v7 = vpop.f32.mrf.mxu0 }
 0x184   : > { %7722 = vmatpush3.bf16.msra.mxu1 %v9566_v15  ;;  %7645 = vmatprep.mubr.bf16.mxu1 %v6793_v56  ;;  %v4585_v34 = vor.u32 %v4584_v53, %v4580_v41  ;;  %v4606_v45 = vshrl.u32 %v9753_v18, 16  ;;  %v4595_v11 = vrot.slane %v4593_v38, 4  ;;  %v4612_v13 = vshll.u32 %v9770_v54, 16  ;;  %v9798_v15 = vpop.f32.mrf.mxu1 }
 0x185   : > { %7594 = vmatmul.mubr.bf16.vlgmr.msra.gmra.mxu0 %v7948_v59  ;;  %7723 = vmatprep.subr.bf16.mxu1 %v7954_v40  ;;  %v4576_v27 = vrot.slane %v4575_v36, 4  ;;  %v4598_v5 = vrot.slane %v4596_v10, 5  ;;  %v4604_v37 = vrot.slane %v4602_v47, 5  ;;  %v6794_v53 = vcombine.low %v4557_v23, %v4567_v52  ;;  %v9794_v10 = vld [vmem:[#allocation2 + $0x68] sm:$0x1] }
 0x186   : > { %7674 = vmatpush3.bf16.msra.mxu0 %v9594_v21  ;;  %7597 = vmatprep.mubr.bf16.mxu0 %v7951_v31  ;;  %v4586_v56 = vrot.slane %v4585_v34, 4  ;;  %v4608_v26 = vrot.slane %v4606_v45, 4  ;;  %v9792_v38 = vadd.f32 %v9628_v44, %v9659_v12  ;;  %v7952_v21 = vld [vmem:[#allocation2 + $0x3c] sm:$0xff]   ;;  %v7955_v31 = vld [vmem:[#allocation2 + $0x48] sm:$0xff]   ;;  %v4614_v34 = vrot.slane %v4612_v13, 5 }
 0x187   : > { %7675 = vmatprep.subr.bf16.mxu0 %v7953_v35  ;;  %v4581_v59 = vsel %vm8468_vm9, %v4576_v27, %v4580_v41  ;;  %v4599_v36 = vor.u32 %v4598_v5, %v4595_v11  ;;  %v9804_v41 = vadd.f32 %v9648_v1, %v9679_v8  ;;  %v4445_v44 = vld [vmem:[#allocation2 + $0x6c] sm:$0xf]  ;;  %v4617_v45 = vshrl.u32 %v4442_v39, 16  ;;  %v7961_v11 = vld [vmem:[#allocation6 + $0x220] sm:$0xff]  }
 0x188   : > { %10861 = vst [vmem:[#allocation23_spill] sm:$0xff] %v9792_v38  ;;  %7724 = vmatpush3.bf16.msra.mxu1 %v7954_v40  ;;  %v4591_v23 = vsel %vm8468_vm9, %v4586_v56, %v4590_v17  ;;  %v4609_v52 = vor.u32 %v4608_v26, %v4604_v37  ;;  %v4620_v27 = vshll.u32 %v4442_v39, 16  ;;  %v7962_v5 = vld [vmem:[#allocation8 + $0x20] sm:$0xff]   ;;  %v4626_v50 = vshll.u32 %v9784_v22, 16  ;;  %v9816_v26 = vld [vmem:[#allocation2 + $0x70] sm:$0xf] }
 0x189   : > { %10862 = vst [vmem:[#allocation24_spill] sm:$0xff] %v9804_v41  ;;  %v6795_v12 = vcombine.low %v4581_v59, %v4591_v23  ;;  %v4600_v47 = vrot.slane %v4599_v36, 4  ;;  %7725 = vmatprep.subr.bf16.mxu1 %v9772_v3  ;;  %v4630_v17 = vshrl.u32 %v9784_v22, 16  ;;  %v4636_v13 = vshll.u32 %v9794_v10, 16  ;;  %v9820_v59 = vpop.f32.mrf.mxu0  ;;  %v9822_v36 = vpop.f32.mrf.mxu1 }
 0x18a   : > { %7676 = vmatpush3.bf16.msra.mxu0 %v7953_v35  ;;  %v4610_v40 = vrot.slane %v4609_v52, 4  ;;  %v4619_v8 = vrot.slane %v4617_v45, 4  ;;  %v4622_v56 = vrot.slane %v4620_v27, 5  ;;  %v9814_v39 = vadd.f32 %v9681_v30, %v9712_v20  ;;  %v9818_v35 = vld [vmem:[#allocation2 + $0x74] sm:$0x1] }
 0x18b   : > { %7646 = vmatmul.mubr.bf16.gmra.mxu1 %v6794_v53  ;;  %v4605_v1 = vsel %vm8468_vm9, %v4600_v47, %v4604_v37  ;;  %7677 = vmatprep.subr.bf16.mxu0 %v7957_v62  ;;  %v4628_v37 = vrot.slane %v4626_v50, 5  ;;  %v4632_v23 = vrot.slane %v4630_v17, 4  ;;  %v4638_v52 = vrot.slane %v4636_v13, 5  ;;  %v7966_v47 = vld [vmem:[#allocation8 + $0x18] sm:$0xff]   ;;  %v4448_v27 = vld [vmem:[#allocation2 + $0x78] sm:$0xf] }
 0x18c   : > { %10863 = vst [vmem:[#allocation25_spill] sm:$0xff] %v9814_v39  ;;  %7649 = vmatprep.mubr.bf16.mxu1 %v6795_v12  ;;  %v4615_v53 = vsel %vm8468_vm9, %v4610_v40, %v4614_v34  ;;  %7726 = vmatpush3.bf16.msra.mxu1 %v9772_v3  ;;  %v4623_v30 = vor.u32 %v4622_v56, %v4619_v8  ;;  %v4641_v20 = vshrl.u32 %v4445_v44, 16  ;;  %v4644_v45 = vshll.u32 %v4445_v44, 16  ;;  %v9830_v3 = vld [vmem:[#allocation2 + $0x7c] sm:$0xf]  ;;  %v7956_v50 = vld [vmem:[#allocation2 + $0x54] sm:$0xff]   ;;  %v9832_v8 = vpop.f32.mrf.mxu0 }
 0x18d   : > { %7598 = vmatmul.mubr.bf16.gmra.mxu0 %v7952_v21  ;;  %7727 = vmatprep.subr.bf16.mxu1 %v7962_v5  ;;  %v4633_v39 = vor.u32 %v4632_v23, %v4628_v37  ;;  %v4650_v12 = vshll.u32 %v9816_v26, 16  ;;  %v4654_v41 = vshrl.u32 %v9816_v26, 16  ;;  %v4660_v34 = vshll.u32 %v9818_v35, 16  ;;  %v7965_v44 = vld [vmem:[#allocation6 + $0x218] sm:$0xff]   ;;  %v7959_v56 = vld [vmem:[#allocation2 + $0x60] sm:$0xff]  }
 0x18e   : > { %7601 = vmatprep.mubr.bf16.mxu0 %v7955_v31  ;;  %7678 = vmatpush3.bf16.msra.mxu0 %v7957_v62  ;;  %v6796_v40 = vcombine.low %v4605_v1, %v4615_v53  ;;  %v4624_v17 = vrot.slane %v4623_v30, 4  ;;  %v4643_v21 = vrot.slane %v4641_v20, 4  ;;  %v4646_v13 = vrot.slane %v4644_v45, 5  ;;  %v9850_v45 = vld [vmem:[#allocation2 + $0x80] sm:$0x1] }
 0x18f   : > { %7679 = vmatprep.subr.bf16.mxu0 %v7961_v11  ;;  %v9834_v31 = vpop.f32.mrf.mxu1  ;;  %v9838_v62 = vadd.f32 %v9469_v60, %v9525_v28  ;;  %v4634_v23 = vrot.slane %v4633_v39, 4  ;;  %v4652_v48 = vrot.slane %v4650_v12, 5  ;;  %v4656_v38 = vrot.slane %v4654_v41, 4  ;;  %v9852_v60 = vld [vmem:[#allocation6 + $0x210] sm:$0xff]  }
 0x190   : > { %7728 = vmatpush3.bf16.msra.mxu1 %v7962_v5  ;;  %v4629_v1 = vsel %vm8468_vm9, %v4624_v17, %v4628_v37  ;;  %v4647_v53 = vor.u32 %v4646_v13, %v4643_v21  ;;  %v9844_v30 = vadd.f32 %v9700_v24, %v9733_v57  ;;  %v9848_v20 = vadd.f32 %v9714_v51, %v9755_v29  ;;  %v4451_v37 = vld [vmem:[#allocation2 + $0x84] sm:$0xf]  ;;  %v1549_v29 = vpop.f32.mrf.mxu0  ;;  %v7970_v21 = vld [vmem:[#allocation8 + $0x10] sm:$0xff]  }
 0x191   : > { %7729 = vmatprep.subr.bf16.mxu1 %v7966_v47  ;;  %v4639_v28 = vsel %vm8468_vm9, %v4634_v23, %v4638_v52  ;;  %v4657_v41 = vor.u32 %v4656_v38, %v4652_v48  ;;  %v4662_v5 = vrot.slane %v4660_v34, 5  ;;  %v4665_v39 = vshrl.u32 %v4448_v27, 16  ;;  %v9857_v17 = vpop.f32.mrf.mxu1 }
 0x192   : > { %10864 = vst [vmem:[#allocation26_spill] sm:$0xff] %v9844_v30  ;;  %10865 = vst [vmem:[#allocation27_spill] sm:$0xff] %v9848_v20  ;;  %7680 = vmatpush3.bf16.msra.mxu0 %v7961_v11  ;;  %v6797_v24 = vcombine.low %v4629_v1, %v4639_v28  ;;  %v4648_v57 = vrot.slane %v4647_v53, 4  ;;  %v4668_v12 = vshll.u32 %v4448_v27, 16  ;;  %v4674_v51 = vshll.u32 %v9830_v3, 16  ;;  %v7974_v53 = vld [vmem:[#allocation8 + $0x8] sm:$0xff]  }
 0x193   : > { %7650 = vmatmul.mubr.bf16.gmra.mxu1 %v6796_v40  ;;  %7681 = vmatprep.subr.bf16.mxu0 %v7965_v44  ;;  %v4658_v13 = vrot.slane %v4657_v41, 4  ;;  %v4667_v20 = vrot.slane %v4665_v39, 4  ;;  %v4678_v52 = vshrl.u32 %v9830_v3, 16  ;;  %v4684_v38 = vshll.u32 %v9850_v45, 16  ;;  %v9861_v11 = vld [vmem:[#allocation2 + $0x88] sm:$0xf] }
 0x194   : > { %7730 = vmatpush3.bf16.msra.mxu1 %v7966_v47  ;;  %7653 = vmatprep.mubr.bf16.mxu1 %v6797_v24  ;;  %v4653_v27 = vsel %vm8468_vm9, %v4648_v57, %v4652_v48  ;;  %v4670_v34 = vrot.slane %v4668_v12, 5  ;;  %v4676_v40 = vrot.slane %v4674_v51, 5  ;;  %v9867_v23 = vadd.f32 %v9757_v58, %v9796_v7  ;;  %v9869_v1 = vld [vmem:[#allocation2 + $0x8c] sm:$0x1]  ;;  %v4454_v39 = vld [vmem:[#allocation2 + $0x90] sm:$0xf] }
 0x195   : > { %7602 = vmatmul.mubr.bf16.gmra.mxu0 %v7956_v50  ;;  %v4663_v28 = vsel %vm8468_vm9, %v4658_v13, %v4662_v5  ;;  %v4680_v41 = vrot.slane %v4678_v52, 4  ;;  %v4686_v47 = vrot.slane %v4684_v38, 5  ;;  %v4689_v50 = vshrl.u32 %v4451_v37, 16  ;;  %v7973_v24 = vld [vmem:[#allocation6 + $0x208] sm:$0xff]   ;;  %v9874_v58 = vld [vmem:[#allocation2 + $0x94] sm:$0xf]  ;;  %7731 = vmatprep.subr.bf16.mxu1 %v7970_v21 }
 0x196   : > { %10866 = vst [vmem:[#allocation28_spill] sm:$0xff] %v9867_v23  ;;  %7605 = vmatprep.mubr.bf16.mxu0 %v7959_v56  ;;  %7682 = vmatpush3.bf16.msra.mxu0 %v7965_v44  ;;  %v6798_v48 = vcombine.low %v4653_v27, %v4663_v28  ;;  %v4671_v57 = vor.u32 %v4670_v34, %v4667_v20  ;;  %v4692_v12 = vshll.u32 %v4451_v37, 16  ;;  %v4698_v51 = vshll.u32 %v9861_v11, 16  ;;  %v9877_v56 = vpop.f32.mrf.mxu1  ;;  %v7960_v5 = vld [vmem:[#allocation2 + $0x6c] sm:$0xff]   ;;  %v7978_v23 = vld [vmem:[#allocation8] sm:$0xff]  }
 0x197   : > { %7683 = vmatprep.subr.bf16.mxu0 %v9852_v60  ;;  %v4681_v13 = vor.u32 %v4680_v41, %v4676_v40  ;;  %v4691_v52 = vrot.slane %v4689_v50, 4  ;;  %v4702_v44 = vshrl.u32 %v9861_v11, 16  ;;  %v4708_v38 = vshll.u32 %v9869_v1, 16  ;;  %v7963_v30 = vld [vmem:[#allocation2 + $0x78] sm:$0xff]  }
 0x198   : > { %v7327_v7 = vpop.f32.mrf.mxu0  ;;  %7732 = vmatpush3.bf16.msra.mxu1 %v7970_v21  ;;  %v4672_v20 = vrot.slane %v4671_v57, 4  ;;  %v4694_v37 = vrot.slane %v4692_v12, 5  ;;  %v4700_v27 = vrot.slane %v4698_v51, 5  ;;  %v9883_v34 = vadd.f32 %v9776_v43, %v9820_v59  ;;  %v9897_v57 = vld [vmem:[#allocation2 + $0x98] sm:$0x1]  ;;  %v9899_v51 = vpop.f32.mrf.mxu1 }
 0x199   : > { %7733 = vmatprep.subr.bf16.mxu1 %v7974_v53  ;;  %v4682_v46 = vrot.slane %v4681_v13, 4  ;;  %v4704_v41 = vrot.slane %v4702_v44, 4  ;;  %v4710_v50 = vrot.slane %v4708_v38, 5  ;;  %v9889_v9 = vadd.f32 %v9798_v15, %v9832_v8  ;;  %v7977_v13 = vld [vmem:[#allocation6 + $0x200] sm:$0xff]  }
 0x19a   : > { %10867 = vst [vmem:[#allocation29_spill] sm:$0xff] %v9883_v34  ;;  %v9885_v28 = vpop.f32.mrf.mxu0  ;;  %7684 = vmatpush3.bf16.msra.mxu0 %v9852_v60  ;;  %v4677_v21 = vsel %vm8468_vm9, %v4672_v20, %v4676_v40  ;;  %v4695_v43 = vor.u32 %v4694_v37, %v4691_v52  ;;  %v9895_v59 = vadd.f32 %v9822_v36, %v1549_v29  ;;  %v4713_v12 = vshrl.u32 %v4454_v39, 16  ;;  %v4457_v44 = vld [vmem:[#allocation2 + $0x9c] sm:$0xf]  ;;  %v4460_v34 = vld [vmem:[#allocation2 + $0xa8] sm:$0xf] }
 0x19b   : > { %10868 = vst [vmem:[#allocation30_spill] sm:$0xff] %v9889_v9  ;;  %7654 = vmatmul.mubr.bf16.gmra.mxu1 %v6798_v48  ;;  %7685 = vmatprep.subr.bf16.mxu0 %v7973_v24  ;;  %v4687_v15 = vsel %vm8468_vm9, %v4682_v46, %v4686_v47  ;;  %v4705_v8 = vor.u32 %v4704_v41, %v4700_v27  ;;  %v4716_v60 = vshll.u32 %v4454_v39, 16  ;;  %v4722_v48 = vshll.u32 %v9874_v58, 16  ;;  %v9906_v47 = vld [vmem:[#allocation2 + $0xa0] sm:$0xf]  ;;  %v7964_v39 = vld [vmem:[#allocation2 + $0x84] sm:$0xff]  }
 0x19c   : > { %10869 = vst [vmem:[#allocation31_spill] sm:$0xff] %v9895_v59  ;;  %7734 = vmatpush3.bf16.msra.mxu1 %v7974_v53  ;;  %v6799_v40 = vcombine.low %v4677_v21, %v4687_v15  ;;  %v4696_v36 = vrot.slane %v4695_v43, 4  ;;  %v4715_v29 = vrot.slane %v4713_v12, 4  ;;  %v4726_v52 = vshrl.u32 %v9874_v58, 16  ;;  %v7328_v38 = vpop.f32.mrf.mxu0  ;;  %v9913_v21 = vld [vmem:[#allocation2 + $0xa4] sm:$0x1] }
 0x19d   : > { %7606 = vmatmul.mubr.bf16.gmra.mxu0 %v7960_v5  ;;  %7735 = vmatprep.subr.bf16.mxu1 %v7978_v23  ;;  %v4706_v20 = vrot.slane %v4705_v8, 4  ;;  %v4718_v37 = vrot.slane %v4716_v60, 5  ;;  %v4724_v59 = vrot.slane %v4722_v48, 5  ;;  %v4732_v46 = vshll.u32 %v9897_v57, 16  ;;  %v7967_v15 = vld [vmem:[#allocation2 + $0x90] sm:$0xff]  }
 0x19e   : > { %7609 = vmatprep.mubr.bf16.mxu0 %v7963_v30  ;;  %7686 = vmatpush3.bf16.msra.mxu0 %v7973_v24  ;;  %v4701_v53 = vsel %vm8468_vm9, %v4696_v36, %v4700_v27  ;;  %v4728_v5 = vrot.slane %v4726_v52, 4  ;;  %v9911_v41 = vadd.f32 %v9834_v31, %v7327_v7  ;;  %v4737_v30 = vshrl.u32 %v4457_v44, 16  ;;  %v7379_v43 = vpop.f32.mrf.mxu1  ;;  %v1565_v31 = vpop.f32.mrf.mxu0 }
 0x19f   : > { %7657 = vmatprep.mubr.bf16.mxu1 %v6799_v40  ;;  %7687 = vmatprep.subr.bf16.mxu0 %v7977_v13  ;;  %v4711_v12 = vsel %vm8468_vm9, %v4706_v20, %v4710_v50  ;;  %v4719_v8 = vor.u32 %v4718_v37, %v4715_v29  ;;  %v4734_v24 = vrot.slane %v4732_v46, 5  ;;  %v4740_v60 = vshll.u32 %v4457_v44, 16  ;;  %v9927_v20 = vld [vmem:[#allocation2 + $0xac] sm:$0xf] }
 0x1a0   : > { %10870 = vst [vmem:[#allocation32_spill] sm:$0xff] %v9911_v41  ;;  %7736 = vmatpush3.bf16.msra.mxu1 %v7978_v23  ;;  %v6800_v48 = vcombine.low %v4701_v53, %v4711_v12  ;;  %v4729_v40 = vor.u32 %v4728_v5, %v4724_v59  ;;  %v4739_v27 = vrot.slane %v4737_v30, 4  ;;  %v4746_v36 = vshll.u32 %v9906_v47, 16  ;;  %v1883_v37 = vpop.f32.mrf.mxu1 }
 0x1a1   : > { %v4720_v7 = vrot.slane %v4719_v8, 4  ;;  %v4742_v52 = vrot.slane %v4740_v60, 5  ;;  %v4750_v41 = vshrl.u32 %v9906_v47, 16  ;;  %v4756_v9 = vshll.u32 %v9913_v21, 16 }
 0x1a2   : > { %7688 = vmatpush3.bf16.msra.mxu0 %v7977_v13  ;;  %v4730_v50 = vrot.slane %v4729_v40, 4  ;;  %v4748_v29 = vrot.slane %v4746_v36, 5  ;;  %v9922_v23 = vadd.f32 %v9857_v17, %v9885_v28  ;;  %v9925_v44 = vadd.f32 %v9877_v56, %v7328_v38  ;;  %v9931_v13 = vld [vmem:[#allocation2 + $0xb0] sm:$0x1]  ;;  %v7380_v36 = vpop.f32.mrf.mxu1 }
 0x1a3   : > { %7658 = vmatmul.mubr.bf16.gmra.mxu1 %v6800_v48  ;;  %v4725_v46 = vsel %vm8468_vm9, %v4720_v7, %v4724_v59  ;;  %v4743_v53 = vor.u32 %v4742_v52, %v4739_v27  ;;  %v4752_v5 = vrot.slane %v4750_v41, 4  ;;  %v4758_v30 = vrot.slane %v4756_v9, 5  ;;  %10873 = vst [vmem:[#allocation35_spill] sm:$0xff] %v9931_v13  ;;  %v4463_v41 = vld [vmem:[#allocation2 + $0xb4] sm:$0xf]  ;;  %v7968_v52 = vld [vmem:[#allocation2 + $0x9c] sm:$0xff]  }
 0x1a4   : > { %10871 = vst [vmem:[#allocation33_spill] sm:$0xff] %v9922_v23  ;;  %10872 = vst [vmem:[#allocation34_spill] sm:$0xff] %v9925_v44  ;;  %v4735_v12 = vsel %vm8468_vm9, %v4730_v50, %v4734_v24  ;;  %v9936_v17 = vadd.f32 %v9899_v51, %v1565_v31  ;;  %v4761_v56 = vshrl.u32 %v4460_v34, 16  ;;  %v4764_v28 = vshll.u32 %v4460_v34, 16  ;;  %v9941_v24 = vld [vmem:[#allocation2 + $0xb8] sm:$0xf] }
 0x1a5   : > { %7610 = vmatmul.mubr.bf16.gmra.mxu0 %v7964_v39  ;;  %v6801_v8 = vcombine.low %v4725_v46, %v4735_v12  ;;  %v4744_v60 = vrot.slane %v4743_v53, 4  ;;  %v4753_v48 = vor.u32 %v4752_v5, %v4748_v29  ;;  %v4770_v59 = vshll.u32 %v9927_v20, 16  ;;  %v9947_v5 = vld [vmem:[#allocation2 + $0xbc] sm:$0x1] }
 0x1a6   : > { %10874 = vst [vmem:[#allocation36_spill] sm:$0xff] %v9936_v17  ;;  %7613 = vmatprep.mubr.bf16.mxu0 %v7967_v15  ;;  %v4763_v9 = vrot.slane %v4761_v56, 4  ;;  %v4766_v40 = vrot.slane %v4764_v28, 5  ;;  %v4774_v39 = vshrl.u32 %v9927_v20, 16  ;;  %v4780_v27 = vshll.u32 %v9931_v13, 16  ;;  %v7971_v17 = vld [vmem:[#allocation2 + $0xa8] sm:$0xff]  }
 0x1a7   : > { %v7331_v38 = vpop.f32.mrf.mxu0  ;;  %7661 = vmatprep.mubr.bf16.mxu1 %v6801_v8  ;;  %v4749_v34 = vsel %vm8468_vm9, %v4744_v60, %v4748_v29  ;;  %v4754_v15 = vrot.slane %v4753_v48, 4  ;;  %v4772_v31 = vrot.slane %v4770_v59, 5  ;;  %v4785_v12 = vshrl.u32 %v4463_v41, 16  ;;  %v9954_v13 = vld [vmem:[#allocation2 + $0xc4] sm:$0xf] }
 0x1a8   : > { %v9945_v7 = vadd.f32 %v7379_v43, %v7331_v38  ;;  %v4767_v50 = vor.u32 %v4766_v40, %v4763_v9  ;;  %v4776_v46 = vrot.slane %v4774_v39, 4  ;;  %v4782_v53 = vrot.slane %v4780_v27, 5  ;;  %v1886_v9 = vpop.f32.mrf.mxu1  ;;  %v4466_v40 = vld [vmem:[#allocation2 + $0xc0] sm:$0xf]  ;;  %10876 = vst [vmem:[#allocation38_spill] sm:$0xff] %v9954_v13 }
 0x1a9   : > { %v1578_v51 = vpop.f32.mrf.mxu0  ;;  %v4759_v28 = vsel %vm8468_vm9, %v4754_v15, %v4758_v30  ;;  %v4788_v8 = vshll.u32 %v4463_v41, 16  ;;  %v4794_v44 = vshll.u32 %v9941_v24, 16  ;;  %v4798_v29 = vshrl.u32 %v9941_v24, 16 }
 0x1aa   : > { %10875 = vst [vmem:[#allocation37_spill] sm:$0xff] %v9945_v7  ;;  %v6802_v60 = vcombine.low %v4749_v34, %v4759_v28  ;;  %v4768_v43 = vrot.slane %v4767_v50, 4  ;;  %v4777_v38 = vor.u32 %v4776_v46, %v4772_v31  ;;  %v4787_v48 = vrot.slane %v4785_v12, 4  ;;  %v9964_v28 = vld [vmem:[#allocation2 + $0xc8] sm:$0x1] }
 0x1ab   : > { %v7332_v56 = vpop.f32.mrf.mxu0  ;;  %v4790_v39 = vrot.slane %v4788_v8, 5  ;;  %v4796_v27 = vrot.slane %v4794_v44, 5  ;;  %v4800_v7 = vrot.slane %v4798_v29, 4  ;;  %v4804_v23 = vshll.u32 %v9947_v5, 16  ;;  %10880 = vst [vmem:[#allocation42_spill] sm:$0xff] %v9964_v28 }
 0x1ac   : > { %7662 = vmatmul.mubr.bf16.gmra.mxu1 %v6802_v60  ;;  %v4773_v30 = vsel %vm8468_vm9, %v4768_v43, %v4772_v31  ;;  %v4778_v41 = vrot.slane %v4777_v38, 4  ;;  %v9958_v34 = vadd.f32 %v1883_v37, %v1578_v51  ;;  %v9960_v15 = vadd.f32 %v7380_v36, %v7332_v56  ;;  %v4469_v60 = vld [vmem:[#allocation2 + $0xcc] sm:$0xf]  ;;  %v7972_v51 = vld [vmem:[#allocation2 + $0xb4] sm:$0xff]  }
 0x1ad   : > { %v1581_v59 = vpop.f32.mrf.mxu0  ;;  %7614 = vmatmul.mubr.bf16.gmra.mxu0 %v7968_v52  ;;  %v4791_v50 = vor.u32 %v4790_v39, %v4787_v48  ;;  %v4801_v46 = vor.u32 %v4800_v7, %v4796_v27  ;;  %v4806_v12 = vrot.slane %v4804_v23, 5  ;;  %v4809_v8 = vshrl.u32 %v4466_v40, 16 }
 0x1ae   : > { %10877 = vst [vmem:[#allocation39_spill] sm:$0xff] %v9958_v34  ;;  %10878 = vst [vmem:[#allocation40_spill] sm:$0xff] %v9960_v15  ;;  %7617 = vmatprep.mubr.bf16.mxu0 %v7971_v17  ;;  %v9962_v44 = vadd.f32 %v1886_v9, %v1581_v59  ;;  %v4783_v52 = vsel %vm8468_vm9, %v4778_v41, %v4782_v53  ;;  %v4812_v29 = vshll.u32 %v4466_v40, 16  ;;  %v4818_v31 = vshll.u32 %v9954_v13, 16  ;;  %v7975_v17 = vld [vmem:[#allocation2 + $0xc0] sm:$0xff]  }
 0x1af   : > { %v6803_v37 = vcombine.low %v4773_v30, %v4783_v52  ;;  %v4792_v36 = vrot.slane %v4791_v50, 4  ;;  %v4802_v56 = vrot.slane %v4801_v46, 4  ;;  %v4822_v7 = vshrl.u32 %v9954_v13, 16  ;;  %v9971_v9 = vld [vmem:[#allocation2 + $0xd0] sm:$0xf] }
 0x1b0   : > { %10879 = vst [vmem:[#allocation41_spill] sm:$0xff] %v9962_v44  ;;  %v4811_v23 = vrot.slane %v4809_v8, 4  ;;  %v4814_v43 = vrot.slane %v4812_v29, 5  ;;  %v4820_v38 = vrot.slane %v4818_v31, 5  ;;  %v4828_v48 = vshll.u32 %v9964_v28, 16 }
 0x1b1   : > { %7665 = vmatprep.mubr.bf16.mxu1 %v6803_v37  ;;  %v4797_v53 = vsel %vm8468_vm9, %v4792_v36, %v4796_v27  ;;  %v4807_v40 = vsel %vm8468_vm9, %v4802_v56, %v4806_v12  ;;  %v4824_v39 = vrot.slane %v4822_v7, 4  ;;  %v9977_v30 = vld [vmem:[#allocation2 + $0xd4] sm:$0x1]  ;;  %v4833_v41 = vshrl.u32 %v4469_v60, 16  ;;  %v5178_v50 = vld [vmem:[#allocation2 + $0x18] sm:$0xe] }
 0x1b2   : > { %v7383_v59 = vpop.f32.mrf.mxu1  ;;  %v6804_v46 = vcombine.low %v4797_v53, %v4807_v40  ;;  %v4815_v52 = vor.u32 %v4814_v43, %v4811_v23  ;;  %v4830_v8 = vrot.slane %v4828_v48, 5  ;;  %v4836_v29 = vshll.u32 %v4469_v60, 16  ;;  %v8011_v60 = vld [vmem:[#allocation2 + $0x1c] sm:$0xf]  ;;  %v5179_v40 = vld [vmem:[#allocation2 + $0x24] sm:$0xe] }
 0x1b3   : > { %v4825_v44 = vor.u32 %v4824_v39, %v4820_v38  ;;  %v4835_v15 = vrot.slane %v4833_v41, 4  ;;  %v4842_v37 = vshll.u32 %v9971_v9, 16  ;;  %v4846_v34 = vshrl.u32 %v9971_v9, 16 }
 0x1b4   : > { %v1899_v31 = vpop.f32.mrf.mxu1  ;;  %7666 = vmatmul.mubr.bf16.gmra.mxu1 %v6804_v46  ;;  %v4816_v27 = vrot.slane %v4815_v52, 4  ;;  %v4838_v12 = vrot.slane %v4836_v29, 5  ;;  %v4852_v36 = vshll.u32 %v9977_v30, 16  ;;  %v6815_v7 = vrot.slane %v5178_v50, 9  ;;  %v8012_v46 = vld [vmem:[#allocation2 + $0x20] sm:$0x1] }
 0x1b5   : > { %7618 = vmatmul.mubr.bf16.gmra.mxu0 %v7972_v51  ;;  %v4826_v53 = vrot.slane %v4825_v44, 4  ;;  %v4844_v23 = vrot.slane %v4842_v37, 5  ;;  %v4848_v43 = vrot.slane %v4846_v34, 4  ;;  %v5244_v48 = vrot.slane %v8011_v60, 5 }
 0x1b6   : > { %v7384_v56 = vpop.f32.mrf.mxu1  ;;  %7621 = vmatprep.mubr.bf16.mxu0 %v7975_v17  ;;  %v4821_v39 = vsel %vm8468_vm9, %v4816_v27, %v4820_v38  ;;  %v4839_v41 = vor.u32 %v4838_v12, %v4835_v15  ;;  %v4854_v28 = vrot.slane %v4852_v36, 5  ;;  %v5247_v52 = vrot.slane %v8012_v46, 5  ;;  %v7976_v38 = vld [vmem:[#allocation2 + $0xcc] sm:$0xff]  }
 0x1b7   : > { %v4831_v29 = vsel %vm8468_vm9, %v4826_v53, %v4830_v8  ;;  %v4849_v13 = vor.u32 %v4848_v43, %v4844_v23  ;;  %v5245_v44 = vsel %vm8852_vm14, %v6815_v7, %v5244_v48  ;;  %v5246_v17 = vrot.slane %v5244_v48, 4  ;;  %v5180_v36 = vld [vmem:[#allocation2 + $0x30] sm:$0xe] }
 0x1b8   : > { %v1902_v51 = vpop.f32.mrf.mxu1  ;;  %v6805_v50 = vcombine.low %v4821_v39, %v4831_v29  ;;  %v4840_v15 = vrot.slane %v4839_v41, 4  ;;  %v6816_v12 = vrot.slane %v5179_v40, 9  ;;  %v10881_v7 = vrot.slane %v9657_v55, 5  ;;  %v8013_v41 = vld [vmem:[%s8438_s14] sm:$0xf] }
 0x1b9   : > { %v4850_v8 = vrot.slane %v4849_v13, 4  ;;  %v5248_v53 = vsel %vm8852_vm14, %v5246_v17, %v5247_v52  ;;  %v8014_v29 = vld [vmem:[%s8438_s14 + $0x4] sm:$0xf] }
 0x1ba   : > { %v9989_v27 = vpop.f32.mrf.mxu1  ;;  %v5253_v43 = vrot.slane %v10881_v7, 4  ;;  %7669 = vmatprep.mubr.bf16.mxu1 %v6805_v50  ;;  %v4845_v48 = vsel %vm8468_vm9, %v4840_v15, %v4844_v23  ;;  %v6831_v46 = vcombine.low %v5245_v44, %v5248_v53  ;;  %v6887_v34 = vcombine.low %v8013_v41, %v8014_v29 }
 0x1bb   : > { %v7335_v37 = vpop.f32.mrf.mxu0  ;;  %v10882_v40 = vmov %v10881_v7  ;;  %v4855_v52 = vsel %vm8468_vm9, %v4850_v8, %v4854_v28  ;;  %v10883_v23 = vrot.slane %v9668_v49, 5  ;;  %v6817_v50 = vrot.slane %v5180_v36, 9  ;;  %v8015_v7 = vld [vmem:[#allocation2 + $0x34] sm:$0xf]  ;;  %v5182_v8 = vld [vmem:[#allocation2 + $0x48] sm:$0xe] }
 0x1bc   : > { %v9991_v60 = vadd.f32 %v7383_v59, %v7335_v37  ;;  %v10005_v13 = vsel %vm8852_vm14, %v6816_v12, %v10882_v40  ;;  %v10007_v59 = vpop.f32.mrf.mxu1  ;;  %v5181_v37 = vld [vmem:[#allocation2 + $0x3c] sm:$0xe]  ;;  %v6806_v55 = vcombine.low %v4845_v48, %v4855_v52  ;;  %v5258_v41 = vrot.slane %v8015_v7, 5  ;;  %v8020_v7 = vld [vmem:[%s8438_s14 + $0x14] sm:$0xf] }
 0x1bd   : > { %v1594_v39 = vpop.f32.mrf.mxu0  ;;  %v5255_v44 = vsel %vm8852_vm14, %v5253_v43, %v10883_v23  ;;  %7622 = vmatmul.mubr.bf16.gmra.mxu0 %v7976_v38  ;;  %v5261_v28 = vrot.slane %v8016_v42, 5  ;;  %v5282_v49 = vrot.slane %v9770_v54, 5  ;;  %v5265_v38 = vrot.slane %v9710_v33, 5  ;;  %v5183_v43 = vld [vmem:[#allocation2 + $0x54] sm:$0xe] }
 0x1be   : > { %v10011_v17 = vadd.f32 %v1899_v31, %v1594_v39  ;;  %v6832_v12 = vcombine.low %v10005_v13, %v5255_v44  ;;  %v10018_v53 = vpop.f32.mrf.mxu1  ;;  %v10022_v31 = vadd.f32 %v9586_v25, %v9626_v19  ;;  %7689 = vmatprep.mubr.bf16.mxu0 %v6831_v46  ;;  %7670 = vmatmul.mubr.bf16.gmra.mxu1 %v6806_v55  ;;  %v5260_v19 = vrot.slane %v5258_v41, 4  ;;  %v8017_v46 = vld [vmem:[%s8438_s14 + $0x8] sm:$0xf]  ;;  %v8018_v33 = vld [vmem:[%s8438_s14 + $0xc] sm:$0xf] }
 0x1bf   : > { %v7336_v15 = vpop.f32.mrf.mxu0  ;;  %v5259_v25 = vsel %vm8852_vm14, %v6817_v50, %v5258_v41  ;;  %v6818_v40 = vrot.slane %v5181_v37, 9  ;;  %7737 = vmatprep.mubr.bf16.mxu1 %v6887_v34  ;;  %v6888_v13 = vcombine.low %v8017_v46, %v8018_v33  ;;  %v5267_v52 = vrot.slane %v5265_v38, 4  ;;  %v5184_v34 = vld [vmem:[#allocation2 + $0x60] sm:$0xe]  ;;  %v10046_v48 = vld [vmem:[%s8438_s14 + $0x18] sm:$0xf] }
 0x1c0   : > { %v10025_v36 = vadd.f32 %v7384_v56, %v7336_v15  ;;  %v10029_v29 = vpop.f32.mrf.mxu1  ;;  %v5272_v23 = vrot.slane %v9729_v32, 5  ;;  %v5262_v55 = vsel %vm8852_vm14, %v5260_v19, %v5261_v28  ;;  %v8019_v15 = vld [vmem:[%s8438_s14 + $0x10] sm:$0xf]  ;;  %v6820_v37 = vrot.slane %v5183_v43, 9  ;;  %v10049_v46 = vld [vmem:[%s8438_s14 + $0x1c] sm:$0xf] }
 0x1c1   : > { %v1597_v39 = vpop.f32.mrf.mxu0  ;;  %v6889_v50 = vcombine.low %v8019_v15, %v8020_v7  ;;  %v5275_v28 = vrot.slane %v9731_v4, 5  ;;  %v5266_v33 = vsel %vm8852_vm14, %v6818_v40, %v5265_v38  ;;  %v6821_v4 = vrot.slane %v5184_v34, 9  ;;  %v5185_v32 = vld [vmem:[#allocation2 + $0x6c] sm:$0xe] }
 0x1c2   : > { %v10033_v56 = vadd.f32 %v1902_v51, %v1597_v39  ;;  %v10042_v41 = vpop.f32.mrf.mxu1  ;;  %v6819_v51 = vrot.slane %v5182_v8, 9  ;;  %v6833_v39 = vcombine.low %v5259_v25, %v5262_v55  ;;  %v10884_v8 = vrot.slane %v9723_v0, 5 }
 0x1c3   : > { %v7403_v44 = vpop.f32.mrf.mxu0  ;;  %v5274_v25 = vrot.slane %v5272_v23, 4  ;;  %v5286_v7 = vrot.slane %v9784_v22, 5  ;;  %v5293_v54 = vrot.slane %v9816_v26, 5 }
 0x1c4   : > { %v2369_v42 = vadd.f32 %v7403_v44, %v9666_v2  ;;  %v5269_v43 = vsel %vm8852_vm14, %v5267_v52, %v10884_v8  ;;  %v10060_v2 = vpop.f32.mrf.mxu1  ;;  %v5279_v44 = vrot.slane %v9753_v18, 5  ;;  %v5273_v40 = vsel %vm8852_vm14, %v6819_v51, %v5272_v23 }
 0x1c5   : > { %v2240_v19 = vpop.f32.mrf.mxu0  ;;  %7690 = vmatmul.mubr.bf16.vlgmr.msra.gmra.mxu0 %v6832_v12  ;;  %v6834_v12 = vcombine.low %v5266_v33, %v5269_v43  ;;  %v5276_v34 = vsel %vm8852_vm14, %v5274_v25, %v5275_v28 }
 0x1c6   : > { %v10064_v55 = vadd.f32 %v9989_v27, %v2369_v42  ;;  %v2367_v15 = vadd.f32 %v2240_v19, %v9689_v14  ;;  %v10068_v0 = vpop.f32.mrf.mxu1  ;;  %v10074_v52 = vsel %vm8852_vm14, %v6820_v37, %v5279_v44  ;;  %v5281_v18 = vrot.slane %v5279_v44, 4  ;;  %7693 = vmatprep.mubr.bf16.mxu0 %v6833_v39  ;;  %v5186_v42 = vld [vmem:[#allocation2 + $0x78] sm:$0xe]  ;;  %7738 = vmatmul.mubr.bf16.vlgmr.msra.gmra.mxu1 %v6888_v13 }
 0x1c7   : > { %v7404_v38 = vpop.f32.mrf.mxu0  ;;  %v5289_v27 = vrot.slane %v9794_v10, 5  ;;  %v6822_v37 = vrot.slane %v5185_v32, 9  ;;  %7741 = vmatprep.mubr.bf16.mxu1 %v6889_v50  ;;  %v6823_v32 = vrot.slane %v5186_v42, 9 }
 0x1c8   : > { %v10078_v14 = vadd.f32 %v10007_v59, %v2367_v15  ;;  %v2370_v22 = vadd.f32 %v7404_v38, %v9693_v16  ;;  %v10083_v51 = vpop.f32.mrf.mxu1  ;;  %v10089_v10 = vsel %vm8852_vm14, %v5281_v18, %v5282_v49  ;;  %v10093_v59 = vsel %vm8852_vm14, %v6821_v4, %v5286_v7  ;;  %v8024_v18 = vld [vmem:[%s8438_s14 + $0x24] sm:$0xf] }
 0x1c9   : > { %v2243_v23 = vpop.f32.mrf.mxu0  ;;  %v5288_v16 = vrot.slane %v5286_v7, 4  ;;  %v6836_v28 = vcombine.low %v10074_v52, %v10089_v10  ;;  %v6835_v49 = vcombine.low %v5273_v40, %v5276_v34  ;;  %v10117_v25 = vsel %vm8852_vm14, %v6822_v37, %v5293_v54  ;;  %v8023_v40 = vld [vmem:[%s8438_s14 + $0x20] sm:$0xf]  ;;  %v5188_v34 = vld [vmem:[#allocation2 + $0x90] sm:$0xe] }
 0x1ca   : > { %v10096_v39 = vadd.f32 %v10018_v53, %v2370_v22  ;;  %v2368_v13 = vadd.f32 %v2243_v23, %v9838_v62  ;;  %v10102_v33 = vpop.f32.mrf.mxu1  ;;  %v5300_v53 = vrot.slane %v9830_v3, 5  ;;  %v5187_v62 = vld [vmem:[#allocation2 + $0x84] sm:$0xe]  ;;  %v5295_v4 = vrot.slane %v5293_v54, 4 }
 0x1cb   : > { %v7407_v19 = vpop.f32.mrf.mxu0  ;;  %v10106_v8 = vsel %vm8852_vm14, %v5288_v16, %v5289_v27  ;;  %v6891_v27 = vcombine.low %v8023_v40, %v8024_v18  ;;  %v6824_v22 = vrot.slane %v5187_v62, 9  ;;  %v10885_v16 = vrot.slane %v9818_v35, 5 }
 0x1cc   : > { %v10110_v50 = vadd.f32 %v10029_v29, %v2368_v13  ;;  %v2373_v43 = vadd.f32 %v7407_v19, %v9721_v61  ;;  %v6837_v26 = vcombine.low %v10093_v59, %v10106_v8  ;;  %v10119_v15 = vpop.f32.mrf.mxu1  ;;  %v10123_v3 = vsel %vm8852_vm14, %v6823_v32, %v5300_v53  ;;  %v5189_v32 = vld [vmem:[#allocation2 + $0x9c] sm:$0xe] }
 0x1cd   : > { %v2256_v44 = vpop.f32.mrf.mxu0  ;;  %v5302_v7 = vrot.slane %v5300_v53, 4  ;;  %v5303_v29 = vrot.slane %v9850_v45, 5  ;;  %7694 = vmatmul.mubr.bf16.gmra.mxu0 %v6834_v12  ;;  %v10136_v37 = vsel %vm8852_vm14, %v5295_v4, %v10885_v16  ;;  %v10886_v12 = vld [vmem:[#allocation20_spill] sm:$0xff]  ;;  %v8025_v4 = vld [vmem:[%s8438_s14 + $0x28] sm:$0xf]  ;;  %v5317_v18 = vrot.slane %v9897_v57, 5 }
 0x1ce   : > { %v10127_v61 = vadd.f32 %v10042_v41, %v2373_v43  ;;  %v2371_v38 = vadd.f32 %v2256_v44, %v9746_v63  ;;  %v7460_v23 = vpop.f32.mrf.mxu1  ;;  %v5307_v63 = vrot.slane %v9861_v11, 5  ;;  %v5310_v41 = vrot.slane %v9869_v1, 5  ;;  %7697 = vmatprep.mubr.bf16.mxu0 %v6835_v49 }
 0x1cf   : > { %v7408_v42 = vpop.f32.mrf.mxu0  ;;  %v10140_v45 = vsel %vm8852_vm14, %v5302_v7, %v5303_v29  ;;  %v6838_v35 = vcombine.low %v10117_v25, %v10136_v37  ;;  %v10887_v11 = vcombine.low %v10046_v48, %v10049_v46  ;;  %v6825_v43 = vrot.slane %v5188_v34, 9  ;;  %v8026_v7 = vld [vmem:[%s8438_s14 + $0x2c] sm:$0xf] }
 0x1d0   : > { %v10145_v13 = vadd.f32 %v10060_v2, %v2371_v38  ;;  %v2374_v54 = vadd.f32 %v7408_v42, %v10886_v12  ;;  %v6839_v19 = vcombine.low %v10123_v3, %v10140_v45  ;;  %v2661_v53 = vpop.f32.mrf.mxu1  ;;  %v10157_v2 = vsel %vm8852_vm14, %v6824_v22, %v5307_v63  ;;  %v5190_v3 = vld [vmem:[#allocation2 + $0xa8] sm:$0xe] }
 0x1d1   : > { %7742 = vmatmul.mubr.bf16.gmra.mxu1 %v10887_v11  ;;  %v2259_v1 = vpop.f32.mrf.mxu0  ;;  %v5309_v62 = vrot.slane %v5307_v63, 4  ;;  %v6892_v29 = vcombine.low %v8025_v4, %v8026_v7  ;;  %v5314_v48 = vrot.slane %v9874_v58, 5  ;;  %v5321_v22 = vrot.slane %v9906_v47, 5  ;;  %v8027_v11 = vld [vmem:[%s8438_s14 + $0x30] sm:$0xf]  ;;  %v10891_v4 = vld [vmem:[#allocation17_spill] sm:$0xff] }
 0x1d2   : > { %v10160_v49 = vadd.f32 %v10068_v0, %v2374_v54  ;;  %v2372_v44 = vadd.f32 %v2259_v1, %v10022_v31  ;;  %7745 = vmatprep.mubr.bf16.mxu1 %v6891_v27  ;;  %v7463_v38 = vpop.f32.mrf.mxu1  ;;  %v6826_v0 = vrot.slane %v5189_v32, 9  ;;  %v10888_v27 = vld [vmem:[#allocation21_spill] sm:$0xff]  ;;  %v10889_v54 = vld [vmem:[#allocation23_spill] sm:$0xff]  ;;  %v8028_v1 = vld [vmem:[%s8438_s14 + $0x34] sm:$0xf] }
 0x1d3   : > { %v7411_v46 = vpop.f32.mrf.mxu0  ;;  %v10168_v40 = vsel %vm8852_vm14, %v5309_v62, %v5310_v41  ;;  %v10180_v42 = vsel %vm8852_vm14, %v6825_v43, %v5314_v48  ;;  %v5316_v41 = vrot.slane %v5314_v48, 4  ;;  %v5323_v47 = vrot.slane %v5321_v22, 4  ;;  %v5191_v43 = vld [vmem:[#allocation2 + $0xb4] sm:$0xe] }
 0x1d4   : > { %v10173_v31 = vadd.f32 %v10083_v51, %v2372_v44  ;;  %v2377_v34 = vadd.f32 %v7411_v46, %v10888_v27  ;;  %v6840_v58 = vcombine.low %v10157_v2, %v10168_v40  ;;  %v2674_v63 = vpop.f32.mrf.mxu1  ;;  %v10184_v57 = vsel %vm8852_vm14, %v6826_v0, %v5321_v22  ;;  %v10890_v44 = vld [vmem:[#allocation18_spill] sm:$0xff]  ;;  %v10892_v22 = vld [vmem:[#allocation24_spill] sm:$0xff] }
 0x1d5   : > { %v2272_v16 = vpop.f32.mrf.mxu0  ;;  %v5324_v51 = vrot.slane %v9913_v21, 5  ;;  %v6893_v62 = vcombine.low %v8027_v11, %v8028_v1  ;;  %v1823_v7 = vadd.f32 %v10891_v4, %v10890_v44  ;;  %7698 = vmatmul.mubr.bf16.gmra.mxu0 %v6836_v28  ;;  %v10200_v21 = vsel %vm8852_vm14, %v5316_v41, %v5317_v18  ;;  %v8030_v11 = vld [vmem:[%s8438_s14 + $0x3c] sm:$0xf]  ;;  %v10894_v4 = vld [vmem:[#allocation26_spill] sm:$0xff] }
 0x1d6   : > { %v10188_v12 = vadd.f32 %v10102_v33, %v2377_v34  ;;  %v2375_v32 = vadd.f32 %v2272_v16, %v10889_v54  ;;  %v7464_v46 = vpop.f32.mrf.mxu1  ;;  %7701 = vmatprep.mubr.bf16.mxu0 %v6837_v26  ;;  %v6841_v52 = vcombine.low %v10180_v42, %v10200_v21  ;;  %v6828_v34 = vrot.slane %v5191_v43, 9  ;;  %v10893_v54 = vld [vmem:[#allocation25_spill] sm:$0xff]  ;;  %v10902_v40 = vld [vmem:[#allocation38_spill] sm:$0xff] }
 0x1d7   : > { %v7412_v48 = vpop.f32.mrf.mxu0  ;;  %v10204_v33 = vsel %vm8852_vm14, %v5323_v47, %v5324_v51  ;;  %v5335_v41 = vrot.slane %v9941_v24, 5  ;;  %v5338_v26 = vrot.slane %v9947_v5, 5  ;;  %v5193_v47 = vld [vmem:[#allocation2 + $0xcc] sm:$0xe]  ;;  %v8031_v5 = vld [vmem:[%s8438_s14 + $0x40] sm:$0xf] }
 0x1d8   : > { %v10207_v0 = vadd.f32 %v10119_v15, %v2375_v32  ;;  %v2378_v27 = vadd.f32 %v7412_v48, %v10892_v22  ;;  %v6842_v10 = vcombine.low %v10184_v57, %v10204_v33  ;;  %v2677_v18 = vpop.f32.mrf.mxu1  ;;  %v8029_v32 = vld [vmem:[%s8438_s14 + $0x38] sm:$0xf]  ;;  %v8032_v48 = vld [vmem:[%s8438_s14 + $0x44] sm:$0xf]  ;;  %v6830_v22 = vrot.slane %v5193_v47, 9 }
 0x1d9   : > { %7746 = vmatmul.mubr.bf16.gmra.mxu1 %v6892_v29  ;;  %v2275_v28 = vpop.f32.mrf.mxu0  ;;  %v6894_v1 = vcombine.low %v8029_v32, %v8030_v11  ;;  %v5337_v24 = vrot.slane %v5335_v41, 4  ;;  %v10897_v47 = vld [vmem:[#allocation27_spill] sm:$0xff]  ;;  %v5192_v42 = vld [vmem:[#allocation2 + $0xc0] sm:$0xe]  ;;  %v10908_v33 = vld [vmem:[#allocation36_spill] sm:$0xff] }
 0x1da   : > { %v10217_v15 = vadd.f32 %v7460_v23, %v2378_v27  ;;  %v2376_v16 = vadd.f32 %v2275_v28, %v1823_v7  ;;  %7749 = vmatprep.mubr.bf16.mxu1 %v6893_v62  ;;  %v7467_v8 = vpop.f32.mrf.mxu1  ;;  %v10228_v62 = vsel %vm8852_vm14, %v6828_v34, %v5335_v41  ;;  %v5349_v34 = vrot.slane %v9971_v9, 5  ;;  %v10895_v41 = vld [vmem:[#allocation22_spill] sm:$0xff] }
 0x1db   : > { %v7415_v59 = vpop.f32.mrf.mxu0 }
 0x1dc   : > { %v10221_v51 = vadd.f32 %v2661_v53, %v2376_v16  ;;  %v2381_v29 = vadd.f32 %v7415_v59, %v10893_v54  ;;  %v2690_v43 = vpop.f32.mrf.mxu1  ;;  %v6895_v53 = vcombine.low %v8031_v5, %v8032_v48  ;;  %v10240_v16 = vsel %vm8852_vm14, %v5337_v24, %v5338_v26  ;;  %v10896_v59 = vld [vmem:[#allocation19_spill] sm:$0xff] }
 0x1dd   : > { %v2288_v23 = vpop.f32.mrf.mxu0  ;;  %7702 = vmatmul.mubr.bf16.gmra.mxu0 %v6838_v35  ;;  %v1839_v54 = vadd.f32 %v10896_v59, %v10895_v41  ;;  %v6844_v25 = vcombine.low %v10228_v62, %v10240_v16  ;;  %v10257_v35 = vsel %vm8852_vm14, %v6830_v22, %v5349_v34  ;;  %v6827_v22 = vrot.slane %v5190_v3, 9 }
 0x1de   : > { %v10230_v44 = vadd.f32 %v7463_v38, %v2381_v29  ;;  %v2379_v7 = vadd.f32 %v2288_v23, %v10894_v4  ;;  %v7468_v28 = vpop.f32.mrf.mxu1  ;;  %v5352_v38 = vrot.slane %v9977_v30, 5  ;;  %7705 = vmatprep.mubr.bf16.mxu0 %v6839_v19  ;;  %v5328_v30 = vrot.slane %v9927_v20, 5  ;;  %v10898_v20 = vld [vmem:[#allocation28_spill] sm:$0xff] }
 0x1df   : > { %v7416_v27 = vpop.f32.mrf.mxu0 }
 0x1e0   : > { %v10246_v29 = vadd.f32 %v2674_v63, %v2379_v7  ;;  %v2382_v32 = vadd.f32 %v7416_v27, %v10897_v47  ;;  %v2693_v9 = vpop.f32.mrf.mxu1  ;;  %v5351_v63 = vrot.slane %v5349_v34, 4  ;;  %v8034_v7 = vld [vmem:[%s8438_s14 + $0x4c] sm:$0xf]  ;;  %v5330_v27 = vrot.slane %v5328_v30, 4  ;;  %v10899_v34 = vld [vmem:[#allocation35_spill] sm:$0xff] }
 0x1e1   : > { %7750 = vmatmul.mubr.bf16.gmra.mxu1 %v6894_v1  ;;  %v2291_v37 = vpop.f32.mrf.mxu0  ;;  %v5331_v41 = vrot.slane %v10899_v34, 5  ;;  %v8036_v47 = vld [vmem:[%s8438_s14 + $0x54] sm:$0xf] }
 0x1e2   : > { %v10259_v26 = vadd.f32 %v7464_v46, %v2382_v32  ;;  %v2380_v11 = vadd.f32 %v2291_v37, %v1839_v54  ;;  %7753 = vmatprep.mubr.bf16.mxu1 %v6895_v53  ;;  %v7471_v19 = vpop.f32.mrf.mxu1  ;;  %v10263_v1 = vsel %vm8852_vm14, %v5351_v63, %v5352_v38  ;;  %v8033_v46 = vld [vmem:[%s8438_s14 + $0x48] sm:$0xf] }
 0x1e3   : > { %v7419_v45 = vpop.f32.mrf.mxu0  ;;  %v6846_v4 = vcombine.low %v10257_v35, %v10263_v1  ;;  %v6896_v5 = vcombine.low %v8033_v46, %v8034_v7  ;;  %v10900_v38 = vld [vmem:[#allocation29_spill] sm:$0xff]  ;;  %v5332_v2 = vsel %vm8852_vm14, %v5330_v27, %v5331_v41  ;;  %v10903_v46 = vld [vmem:[#allocation31_spill] sm:$0xff] }
 0x1e4   : > { %v10265_v23 = vadd.f32 %v2677_v18, %v2380_v11  ;;  %v2385_v24 = vadd.f32 %v7419_v45, %v10898_v20  ;;  %v2706_v53 = vpop.f32.mrf.mxu1  ;;  %v8035_v18 = vld [vmem:[%s8438_s14 + $0x50] sm:$0xf] }
 0x1e5   : > { %v2304_v48 = vpop.f32.mrf.mxu0  ;;  %v6897_v32 = vcombine.low %v8035_v18, %v8036_v47  ;;  %7706 = vmatmul.mubr.bf16.gmra.mxu0 %v6840_v58  ;;  %v10901_v45 = vld [vmem:[#allocation30_spill] sm:$0xff]  ;;  %v5342_v58 = vrot.slane %v10902_v40, 5  ;;  %v8040_v40 = vld [vmem:[%s8438_s14 + $0x64] sm:$0xf] }
 0x1e6   : > { %v10273_v59 = vadd.f32 %v7467_v8, %v2385_v24  ;;  %v2383_v54 = vadd.f32 %v2304_v48, %v10900_v38  ;;  %v7472_v63 = vpop.f32.mrf.mxu1  ;;  %7709 = vmatprep.mubr.bf16.mxu0 %v6841_v52  ;;  %v5329_v24 = vsel %vm8852_vm14, %v6827_v22, %v5328_v30  ;;  %v10904_v48 = vld [vmem:[#allocation32_spill] sm:$0xff]  ;;  %v8037_v22 = vld [vmem:[%s8438_s14 + $0x58] sm:$0xf]  ;;  %v8038_v38 = vld [vmem:[%s8438_s14 + $0x5c] sm:$0xf] }
 0x1e7   : > { %v7420_v37 = vpop.f32.mrf.mxu0  ;;  %v6843_v30 = vcombine.low %v5329_v24, %v5332_v2  ;;  %v6898_v27 = vcombine.low %v8037_v22, %v8038_v38  ;;  %v5344_v18 = vrot.slane %v5342_v58, 4  ;;  %v10905_v47 = vld [vmem:[#allocation42_spill] sm:$0xff] }
 0x1e8   : > { %v10281_v11 = vadd.f32 %v2690_v43, %v2383_v54  ;;  %v2386_v3 = vadd.f32 %v7420_v37, %v10901_v45  ;;  %v2709_v20 = vpop.f32.mrf.mxu1  ;;  %v5345_v37 = vrot.slane %v10905_v47, 5  ;;  %v10906_v45 = vld [vmem:[#allocation33_spill] sm:$0xff] }
 0x1e9   : > { %7754 = vmatmul.mubr.bf16.gmra.mxu1 %v6896_v5  ;;  %v2307_v8 = vpop.f32.mrf.mxu0  ;;  %v8041_v47 = vld [vmem:[%s8438_s14 + $0x68] sm:$0xf] }
 0x1ea   : > { %v10292_v43 = vadd.f32 %v7468_v28, %v2386_v3  ;;  %v2384_v7 = vadd.f32 %v2307_v8, %v10903_v46  ;;  %7757 = vmatprep.mubr.bf16.mxu1 %v6897_v32  ;;  %v7475_v52 = vpop.f32.mrf.mxu1  ;;  %v6829_v28 = vrot.slane %v5192_v42, 9  ;;  %v8039_v8 = vld [vmem:[%s8438_s14 + $0x60] sm:$0xf] }
 0x1eb   : > { %v7423_v21 = vpop.f32.mrf.mxu0 }
 0x1ec   : > { %v10295_v5 = vadd.f32 %v2693_v9, %v2384_v7  ;;  %v2389_v34 = vadd.f32 %v7423_v21, %v10904_v48  ;;  %v2722_v54 = vpop.f32.mrf.mxu1  ;;  %v6899_v9 = vcombine.low %v8039_v8, %v8040_v40  ;;  %v10907_v7 = vld [vmem:[#allocation34_spill] sm:$0xff]  ;;  %v5343_v48 = vsel %vm8852_vm14, %v6829_v28, %v5342_v58 }
 0x1ed   : > { %v2320_v41 = vpop.f32.mrf.mxu0  ;;  %7710 = vmatmul.mubr.bf16.gmra.mxu0 %v6842_v10  ;;  %v8044_v8 = vld [vmem:[%s8438_s14 + $0x74] sm:$0xf] }
 0x1ee   : > { %v10301_v32 = vadd.f32 %v7471_v19, %v2389_v34  ;;  %v2387_v3 = vadd.f32 %v2320_v41, %v10906_v45  ;;  %v7476_v2 = vpop.f32.mrf.mxu1  ;;  %7713 = vmatprep.mubr.bf16.mxu0 %v6843_v30  ;;  %v5346_v34 = vsel %vm8852_vm14, %v5344_v18, %v5345_v37  ;;  %v10909_v30 = vld [vmem:[#allocation37_spill] sm:$0xff] }
 0x1ef   : > { %v7424_v24 = vpop.f32.mrf.mxu0  ;;  %v6845_v41 = vcombine.low %v5343_v48, %v5346_v34  ;;  %v8042_v45 = vld [vmem:[%s8438_s14 + $0x6c] sm:$0xf] }
 0x1f0   : > { %v10309_v46 = vadd.f32 %v2706_v53, %v2387_v3  ;;  %v2390_v42 = vadd.f32 %v7424_v24, %v10907_v7  ;;  %v2725_v21 = vpop.f32.mrf.mxu1  ;;  %v6900_v58 = vcombine.low %v8041_v47, %v8042_v45  ;;  %v8043_v3 = vld [vmem:[%s8438_s14 + $0x70] sm:$0xf]  ;;  %v10911_v7 = vld [vmem:[#allocation40_spill] sm:$0xff]  ;;  %v10912_v34 = vld [vmem:[#allocation41_spill] sm:$0xff] }
 0x1f1   : > { %7758 = vmatmul.mubr.bf16.gmra.mxu1 %v6898_v27  ;;  %v2323_v19 = vpop.f32.mrf.mxu0  ;;  %v6901_v40 = vcombine.low %v8043_v3, %v8044_v8 }
 0x1f2   : > { %v10316_v57 = vadd.f32 %v7472_v63, %v2390_v42  ;;  %v2388_v10 = vadd.f32 %v2323_v19, %v10908_v33  ;;  %7761 = vmatprep.mubr.bf16.mxu1 %v6899_v9  ;;  %v7479_v22 = vpop.f32.mrf.mxu1  ;;  %v10910_v63 = vld [vmem:[#allocation39_spill] sm:$0xff] }
 0x1f3   : > { %v7427_v53 = vpop.f32.mrf.mxu0 }
 0x1f4   : > { %v10319_v38 = vadd.f32 %v2709_v20, %v2388_v10  ;;  %v2393_v27 = vadd.f32 %v7427_v53, %v10909_v30  ;;  %v2738_v6 = vpop.f32.mrf.mxu1  ;;  %v8045_v53 = vld [vmem:[%s8438_s14 + $0x78] sm:$0xf] }
 0x1f5   : > { %v2336_v28 = vpop.f32.mrf.mxu0  ;;  %7714 = vmatmul.mubr.bf16.gmra.mxu0 %v6844_v25 }
 0x1f6   : > { %v10324_v18 = vadd.f32 %v7475_v52, %v2393_v27  ;;  %v2391_v37 = vadd.f32 %v2336_v28, %v10910_v63  ;;  %v7480_v9 = vpop.f32.mrf.mxu1  ;;  %7717 = vmatprep.mubr.bf16.mxu0 %v6845_v41 }
 0x1f7   : > { %v7428_v20 = vpop.f32.mrf.mxu0 }
 0x1f8   : > { %v10332_v24 = vadd.f32 %v2722_v54, %v2391_v37  ;;  %v2394_v42 = vadd.f32 %v7428_v20, %v10911_v7  ;;  %v2741_v19 = vpop.f32.mrf.mxu1  ;;  %v8046_v54 = vld [vmem:[%s8438_s14 + $0x7c] sm:$0xf] }
 0x1f9   : > { %7762 = vmatmul.mubr.bf16.gmra.mxu1 %v6900_v58  ;;  %v2339_v52 = vpop.f32.mrf.mxu0  ;;  %v6902_v30 = vcombine.low %v8045_v53, %v8046_v54 }
 0x1fa   : > { %v10335_v48 = vadd.f32 %v7476_v2, %v2394_v42  ;;  %v2392_v33 = vadd.f32 %v2339_v52, %v10912_v34  ;;  %7765 = vmatprep.mubr.bf16.mxu1 %v6901_v40  ;;  %v7547_v62 = vpop.f32.mrf.mxu1 }
 0x1fb   : > { %v7431_v10 = vpop.f32.mrf.mxu0 }
 0x1fc   : > { %v10338_v16 = vadd.f32 %v2725_v21, %v2392_v33  ;;  %v2397_v25 = vadd.f32 %v7431_v10, %v9991_v60  ;;  %v3878_v47 = vpop.f32.mrf.mxu1 }
 0x1fd   : > { %v2352_v27 = vpop.f32.mrf.mxu0  ;;  %7718 = vmatmul.mubr.bf16.gmra.mxu0 %v6846_v4 }
 0x1fe   : > { %v10343_v41 = vadd.f32 %v7479_v22, %v2397_v25  ;;  %v2395_v45 = vadd.f32 %v2352_v27, %v10011_v17  ;;  %v7548_v58 = vpop.f32.mrf.mxu1 }
 0x1ff   : > { %v7432_v2 = vpop.f32.mrf.mxu0 }
 0x200   : > { %v10349_v28 = vadd.f32 %v2738_v6, %v2395_v45  ;;  %v2398_v21 = vadd.f32 %v7432_v2, %v10025_v36  ;;  %v3881_v63 = vpop.f32.mrf.mxu1 }
 0x201   : > { %7766 = vmatmul.mubr.bf16.gmra.mxu1 %v6902_v30  ;;  %v2355_v60 = vpop.f32.mrf.mxu0 }
 0x202   : > { %v10352_v37 = vadd.f32 %v7480_v9, %v2398_v21  ;;  %v2396_v22 = vadd.f32 %v2355_v60, %v10033_v56  ;;  %v7551_v8 = vpop.f32.mrf.mxu1 }
 0x203   : > { %v7499_v3 = vpop.f32.mrf.mxu0 }
 0x204   : > { %v10355_v17 = vadd.f32 %v2741_v19, %v2396_v22  ;;  %v3509_v35 = vadd.f32 %v7499_v3, %v10064_v55  ;;  %v3894_v4 = vpop.f32.mrf.mxu1 }
 0x205   : > { %v3380_v1 = vpop.f32.mrf.mxu0 }
 0x206   : > { %v10358_v40 = vadd.f32 %v7547_v62, %v3509_v35  ;;  %v3507_v6 = vadd.f32 %v3380_v1, %v10078_v14  ;;  %v7552_v20 = vpop.f32.mrf.mxu1 }
 0x207   : > { %v7500_v36 = vpop.f32.mrf.mxu0 }
 0x208   : > { %v10361_v7 = vadd.f32 %v3878_v47, %v3507_v6  ;;  %v3510_v9 = vadd.f32 %v7500_v36, %v10096_v39  ;;  %v3897_v56 = vpop.f32.mrf.mxu1 }
 0x209   : > { %v3383_v42 = vpop.f32.mrf.mxu0 }
 0x20a   : > { %v10364_v52 = vadd.f32 %v7548_v58, %v3510_v9  ;;  %v3508_v19 = vadd.f32 %v3383_v42, %v10110_v50  ;;  %v7555_v55 = vpop.f32.mrf.mxu1 }
 0x20b   : > { %v7503_v34 = vpop.f32.mrf.mxu0 }
 0x20c   : > { %v10367_v33 = vadd.f32 %v3881_v63, %v3508_v19  ;;  %v3513_v10 = vadd.f32 %v7503_v34, %v10127_v61  ;;  %v3910_v14 = vpop.f32.mrf.mxu1 }
 0x20d   : > { %v3396_v62 = vpop.f32.mrf.mxu0 }
 0x20e   : > { %v10370_v25 = vadd.f32 %v7551_v8, %v3513_v10  ;;  %v3511_v53 = vadd.f32 %v3396_v62, %v10145_v13  ;;  %v7556_v39 = vpop.f32.mrf.mxu1 }
 0x20f   : > { %v7504_v54 = vpop.f32.mrf.mxu0 }
 0x210   : > { %v10373_v30 = vadd.f32 %v3894_v4, %v3511_v53  ;;  %v3514_v27 = vadd.f32 %v7504_v54, %v10160_v49  ;;  %v3913_v50 = vpop.f32.mrf.mxu1 }
 0x211   : > { %v3399_v47 = vpop.f32.mrf.mxu0 }
 0x212   : > { %v10376_v45 = vadd.f32 %v7552_v20, %v3514_v27  ;;  %v3512_v2 = vadd.f32 %v3399_v47, %v10173_v31  ;;  %v7559_v61 = vpop.f32.mrf.mxu1 }
 0x213   : > { %v7507_v58 = vpop.f32.mrf.mxu0 }
 0x214   : > { %v10379_v21 = vadd.f32 %v3897_v56, %v3512_v2  ;;  %v3517_v60 = vadd.f32 %v7507_v58, %v10188_v12  ;;  %v3926_v13 = vpop.f32.mrf.mxu1 }
 0x215   : > { %v3412_v63 = vpop.f32.mrf.mxu0 }
 0x216   : > { %v10382_v22 = vadd.f32 %v7555_v55, %v3517_v60  ;;  %v3515_v3 = vadd.f32 %v3412_v63, %v10207_v0  ;;  %v7560_v49 = vpop.f32.mrf.mxu1 }
 0x217   : > { %v7508_v8 = vpop.f32.mrf.mxu0 }
 0x218   : > { %v10385_v35 = vadd.f32 %v3910_v14, %v3515_v3  ;;  %v3518_v1 = vadd.f32 %v7508_v8, %v10217_v15  ;;  %v3929_v31 = vpop.f32.mrf.mxu1 }
 0x219   : > { %v3415_v4 = vpop.f32.mrf.mxu0 }
 0x21a   : > { %v10388_v6 = vadd.f32 %v7556_v39, %v3518_v1  ;;  %v3516_v36 = vadd.f32 %v3415_v4, %v10221_v51  ;;  %v7563_v12 = vpop.f32.mrf.mxu1 }
 0x21b   : > { %v7511_v20 = vpop.f32.mrf.mxu0 }
 0x21c   : > { %v10391_v9 = vadd.f32 %v3913_v50, %v3516_v36  ;;  %v3521_v42 = vadd.f32 %v7511_v20, %v10230_v44  ;;  %v3942_v0 = vpop.f32.mrf.mxu1 }
 0x21d   : > { %v3428_v56 = vpop.f32.mrf.mxu0 }
 0x21e   : > { %v10394_v19 = vadd.f32 %v7559_v61, %v3521_v42  ;;  %v3519_v34 = vadd.f32 %v3428_v56, %v10246_v29  ;;  %v7564_v15 = vpop.f32.mrf.mxu1 }
 0x21f   : > { %v7512_v55 = vpop.f32.mrf.mxu0 }
 0x220   : > { %v10397_v10 = vadd.f32 %v3926_v13, %v3519_v34  ;;  %v3522_v62 = vadd.f32 %v7512_v55, %v10259_v26  ;;  %v3945_v51 = vpop.f32.mrf.mxu1 }
 0x221   : > { %v3431_v14 = vpop.f32.mrf.mxu0 }
 0x222   : > { %v10400_v53 = vadd.f32 %v7560_v49, %v3522_v62  ;;  %v3520_v54 = vadd.f32 %v3431_v14, %v10265_v23  ;;  %v7567_v44 = vpop.f32.mrf.mxu1 }
 0x223   : > { %v7515_v39 = vpop.f32.mrf.mxu0 }
 0x224   : > { %v10403_v27 = vadd.f32 %v3929_v31, %v3520_v54  ;;  %v3525_v47 = vadd.f32 %v7515_v39, %v10273_v59  ;;  %v3958_v29 = vpop.f32.mrf.mxu1 }
 0x225   : > { %v3444_v50 = vpop.f32.mrf.mxu0 }
 0x226   : > { %v10406_v2 = vadd.f32 %v7563_v12, %v3525_v47  ;;  %v3523_v58 = vadd.f32 %v3444_v50, %v10281_v11  ;;  %v7568_v26 = vpop.f32.mrf.mxu1 }
 0x227   : > { %v7516_v61 = vpop.f32.mrf.mxu0 }
 0x228   : > { %v10409_v60 = vadd.f32 %v3942_v0, %v3523_v58  ;;  %v3526_v63 = vadd.f32 %v7516_v61, %v10292_v43  ;;  %v3961_v23 = vpop.f32.mrf.mxu1 }
 0x229   : > { %v3447_v13 = vpop.f32.mrf.mxu0 }
 0x22a   : > { %v10412_v3 = vadd.f32 %v7564_v15, %v3526_v63  ;;  %v3524_v8 = vadd.f32 %v3447_v13, %v10295_v5  ;;  %v7571_v31 = vpop.f32.mrf.mxu1 }
 0x22b   : > { %v7519_v49 = vpop.f32.mrf.mxu0 }
 0x22c   : > { %v10415_v59 = vadd.f32 %v3945_v51, %v3524_v8  ;;  %v3529_v1 = vadd.f32 %v7519_v49, %v10301_v32  ;;  %v3974_v56 = vpop.f32.mrf.mxu1 }
 0x22d   : > { %v3460_v4 = vpop.f32.mrf.mxu0 }
 0x22e   : > { %v10418_v11 = vadd.f32 %v7567_v44, %v3529_v1  ;;  %v3527_v36 = vadd.f32 %v3460_v4, %v10309_v46  ;;  %v7572_v62 = vpop.f32.mrf.mxu1 }
 0x22f   : > { %v7520_v20 = vpop.f32.mrf.mxu0 }
 0x230   : > { %v10421_v12 = vadd.f32 %v3958_v29, %v3527_v36  ;;  %v3530_v43 = vadd.f32 %v7520_v20, %v10316_v57  ;;  %v3977_v44 = vpop.f32.mrf.mxu1 }
 0x231   : > { %v3463_v42 = vpop.f32.mrf.mxu0 }
 0x232   : > { %v10424_v0 = vadd.f32 %v7568_v26, %v3530_v43  ;;  %v3528_v5 = vadd.f32 %v3463_v42, %v10319_v38 }
 0x233   : > { %v7523_v34 = vpop.f32.mrf.mxu0 }
 0x234   : > { %v10427_v55 = vadd.f32 %v3961_v23, %v3528_v5  ;;  %v3533_v32 = vadd.f32 %v7523_v34, %v10324_v18 }
 0x235   : > { %v3476_v15 = vpop.f32.mrf.mxu0 }
 0x236   : > { %10913 = vst [vmem:[#allocation20_spill] sm:$0xff] %v10427_v55  ;;  %v10430_v14 = vadd.f32 %v7571_v31, %v3533_v32  ;;  %v3531_v46 = vadd.f32 %v3476_v15, %v10332_v24 }
 0x237   : > { %v7524_v51 = vpop.f32.mrf.mxu0 }
 0x238   : > { %v10433_v54 = vadd.f32 %v3974_v56, %v3531_v46  ;;  %v3534_v57 = vadd.f32 %v7524_v51, %v10335_v48 }
 0x239   : > { %v3479_v39 = vpop.f32.mrf.mxu0 }
 0x23a   : > { %10914 = vst [vmem:[#allocation21_spill] sm:$0xff] %v10433_v54  ;;  %v10436_v47 = vadd.f32 %v7572_v62, %v3534_v57  ;;  %v3532_v38 = vadd.f32 %v3479_v39, %v10338_v16 }
 0x23b   : > { %v7575_v18 = vpop.f32.mrf.mxu1 }
 0x23c   : > { %10915 = vst [vmem:[#allocation23_spill] sm:$0xff] %v10436_v47  ;;  %v10439_v50 = vadd.f32 %v3977_v44, %v3532_v38 }
 0x23d   : > { %v7527_v29 = vpop.f32.mrf.mxu0  ;;  %v3990_v58 = vpop.f32.mrf.mxu1 }
 0x23e   : > { %10916 = vst [vmem:[#allocation18_spill] sm:$0xff] %v10439_v50  ;;  %v3537_v61 = vadd.f32 %v7527_v29, %v10343_v41 }
 0x23f   : > { %v3492_v26 = vpop.f32.mrf.mxu0  ;;  %v7576_v24 = vpop.f32.mrf.mxu1 }
 0x240   : > { %v10442_v63 = vadd.f32 %v7575_v18, %v3537_v61  ;;  %v3535_v13 = vadd.f32 %v3492_v26, %v10349_v28 }
 0x241   : > { %v7528_v48 = vpop.f32.mrf.mxu0  ;;  %v3993_v23 = vpop.f32.mrf.mxu1 }
 0x242   : > { %v10445_v8 = vadd.f32 %v3990_v58, %v3535_v13  ;;  %v3538_v49 = vadd.f32 %v7528_v48, %v10352_v37 }
 0x243   : > { %v3495_v16 = vpop.f32.mrf.mxu0  ;;  %v7643_v1 = vpop.f32.mrf.mxu1 }
 0x244   : > { %10917 = vst [vmem:[#allocation17_spill] sm:$0xff] %v10445_v8  ;;  %v10448_v4 = vadd.f32 %v7576_v24, %v3538_v49  ;;  %v3536_v31 = vadd.f32 %v3495_v16, %v10355_v17 }
 0x245   : > { %v7595_v36 = vpop.f32.mrf.mxu0  ;;  %v5019_v41 = vpop.f32.mrf.mxu1 }
 0x246   : > { %10918 = vst [vmem:[#allocation24_spill] sm:$0xff] %v10448_v4  ;;  %v10451_v20 = vadd.f32 %v3993_v23, %v3536_v31  ;;  %v4394_v43 = vadd.f32 %v7595_v36, %v10358_v40 }
 0x247   : > { %v4265_v42 = vpop.f32.mrf.mxu0  ;;  %v10454_v28 = vpop.f32.mrf.mxu1 }
 0x248   : > { %10919 = vst [vmem:[#allocation25_spill] sm:$0xff] %v10451_v20  ;;  %v10456_v56 = vadd.f32 %v7643_v1, %v4394_v43  ;;  %v4392_v5 = vadd.f32 %v4265_v42, %v10361_v7 }
 0x249   : > { %v10459_v37 = vpop.f32.mrf.mxu0  ;;  %v10461_v34 = vpop.f32.mrf.mxu1 }
 0x24a   : > { %v10463_v32 = vadd.f32 %v5019_v41, %v4392_v5 }
 0x24b   : > { %v10465_v17 = vpop.f32.mrf.mxu0  ;;  %v7647_v15 = vpop.f32.mrf.mxu1 }
 0x24d   : > { %v7599_v62 = vpop.f32.mrf.mxu0  ;;  %v10467_v46 = vpop.f32.mrf.mxu1 }
 0x24e   : > { %v4398_v40 = vadd.f32 %v7599_v62, %v10370_v25 }
 0x24f   : > { %v10470_v51 = vpop.f32.mrf.mxu0  ;;  %v10472_v57 = vpop.f32.mrf.mxu1 }
 0x250   : > { %v10474_v39 = vadd.f32 %v7647_v15, %v4398_v40 }
 0x251   : > { %v10476_v7 = vpop.f32.mrf.mxu0  ;;  %v10478_v44 = vpop.f32.mrf.mxu1 }
 0x252   : > { %10920 = vst [vmem:[#allocation26_spill] sm:$0xff] %v10474_v39 }
 0x253   : > { %v10480_v38 = vpop.f32.mrf.mxu0  ;;  %v7651_v18 = vpop.f32.mrf.mxu1 }
 0x255   : > { %v7603_v29 = vpop.f32.mrf.mxu0  ;;  %v10482_v58 = vpop.f32.mrf.mxu1 }
 0x256   : > { %v4402_v61 = vadd.f32 %v7603_v29, %v10382_v22 }
 0x257   : > { %v10485_v26 = vpop.f32.mrf.mxu0  ;;  %v10487_v25 = vpop.f32.mrf.mxu1 }
 0x258   : > { %v10489_v24 = vadd.f32 %v7651_v18, %v4402_v61 }
 0x259   : > { %v7604_v13 = vpop.f32.mrf.mxu0  ;;  %v10491_v48 = vpop.f32.mrf.mxu1 }
 0x25a   : > { %10921 = vst [vmem:[#allocation22_spill] sm:$0xff] %v10489_v24 }
 0x25b   : > { %v4300_v23 = vpop.f32.mrf.mxu0  ;;  %v7655_v49 = vpop.f32.mrf.mxu1 }
 0x25d   : > { %v7607_v16 = vpop.f32.mrf.mxu0  ;;  %v10493_v1 = vpop.f32.mrf.mxu1 }
 0x25e   : > { %v4406_v31 = vadd.f32 %v7607_v16, %v10394_v19 }
 0x25f   : > { %v4313_v36 = vpop.f32.mrf.mxu0  ;;  %v10496_v41 = vpop.f32.mrf.mxu1 }
 0x260   : > { %v10498_v22 = vadd.f32 %v7655_v49, %v4406_v31 }
 0x261   : > { %v7608_v43 = vpop.f32.mrf.mxu0  ;;  %v10500_v42 = vpop.f32.mrf.mxu1 }
 0x262   : > { %10922 = vst [vmem:[#allocation19_spill] sm:$0xff] %v10498_v22 }
 0x263   : > { %v4316_v5 = vpop.f32.mrf.mxu0  ;;  %v7659_v15 = vpop.f32.mrf.mxu1 }
 0x265   : > { %v7611_v62 = vpop.f32.mrf.mxu0  ;;  %v10502_v40 = vpop.f32.mrf.mxu1 }
 0x266   : > { %v4410_v18 = vadd.f32 %v7611_v62, %v10406_v2 }
 0x267   : > { %v4329_v29 = vpop.f32.mrf.mxu0  ;;  %v10505_v61 = vpop.f32.mrf.mxu1 }
 0x268   : > { %v10507_v20 = vadd.f32 %v7659_v15, %v4410_v18 }
 0x269   : > { %v7612_v19 = vpop.f32.mrf.mxu0  ;;  %v10509_v16 = vpop.f32.mrf.mxu1 }
 0x26a   : > { %10923 = vst [vmem:[#allocation27_spill] sm:$0xff] %v10507_v20 }
 0x26b   : > { %v4332_v49 = vpop.f32.mrf.mxu0 }
 0x26c   : > { %v7663_v4 = vpop.f32.mrf.mxu1 }
 0x26d   : > { %v7615_v31 = vpop.f32.mrf.mxu0 }
 0x26e   : > { %v4414_v8 = vadd.f32 %v7615_v31, %v10418_v11  ;;  %v10512_v22 = vpop.f32.mrf.mxu1 }
 0x26f   : > { %v4345_v50 = vpop.f32.mrf.mxu0  ;;  %10924 = vst [vmem:[#allocation28_spill] sm:$0xff] %v10512_v22 }
 0x270   : > { %v10514_v47 = vadd.f32 %v7663_v4, %v4414_v8  ;;  %v10516_v2 = vpop.f32.mrf.mxu1 }
 0x271   : > { %v7616_v24 = vpop.f32.mrf.mxu0  ;;  %10926 = vst [vmem:[#allocation29_spill] sm:$0xff] %v10516_v2 }
 0x272   : > { %10925 = vst [vmem:[#allocation35_spill] sm:$0xff] %v10514_v47  ;;  %v10520_v15 = vpop.f32.mrf.mxu1 }
 0x273   : > { %v10518_v62 = vpop.f32.mrf.mxu0  ;;  %10928 = vst [vmem:[#allocation38_spill] sm:$0xff] %v10520_v15 }
 0x274   : > { %10927 = vst [vmem:[#allocation30_spill] sm:$0xff] %v10518_v62  ;;  %v7667_v20 = vpop.f32.mrf.mxu1 }
 0x275   : > { %v7619_v18 = vpop.f32.mrf.mxu0 }
 0x276   : > { %v4418_v54 = vadd.f32 %v7619_v18, %v10430_v14  ;;  %v10525_v39 = vpop.f32.mrf.mxu1 }
 0x277   : > { %v10523_v55 = vpop.f32.mrf.mxu0 }
 0x278   : > { %v10527_v11 = vadd.f32 %v7667_v20, %v4418_v54  ;;  %v10531_v8 = vpop.f32.mrf.mxu1  ;;  %v4395_v20 = vadd.f32 %v10459_v37, %v10364_v52 }
 0x279   : > { %v10529_v31 = vpop.f32.mrf.mxu0 }
 0x27a   : > { %10929 = vst [vmem:[#allocation31_spill] sm:$0xff] %v10527_v11  ;;  %v10535_v47 = vpop.f32.mrf.mxu1  ;;  %v4393_v11 = vadd.f32 %v10465_v17, %v10367_v33  ;;  %v5149_v52 = vadd.f32 %v10454_v28, %v4395_v20  ;;  %v4400_v33 = vadd.f32 %v10485_v26, %v10385_v35  ;;  %v4407_v28 = vadd.f32 %v7608_v43, %v10400_v53 }
 0x27b   : > { %v10533_v4 = vpop.f32.mrf.mxu0  ;;  %10931 = vst [vmem:[#allocation42_spill] sm:$0xff] %v10535_v47  ;;  %v4396_v47 = vadd.f32 %v10470_v51, %v10373_v30  ;;  %v4403_v30 = vadd.f32 %v7604_v13, %v10388_v6  ;;  %v4401_v51 = vadd.f32 %v4300_v23, %v10391_v9  ;;  %v4405_v35 = vadd.f32 %v4316_v5, %v10403_v27  ;;  %v10934_v5 = vld [vmem:[#allocation28_spill] sm:$0xff] }
 0x27c   : > { %10930 = vst [vmem:[#allocation32_spill] sm:$0xff] %v10533_v4  ;;  %v5147_v37 = vadd.f32 %v10461_v34, %v4393_v11  ;;  %v4408_v6 = vadd.f32 %v4329_v29, %v10409_v60  ;;  %v4411_v34 = vadd.f32 %v7612_v19, %v10412_v3  ;;  %v10581_v26 = vadd.f32 %v10482_v58, %v4400_v33  ;;  %v10935_v29 = vld [vmem:[#allocation29_spill] sm:$0xff] }
 0x27d   : > { %v7623_v62 = vpop.f32.mrf.mxu0  ;;  %v5150_v17 = vadd.f32 %v10467_v46, %v4396_v47  ;;  %v4409_v47 = vadd.f32 %v4332_v49, %v10415_v59  ;;  %v10588_v27 = vadd.f32 %v10491_v48, %v4401_v51  ;;  %v4412_v3 = vadd.f32 %v4345_v50, %v10421_v12 }
 0x27e   : > { %v4422_v15 = vadd.f32 %v7623_v62, %v10442_v63  ;;  %v7671_v2 = vpop.f32.mrf.mxu1  ;;  %v4397_v62 = vadd.f32 %v10480_v38, %v10379_v21  ;;  %v4415_v59 = vadd.f32 %v7616_v24, %v10424_v0  ;;  %v10596_v13 = vadd.f32 %v10496_v41, %v4407_v28 }
 0x27f   : > { %v10538_v22 = vpop.f32.mrf.mxu0  ;;  %v10602_v48 = vadd.f32 %v10502_v40, %v4408_v6  ;;  %v10608_v12 = vadd.f32 %v10509_v16, %v4409_v47  ;;  %v10616_v40 = vadd.f32 %v10934_v5, %v4412_v3  ;;  %v10936_v47 = vld [vmem:[#allocation26_spill] sm:$0xff] }
 0x280   : > { %v10540_v14 = vadd.f32 %v7671_v2, %v4422_v15  ;;  %v10542_v18 = vpop.f32.mrf.mxu1  ;;  %v4399_v2 = vadd.f32 %v10476_v7, %v10376_v45  ;;  %v4404_v45 = vadd.f32 %v4313_v36, %v10397_v10 }
 0x281   : > { %v10544_v54 = vpop.f32.mrf.mxu0 }
 0x282   : > { %10932 = vst [vmem:[#allocation33_spill] sm:$0xff] %v10540_v14  ;;  %v10552_v4 = vpop.f32.mrf.mxu1  ;;  %v5153_v38 = vadd.f32 %v10472_v57, %v4399_v2  ;;  %v10584_v57 = vadd.f32 %v10487_v25, %v4403_v30  ;;  %v10591_v60 = vadd.f32 %v10493_v1, %v4404_v45  ;;  %v10599_v25 = vadd.f32 %v10500_v42, %v4405_v35 }
 0x283   : > { %v10554_v63 = vpop.f32.mrf.mxu0  ;;  %v10605_v1 = vadd.f32 %v10505_v61, %v4411_v34  ;;  %v10619_v61 = vadd.f32 %v10935_v29, %v4415_v59 }
 0x284   : > { %v10560_v15 = vpop.f32.mrf.mxu1 }
 0x285   : > { %10933 = vst [vmem:[#allocation34_spill] sm:$0xff] %v10560_v15  ;;  %v7691_v14 = vpop.f32.mrf.mxu0  ;;  %v10572_v15 = vadd.f32 %v10478_v44, %v4397_v62 }
 0x286   : > { %v7739_v7 = vpop.f32.mrf.mxu1  ;;  %v5646_v53 = vadd.f32 %v7691_v14, %v10456_v56 }
 0x287   : > { %v5517_v21 = vpop.f32.mrf.mxu0 }
 0x288   : > { %v5644_v9 = vadd.f32 %v5517_v21, %v10463_v32  ;;  %v6138_v10 = vpop.f32.mrf.mxu1  ;;  %v5876_v14 = vmul.f32 %v5646_v53, %v5646_v53 }
 0x289   : > { %v7692_v46 = vpop.f32.mrf.mxu0  ;;  %v6303_v19 = vmul.f32 %v6138_v10, %v6138_v10 }
 0x28a   : > { %v5647_v44 = vadd.f32 %v7692_v46, %v5149_v52  ;;  %v7740_v32 = vpop.f32.mrf.mxu1  ;;  %v5874_v0 = vmul.f32 %v5644_v9, %v5644_v9  ;;  %v6305_v52 = vmul.f32 %v7739_v7, %v7739_v7 }
 0x28b   : > { %v5520_v58 = vpop.f32.mrf.mxu0  ;;  %v6306_v21 = vmul.f32 %v7740_v32, %v7740_v32 }
 0x28c   : > { %v6962_v56 = vpack.c.bf16 %v5647_v44, %v5646_v53  ;;  %v5645_v23 = vadd.f32 %v5520_v58, %v5147_v37  ;;  %v6141_v50 = vpop.f32.mrf.mxu1  ;;  %v5877_v33 = vmul.f32 %v5647_v44, %v5647_v44 }
 0x28d   : > { %v7695_v24 = vpop.f32.mrf.mxu0  ;;  %v6265_v42 = vadd.f32 %v6141_v50, %v6138_v10  ;;  %v6304_v16 = vmul.f32 %v6141_v50, %v6141_v50 }
 0x28e   : > { %7034 = vst [vmem:[%s10612_s24 + $0x8] sm:$0xff] %v6962_v56   ;;  %v6957_v36 = vpack.c.bf16 %v5645_v23, %v5644_v9  ;;  %v5836_v41 = vadd.f32 %v5645_v23, %v5644_v9  ;;  %v5875_v43 = vmul.f32 %v5645_v23, %v5645_v23  ;;  %v5650_v9 = vadd.f32 %v7695_v24, %v10936_v47  ;;  %v10937_v23 = vld [vmem:[#allocation20_spill] sm:$0xff] }
 0x28f   : > { %v5533_v11 = vpop.f32.mrf.mxu0  ;;  %v6266_v62 = vadd.f32 %v7739_v7, %v6265_v42  ;;  %v6335_v30 = vadd.f32 %v6304_v16, %v6303_v19 }
 0x290   : > { %6958 = vst [vmem:[%s10612_s24] sm:$0xff] %v6957_v36   ;;  %v5837_v20 = vadd.f32 %v5836_v41, %v5646_v53  ;;  %v5906_v2 = vadd.f32 %v5875_v43, %v5874_v0  ;;  %v5648_v37 = vadd.f32 %v5533_v11, %v5150_v17  ;;  %v10938_v17 = vld [vmem:[#allocation30_spill] sm:$0xff]  ;;  %v10939_v43 = vld [vmem:[#allocation21_spill] sm:$0xff] }
 0x291   : > { %v7743_v49 = vpop.f32.mrf.mxu1  ;;  %v7696_v45 = vpop.f32.mrf.mxu0  ;;  %v6267_v6 = vadd.f32 %v7740_v32, %v6266_v62  ;;  %v6336_v34 = vadd.f32 %v6335_v30, %v6305_v52  ;;  %v4413_v0 = vadd.f32 %v10938_v17, %v10937_v23  ;;  %v4416_v24 = vadd.f32 %v10523_v55, %v10939_v43 }
 0x292   : > { %v5907_v28 = vadd.f32 %v5906_v2, %v5876_v14  ;;  %v5838_v35 = vadd.f32 %v5837_v20, %v5647_v44  ;;  %v5651_v46 = vadd.f32 %v7696_v45, %v5153_v38  ;;  %v5878_v58 = vmul.f32 %v5648_v37, %v5648_v37 }
 0x293   : > { %v6154_v51 = vpop.f32.mrf.mxu1  ;;  %v5536_v59 = vpop.f32.mrf.mxu0  ;;  %v6337_v50 = vadd.f32 %v6336_v34, %v6306_v21  ;;  %v5880_v2 = vmul.f32 %v5650_v9, %v5650_v9  ;;  %v6309_v62 = vmul.f32 %v7743_v49, %v7743_v49 }
 0x294   : > { %v6307_v10 = vmul.f32 %v6154_v51, %v6154_v51  ;;  %v5839_v53 = vadd.f32 %v5838_v35, %v5648_v37  ;;  %v5908_v7 = vadd.f32 %v5907_v28, %v5877_v33  ;;  %v6268_v56 = vadd.f32 %v6267_v6, %v6154_v51  ;;  %v10940_v35 = vld [vmem:[#allocation22_spill] sm:$0xff] }
 0x295   : > { %v7744_v3 = vpop.f32.mrf.mxu1  ;;  %v6972_v36 = vpack.c.bf16 %v5651_v46, %v5650_v9  ;;  %v5649_v44 = vadd.f32 %v5536_v59, %v10572_v15  ;;  %v7699_v41 = vpop.f32.mrf.mxu0  ;;  %v5881_v28 = vmul.f32 %v5651_v46, %v5651_v46 }
 0x296   : > { %v5909_v38 = vadd.f32 %v5908_v7, %v5878_v58  ;;  %v6338_v29 = vadd.f32 %v6337_v50, %v6307_v10  ;;  %v6310_v33 = vmul.f32 %v7744_v3, %v7744_v3  ;;  %v5654_v6 = vadd.f32 %v7699_v41, %v10940_v35  ;;  %v10941_v58 = vld [vmem:[#allocation23_spill] sm:$0xff] }
 0x297   : > { %v6157_v32 = vpop.f32.mrf.mxu1  ;;  %7036 = vst [vmem:[%s10612_s24 + $0x18] sm:$0xff] %v6972_v36   ;;  %v6967_v19 = vpack.c.bf16 %v5649_v44, %v5648_v37  ;;  %v5840_v16 = vadd.f32 %v5839_v53, %v5649_v44  ;;  %v5879_v11 = vmul.f32 %v5649_v44, %v5649_v44  ;;  %v5549_v20 = vpop.f32.mrf.mxu0 }
 0x298   : > { %v6269_v42 = vadd.f32 %v6268_v56, %v6157_v32  ;;  %v6308_v5 = vmul.f32 %v6157_v32, %v6157_v32  ;;  %v5652_v15 = vadd.f32 %v5549_v20, %v10581_v26  ;;  %v10942_v32 = vld [vmem:[#allocation38_spill] sm:$0xff] }
 0x299   : > { %v7747_v14 = vpop.f32.mrf.mxu1  ;;  %7035 = vst [vmem:[%s10612_s24 + $0x10] sm:$0xff] %v6967_v19   ;;  %v5841_v30 = vadd.f32 %v5840_v16, %v5650_v9  ;;  %v5910_v55 = vadd.f32 %v5909_v38, %v5879_v11  ;;  %v7700_v21 = vpop.f32.mrf.mxu0  ;;  %v4419_v9 = vadd.f32 %v10529_v31, %v10941_v58  ;;  %v10637_v41 = vadd.f32 %v10942_v32, %v4413_v0 }
 0x29a   : > { %v6270_v52 = vadd.f32 %v7743_v49, %v6269_v42  ;;  %v6339_v51 = vadd.f32 %v6338_v29, %v6308_v5  ;;  %v5655_v34 = vadd.f32 %v7700_v21, %v10584_v57  ;;  %v5882_v7 = vmul.f32 %v5652_v15, %v5652_v15 }
 0x29b   : > { %v6170_v45 = vpop.f32.mrf.mxu1  ;;  %v5911_v47 = vadd.f32 %v5910_v55, %v5880_v2  ;;  %v5842_v59 = vadd.f32 %v5841_v30, %v5651_v46  ;;  %v5552_v26 = vpop.f32.mrf.mxu0  ;;  %v10640_v46 = vadd.f32 %v10525_v39, %v4416_v24  ;;  %v5884_v11 = vmul.f32 %v5654_v6, %v5654_v6  ;;  %v10943_v24 = vld [vmem:[#allocation19_spill] sm:$0xff] }
 0x29c   : > { %v6271_v37 = vadd.f32 %v7744_v3, %v6270_v52  ;;  %v6340_v10 = vadd.f32 %v6339_v51, %v6309_v62  ;;  %v6311_v49 = vmul.f32 %v6170_v45, %v6170_v45  ;;  %v6982_v23 = vpack.c.bf16 %v5655_v34, %v5654_v6 }
 0x29d   : > { %v7748_v53 = vpop.f32.mrf.mxu1  ;;  %v5843_v17 = vadd.f32 %v5842_v59, %v5652_v15  ;;  %v5912_v50 = vadd.f32 %v5911_v47, %v5881_v28  ;;  %v5653_v3 = vadd.f32 %v5552_v26, %v10588_v27  ;;  %v7703_v57 = vpop.f32.mrf.mxu0  ;;  %v10644_v27 = vadd.f32 %v10531_v8, %v4419_v9  ;;  %v10945_v26 = vld [vmem:[#allocation32_spill] sm:$0xff] }
 0x29e   : > { %v6272_v56 = vadd.f32 %v6271_v37, %v6170_v45  ;;  %v6341_v36 = vadd.f32 %v6340_v10, %v6310_v33  ;;  %7038 = vst [vmem:[%s10612_s24 + $0x28] sm:$0xff] %v6982_v23   ;;  %v6313_v2 = vmul.f32 %v7747_v14, %v7747_v14  ;;  %v5658_v52 = vadd.f32 %v7703_v57, %v10943_v24 }
 0x29f   : > { %v6173_v44 = vpop.f32.mrf.mxu1  ;;  %v5913_v38 = vadd.f32 %v5912_v50, %v5882_v7  ;;  %v6977_v5 = vpack.c.bf16 %v5653_v3, %v5652_v15  ;;  %v5844_v29 = vadd.f32 %v5843_v17, %v5653_v3  ;;  %v5565_v16 = vpop.f32.mrf.mxu0  ;;  %v5883_v20 = vmul.f32 %v5653_v3, %v5653_v3 }
 0x2a0   : > { %v6273_v43 = vadd.f32 %v6272_v56, %v6173_v44  ;;  %v6312_v31 = vmul.f32 %v6173_v44, %v6173_v44  ;;  %v6342_v42 = vadd.f32 %v6341_v36, %v6311_v49  ;;  %v5656_v15 = vadd.f32 %v5565_v16, %v10591_v60  ;;  %v10944_v49 = vld [vmem:[#allocation18_spill] sm:$0xff] }
 0x2a1   : > { %v7751_v19 = vpop.f32.mrf.mxu1  ;;  %7037 = vst [vmem:[%s10612_s24 + $0x20] sm:$0xff] %v6977_v5   ;;  %v5845_v62 = vadd.f32 %v5844_v29, %v5654_v6  ;;  %v7704_v30 = vpop.f32.mrf.mxu0  ;;  %v5914_v55 = vadd.f32 %v5913_v38, %v5883_v20  ;;  %v6314_v21 = vmul.f32 %v7748_v53, %v7748_v53  ;;  %v5885_v47 = vmul.f32 %v5655_v34, %v5655_v34 }
 0x2a2   : > { %v6274_v0 = vadd.f32 %v7747_v14, %v6273_v43  ;;  %v6343_v39 = vadd.f32 %v6342_v42, %v6312_v31  ;;  %v5659_v45 = vadd.f32 %v7704_v30, %v10596_v13  ;;  %v4417_v58 = vadd.f32 %v10945_v26, %v10944_v49  ;;  %v10946_v43 = vld [vmem:[#allocation17_spill] sm:$0xff] }
 0x2a3   : > { %v6186_v33 = vpop.f32.mrf.mxu1  ;;  %v5846_v28 = vadd.f32 %v5845_v62, %v5655_v34  ;;  %v5568_v14 = vpop.f32.mrf.mxu0  ;;  %v5915_v6 = vadd.f32 %v5914_v55, %v5884_v11  ;;  %v4420_v31 = vadd.f32 %v10538_v22, %v10946_v43  ;;  %v5888_v38 = vmul.f32 %v5658_v52, %v5658_v52  ;;  %v10947_v11 = vld [vmem:[#allocation27_spill] sm:$0xff] }
 0x2a4   : > { %v6275_v51 = vadd.f32 %v7748_v53, %v6274_v0  ;;  %v6344_v8 = vadd.f32 %v6343_v39, %v6313_v2  ;;  %v6315_v35 = vmul.f32 %v6186_v33, %v6186_v33  ;;  %v6992_v59 = vpack.c.bf16 %v5659_v45, %v5658_v52 }
 0x2a5   : > { %v7752_v37 = vpop.f32.mrf.mxu1  ;;  %v5847_v9 = vadd.f32 %v5846_v28, %v5656_v15  ;;  %v5657_v60 = vadd.f32 %v5568_v14, %v10599_v25  ;;  %v7707_v13 = vpop.f32.mrf.mxu0  ;;  %v5886_v53 = vmul.f32 %v5656_v15, %v5656_v15  ;;  %v5916_v23 = vadd.f32 %v5915_v6, %v5885_v47 }
 0x2a6   : > { %v6276_v10 = vadd.f32 %v6275_v51, %v6186_v33  ;;  %v6345_v7 = vadd.f32 %v6344_v8, %v6314_v21  ;;  %7040 = vst [vmem:[%s10612_s24 + $0x38] sm:$0xff] %v6992_v59   ;;  %v6317_v5 = vmul.f32 %v7751_v19, %v7751_v19  ;;  %v5662_v20 = vadd.f32 %v7707_v13, %v10947_v11 }
 0x2a7   : > { %v6189_v56 = vpop.f32.mrf.mxu1  ;;  %v6987_v34 = vpack.c.bf16 %v5657_v60, %v5656_v15  ;;  %v5848_v3 = vadd.f32 %v5847_v9, %v5657_v60  ;;  %v5887_v44 = vmul.f32 %v5657_v60, %v5657_v60  ;;  %v5581_v32 = vpop.f32.mrf.mxu0  ;;  %v5917_v42 = vadd.f32 %v5916_v23, %v5886_v53 }
 0x2a8   : > { %v6277_v17 = vadd.f32 %v6276_v10, %v6189_v56  ;;  %v6316_v50 = vmul.f32 %v6189_v56, %v6189_v56  ;;  %v6346_v36 = vadd.f32 %v6345_v7, %v6315_v35  ;;  %v5660_v39 = vadd.f32 %v5581_v32, %v10602_v48  ;;  %v10948_v35 = vld [vmem:[#allocation42_spill] sm:$0xff] }
 0x2a9   : > { %v7755_v57 = vpop.f32.mrf.mxu1  ;;  %7039 = vst [vmem:[%s10612_s24 + $0x30] sm:$0xff] %v6987_v34   ;;  %v5849_v29 = vadd.f32 %v5848_v3, %v5658_v52  ;;  %v7708_v2 = vpop.f32.mrf.mxu0  ;;  %v5918_v62 = vadd.f32 %v5917_v42, %v5887_v44  ;;  %v6318_v30 = vmul.f32 %v7752_v37, %v7752_v37  ;;  %v5889_v21 = vmul.f32 %v5659_v45, %v5659_v45  ;;  %v10949_v34 = vld [vmem:[#allocation35_spill] sm:$0xff] }
 0x2aa   : > { %v6278_v25 = vadd.f32 %v7751_v19, %v6277_v17  ;;  %v6347_v16 = vadd.f32 %v6346_v36, %v6316_v50  ;;  %v5663_v33 = vadd.f32 %v7708_v2, %v10605_v1  ;;  %v10661_v14 = vadd.f32 %v10948_v35, %v4417_v58 }
 0x2ab   : > { %v6202_v0 = vpop.f32.mrf.mxu1  ;;  %v5850_v22 = vadd.f32 %v5849_v29, %v5659_v45  ;;  %v5584_v19 = vpop.f32.mrf.mxu0  ;;  %v5919_v52 = vadd.f32 %v5918_v62, %v5888_v38  ;;  %v10666_v58 = vadd.f32 %v10542_v18, %v4420_v31  ;;  %v5892_v53 = vmul.f32 %v5662_v20, %v5662_v20  ;;  %v10950_v62 = vld [vmem:[#allocation24_spill] sm:$0xff] }
 0x2ac   : > { %v6279_v24 = vadd.f32 %v7752_v37, %v6278_v25  ;;  %v6348_v55 = vadd.f32 %v6347_v16, %v6317_v5  ;;  %v6319_v15 = vmul.f32 %v6202_v0, %v6202_v0  ;;  %v7002_v28 = vpack.c.bf16 %v5663_v33, %v5662_v20 }
 0x2ad   : > { %v7756_v51 = vpop.f32.mrf.mxu1  ;;  %v5851_v47 = vadd.f32 %v5850_v22, %v5660_v39  ;;  %v5661_v48 = vadd.f32 %v5584_v19, %v10608_v12  ;;  %v7711_v1 = vpop.f32.mrf.mxu0  ;;  %v5890_v37 = vmul.f32 %v5660_v39, %v5660_v39  ;;  %v5920_v59 = vadd.f32 %v5919_v52, %v5889_v21 }
 0x2ae   : > { %v6280_v8 = vadd.f32 %v6279_v24, %v6202_v0  ;;  %v6349_v6 = vadd.f32 %v6348_v55, %v6318_v30  ;;  %7042 = vst [vmem:[%s10612_s24 + $0x48] sm:$0xff] %v7002_v28   ;;  %v6321_v17 = vmul.f32 %v7755_v57, %v7755_v57  ;;  %v5666_v3 = vadd.f32 %v7711_v1, %v10949_v34 }
 0x2af   : > { %v6205_v10 = vpop.f32.mrf.mxu1  ;;  %v6997_v45 = vpack.c.bf16 %v5661_v48, %v5660_v39  ;;  %v5852_v7 = vadd.f32 %v5851_v47, %v5661_v48  ;;  %v5891_v60 = vmul.f32 %v5661_v48, %v5661_v48  ;;  %v5597_v13 = vpop.f32.mrf.mxu0  ;;  %v5921_v23 = vadd.f32 %v5920_v59, %v5890_v37  ;;  %v10951_v47 = vld [vmem:[#allocation25_spill] sm:$0xff]  ;;  %v10952_v59 = vld [vmem:[#allocation31_spill] sm:$0xff] }
 0x2b0   : > { %v6281_v49 = vadd.f32 %v6280_v8, %v6205_v10  ;;  %v6320_v26 = vmul.f32 %v6205_v10, %v6205_v10  ;;  %v6350_v9 = vadd.f32 %v6349_v6, %v6319_v15  ;;  %v5664_v38 = vadd.f32 %v5597_v13, %v10616_v40 }
 0x2b1   : > { %v7759_v56 = vpop.f32.mrf.mxu1  ;;  %7041 = vst [vmem:[%s10612_s24 + $0x40] sm:$0xff] %v6997_v45   ;;  %v5853_v50 = vadd.f32 %v5852_v7, %v5662_v20  ;;  %v7712_v32 = vpop.f32.mrf.mxu0  ;;  %v5922_v43 = vadd.f32 %v5921_v23, %v5891_v60  ;;  %v6322_v5 = vmul.f32 %v7756_v51, %v7756_v51  ;;  %v5893_v11 = vmul.f32 %v5663_v33, %v5663_v33 }
 0x2b2   : > { %v6282_v12 = vadd.f32 %v7755_v57, %v6281_v49  ;;  %v6351_v36 = vadd.f32 %v6350_v9, %v6320_v26  ;;  %v5667_v25 = vadd.f32 %v7712_v32, %v10619_v61  ;;  %v4423_v39 = vadd.f32 %v10544_v54, %v10950_v62 }
 0x2b3   : > { %v6218_v44 = vpop.f32.mrf.mxu1  ;;  %v5854_v31 = vadd.f32 %v5853_v50, %v5663_v33  ;;  %v5600_v57 = vpop.f32.mrf.mxu0  ;;  %v5923_v20 = vadd.f32 %v5922_v43, %v5892_v53  ;;  %v5894_v22 = vmul.f32 %v5664_v38, %v5664_v38  ;;  %v4421_v54 = vadd.f32 %v10554_v63, %v10951_v47 }
 0x2b4   : > { %v6283_v42 = vadd.f32 %v7756_v51, %v6282_v12  ;;  %v6352_v18 = vadd.f32 %v6351_v36, %v6321_v17  ;;  %v6323_v29 = vmul.f32 %v6218_v44, %v6218_v44  ;;  %v7012_v2 = vpack.c.bf16 %v5667_v25, %v5666_v3 }
 0x2b5   : > { %v7760_v16 = vpop.f32.mrf.mxu1  ;;  %v5855_v24 = vadd.f32 %v5854_v31, %v5664_v38  ;;  %v5665_v40 = vadd.f32 %v5600_v57, %v10637_v41  ;;  %v7715_v61 = vpop.f32.mrf.mxu0  ;;  %v5924_v15 = vadd.f32 %v5923_v20, %v5893_v11  ;;  %v5896_v6 = vmul.f32 %v5666_v3, %v5666_v3 }
 0x2b6   : > { %v6284_v0 = vadd.f32 %v6283_v42, %v6218_v44  ;;  %v6353_v30 = vadd.f32 %v6352_v18, %v6322_v5  ;;  %7044 = vst [vmem:[%s10612_s24 + $0x58] sm:$0xff] %v7012_v2   ;;  %v6325_v10 = vmul.f32 %v7759_v56, %v7759_v56  ;;  %v5670_v49 = vadd.f32 %v7715_v61, %v10952_v59 }
 0x2b7   : > { %v6221_v55 = vpop.f32.mrf.mxu1  ;;  %v7007_v33 = vpack.c.bf16 %v5665_v40, %v5664_v38  ;;  %v5856_v52 = vadd.f32 %v5855_v24, %v5665_v40  ;;  %v5895_v8 = vmul.f32 %v5665_v40, %v5665_v40  ;;  %v5613_v35 = vpop.f32.mrf.mxu0  ;;  %v5925_v48 = vadd.f32 %v5924_v15, %v5894_v22  ;;  %v10954_v40 = vld [vmem:[#allocation33_spill] sm:$0xff] }
 0x2b8   : > { %v6285_v51 = vadd.f32 %v6284_v0, %v6221_v55  ;;  %v6324_v19 = vmul.f32 %v6221_v55, %v6221_v55  ;;  %v6354_v21 = vadd.f32 %v6353_v30, %v6323_v29  ;;  %v5668_v7 = vadd.f32 %v5613_v35, %v10640_v46  ;;  %v10953_v0 = vld [vmem:[#allocation34_spill] sm:$0xff] }
 0x2b9   : > { %v7763_v28 = vpop.f32.mrf.mxu1  ;;  %7043 = vst [vmem:[%s10612_s24 + $0x50] sm:$0xff] %v7007_v33   ;;  %v5857_v1 = vadd.f32 %v5856_v52, %v5666_v3  ;;  %v7716_v9 = vpop.f32.mrf.mxu0  ;;  %v5926_v45 = vadd.f32 %v5925_v48, %v5895_v8  ;;  %v6326_v53 = vmul.f32 %v7760_v16, %v7760_v16  ;;  %v5897_v50 = vmul.f32 %v5667_v25, %v5667_v25 }
 0x2ba   : > { %v6286_v41 = vadd.f32 %v7759_v56, %v6285_v51  ;;  %v6355_v37 = vadd.f32 %v6354_v21, %v6324_v19  ;;  %v5671_v13 = vadd.f32 %v7716_v9, %v10644_v27  ;;  %v5177_v44 = vadd.f32 %v10552_v4, %v4423_v39 }
 0x2bb   : > { %v6234_v26 = vpop.f32.mrf.mxu1  ;;  %v5858_v63 = vadd.f32 %v5857_v1, %v5667_v25  ;;  %v5616_v56 = vpop.f32.mrf.mxu0  ;;  %v5927_v36 = vadd.f32 %v5926_v45, %v5896_v6  ;;  %v5898_v27 = vmul.f32 %v5668_v7, %v5668_v7  ;;  %v5175_v4 = vadd.f32 %v10953_v0, %v4421_v54 }
 0x2bc   : > { %v6287_v60 = vadd.f32 %v7760_v16, %v6286_v41  ;;  %v6356_v23 = vadd.f32 %v6355_v37, %v6325_v10  ;;  %v6327_v12 = vmul.f32 %v6234_v26, %v6234_v26  ;;  %v7022_v3 = vpack.c.bf16 %v5671_v13, %v5670_v49 }
 0x2bd   : > { %v7764_v17 = vpop.f32.mrf.mxu1  ;;  %v5859_v32 = vadd.f32 %v5858_v63, %v5668_v7  ;;  %v5669_v46 = vadd.f32 %v5616_v56, %v10661_v14  ;;  %v7719_v42 = vpop.f32.mrf.mxu0  ;;  %v5928_v5 = vadd.f32 %v5927_v36, %v5897_v50  ;;  %v5900_v2 = vmul.f32 %v5670_v49, %v5670_v49 }
 0x2be   : > { %v6288_v34 = vadd.f32 %v6287_v60, %v6234_v26  ;;  %v6357_v43 = vadd.f32 %v6356_v23, %v6326_v53  ;;  %7046 = vst [vmem:[%s10612_s24 + $0x68] sm:$0xff] %v7022_v3   ;;  %v6329_v14 = vmul.f32 %v7763_v28, %v7763_v28  ;;  %v5674_v55 = vadd.f32 %v7719_v42, %v10954_v40 }
 0x2bf   : > { %v6237_v38 = vpop.f32.mrf.mxu1  ;;  %v7017_v16 = vpack.c.bf16 %v5669_v46, %v5668_v7  ;;  %v5860_v25 = vadd.f32 %v5859_v32, %v5669_v46  ;;  %v5899_v57 = vmul.f32 %v5669_v46, %v5669_v46  ;;  %v5629_v20 = vpop.f32.mrf.mxu0  ;;  %v5929_v62 = vadd.f32 %v5928_v5, %v5898_v27 }
 0x2c0   : > { %v6289_v18 = vadd.f32 %v6288_v34, %v6237_v38  ;;  %v6328_v31 = vmul.f32 %v6237_v38, %v6237_v38  ;;  %v6358_v29 = vadd.f32 %v6357_v43, %v6327_v12  ;;  %v5672_v51 = vadd.f32 %v5629_v20, %v10666_v58 }
 0x2c1   : > { %v7767_v11 = vpop.f32.mrf.mxu1  ;;  %7045 = vst [vmem:[%s10612_s24 + $0x60] sm:$0xff] %v7017_v16   ;;  %v5861_v24 = vadd.f32 %v5860_v25, %v5670_v49  ;;  %v7720_v22 = vpop.f32.mrf.mxu0  ;;  %v5930_v15 = vadd.f32 %v5929_v62, %v5899_v57  ;;  %v6330_v33 = vmul.f32 %v7764_v17, %v7764_v17  ;;  %v5901_v54 = vmul.f32 %v5671_v13, %v5671_v13 }
 0x2c2   : > { %v6290_v39 = vadd.f32 %v7763_v28, %v6289_v18  ;;  %v6359_v30 = vadd.f32 %v6358_v29, %v6328_v31  ;;  %v10689_v21 = vadd.f32 %v7720_v22, %v5177_v44  ;;  %v5902_v59 = vmul.f32 %v5672_v51, %v5672_v51 }
 0x2c3   : > { %v6250_v61 = vpop.f32.mrf.mxu1  ;;  %v5862_v8 = vadd.f32 %v5861_v24, %v5671_v13  ;;  %v5632_v47 = vpop.f32.mrf.mxu0  ;;  %v5931_v6 = vadd.f32 %v5930_v15, %v5900_v2  ;;  %v6333_v63 = vmul.f32 %v7767_v11, %v7767_v11  ;;  %v5904_v56 = vmul.f32 %v5674_v55, %v5674_v55 }
 0x2c4   : > { %v6291_v19 = vadd.f32 %v7764_v17, %v6290_v39  ;;  %v6360_v52 = vadd.f32 %v6359_v30, %v6329_v14  ;;  %v6331_v28 = vmul.f32 %v6250_v61, %v6250_v61  ;;  %v7032_v41 = vpack.c.bf16 %v10689_v21, %v5674_v55 }
 0x2c5   : > { %v7768_v35 = vpop.f32.mrf.mxu1  ;;  %v5863_v10 = vadd.f32 %v5862_v8, %v5672_v51  ;;  %v5673_v58 = vadd.f32 %v5632_v47, %v5175_v4  ;;  %v5932_v49 = vadd.f32 %v5931_v6, %v5901_v54 }
 0x2c6   : > { %v6292_v48 = vadd.f32 %v6291_v19, %v6250_v61  ;;  %v6361_v1 = vadd.f32 %v6360_v52, %v6330_v33  ;;  %7048 = vst [vmem:[%s10612_s24 + $0x78] sm:$0xff] %v7032_v41  }
 0x2c7   : > { %v6253_v37 = vpop.f32.mrf.mxu1  ;;  %v7027_v7 = vpack.c.bf16 %v5673_v58, %v5672_v51  ;;  %v5864_v60 = vadd.f32 %v5863_v10, %v5673_v58  ;;  %v5903_v13 = vmul.f32 %v5673_v58, %v5673_v58  ;;  %v5933_v53 = vadd.f32 %v5932_v49, %v5902_v59 }
 0x2c8   : > { %v6293_v26 = vadd.f32 %v6292_v48, %v6253_v37  ;;  %v6332_v9 = vmul.f32 %v6253_v37, %v6253_v37  ;;  %v6362_v45 = vadd.f32 %v6361_v1, %v6331_v28 }
 0x2c9   : > { %7047 = vst [vmem:[%s10612_s24 + $0x70] sm:$0xff] %v7027_v7   ;;  %v5865_v12 = vadd.f32 %v5864_v60, %v5674_v55  ;;  %v5934_v50 = vadd.f32 %v5933_v53, %v5903_v13 }
 0x2ca   : > { %v6294_v23 = vadd.f32 %v7767_v11, %v6293_v26  ;;  %v6363_v17 = vadd.f32 %v6362_v45, %v6332_v9 }
 0x2cc   : > { %v6295_v36 = vadd.f32 %v7768_v35, %v6294_v23 }
 0x2cd   : > { %8140 = shalt.err (!%p8137_p3)
}
 0x2ce   : > { %s8141_s17 = scalar_lea.hbm %s10698_s16, 2048  ;;  %s8145_s14 = scalar_lea.hbm %s10813_s3, 4096 }
 0x2cf   : > { %p8142_p11 = scmp.ne.s32.totalorder %s10698_s16, %s8141_s17  ;;  %p8146_p4 = scmp.lt.s32.totalorder %s10698_s16, %s10813_s3 }
 0x2d0   : > { %p8147_p6 = scmp.lt.s32.totalorder %s8145_s14, %s8141_s17 }
 0x2d1   : > { %p8143_p9 = pnand %p8142_p11, %p10955_p2 }
 0x2d2   : > { %p8148_p8 = por %p8147_p6, %p8146_p4 }
 0x2d3   : > { %p8144_p1 = pneg %p8143_p9 }
 0x2d5   : > { %p8149_p5 = pnand %p8148_p8, %p8144_p1 }
 0x2d7   : > { %8152 = shalt.err (!%p8149_p5)
}
 0x2d8   : > { %s8260_s11 = smov 64   ;;  %s8261_s13 = smov 4   ;;  %v6334_v34 = vmul.f32 %v7768_v35, %v7768_v35  ;;  %v5866_v3 = vadd.f32 %v5865_v12, %v10689_v21  ;;  %v6364_v44 = vadd.f32 %v6363_v17, %v6333_v63  ;;  %v5905_v32 = vmul.f32 %v10689_v21, %v10689_v21 }
 0x2d9   : > { %7779 = dma.vmem_to_hbm [thread:$0]  (%p10955_p2), %s10700_s9, 2048, %s10698_s16, %s6374_s30, %s8260_s11, %s8260_s11, %s8261_s13   ;;  %v5935_v43 = vadd.f32 %v5934_v50, %v5904_v56  ;;  %v6296_v46 = vrot.slane %v6295_v36, 4 }
 0x2da   : > { %v5867_v38 = vrot.slane %v5866_v3, 4  ;;  %v6365_v42 = vadd.f32 %v6364_v44, %v6334_v34  ;;  %s6589_s9 = sshll.u32 %s8432_s23, 1  ;;  %s6378_s16 = sand.u32 1, %s8315_s22  }
 0x2db   : > { %v5936_v27 = vadd.f32 %v5935_v43, %v5905_v32  ;;  %v6297_v5 = vadd.f32 %v6296_v46, %v6295_v36  ;;  %s6916_s30 = sshll.u32 %s8315_s22, 5  ;;  %s282_s10 = scalar_lea.vmem [#allocation10], %s6589_s9 }
 0x2dc   : > { %v5868_v18 = vadd.f32 %v5867_v38, %v5866_v3  ;;  %v6366_v31 = vrot.slane %v6365_v42, 4  ;;  %s6413_s12 = sshll.u32 %s282_s10, 4  ;;  %s289_s29 = scalar_lea.vmem [#allocation12], %s6589_s9  ;;  %s10737_s12 = int_to_ptr.vmem [resolvable:$true] %s6413_s12 }
 0x2dd   : > { %v5937_v29 = vrot.slane %v5936_v27, 4  ;;  %v6298_v16 = vrot.slane %v6297_v5, 2  ;;  %s6426_s6 = sshll.u32 %s289_s29, 4  ;;  %s10735_s8 = scalar_lea.hbm %s10814_s4, %s6916_s30  ;;  %s10744_s6 = int_to_ptr.vmem [resolvable:$true] %s6426_s6 }
 0x2de   : > { %v5869_v25 = vrot.slane %v5868_v18, 2  ;;  %v6367_v57 = vadd.f32 %v6366_v31, %v6365_v42  ;;  %s10742_s22 = scalar_lea.hbm %s10815_s5, %s6916_s30  ;;  %s10746_s24 = scalar_lea.sflag [#allocation11], %s6378_s16 }
 0x2df   : > { %v5938_v11 = vadd.f32 %v5937_v29, %v5936_v27  ;;  %v6299_v20 = vadd.f32 %v6298_v16, %v6297_v5  ;;  %s8153_s26 = scalar_lea.vmem %s10737_s12, 32  ;;  %s8262_s11 = smov [#allocation10]  }
 0x2e0   : > { %v5870_v0 = vadd.f32 %v5869_v25, %v5868_v18  ;;  %v6368_v4 = vrot.slane %v6367_v57, 2  ;;  %p8154_p7 = scmp.ne.s32.totalorder %s10737_s12, %s8153_s26  ;;  %s8157_s13 = sshll.u32 %s8262_s11, 4  ;;  %s8158_s13 = int_to_ptr.vmem [resolvable:$false] %s8157_s13 }
 0x2e1   : > { %v5939_v2 = vrot.slane %v5938_v11, 2  ;;  %v6300_v62 = vrot.slane %v6299_v20, 1  ;;  %s8159_s9 = scalar_lea.vmem %s8158_s13, 64  ;;  %p8160_p0 = scmp.lt.s32.totalorder %s10737_s12, %s8158_s13 }
 0x2e2   : > { %v6369_v39 = vadd.f32 %v6368_v4, %v6367_v57  ;;  %v5871_v14 = vrot.slane %v5870_v0, 1  ;;  %p8155_p12 = pnand %p8154_p7, %p10955_p2  ;;  %p8161_p10 = scmp.lt.s32.totalorder %s8159_s9, %s8153_s26 }
 0x2e3   : > { %v6301_v24 = vadd.f32 %v6300_v62, %v6299_v20  ;;  %v5940_v30 = vadd.f32 %v5939_v2, %v5938_v11 }
 0x2e4   : > { %v6370_v40 = vrot.slane %v6369_v39, 1  ;;  %v5872_v55 = vadd.f32 %v5871_v14, %v5870_v0  ;;  %p8156_p13 = pneg %p8155_p12  ;;  %p8162_p3 = por %p8161_p10, %p8160_p0 }
 0x2e5   : > { %v5941_v61 = vrot.slane %v5940_v30, 1  ;;  %6302 = vst [vmem:[%s289_s29] sm:$0x1] %v6301_v24 }
 0x2e6   : > { %v6371_v22 = vadd.f32 %v6370_v40, %v6369_v39  ;;  %5873 = vst [vmem:[%s282_s10] sm:$0x1] %v5872_v55  ;;  %p8163_p11 = pnand %p8162_p3, %p8156_p13 }
 0x2e7   : > { %v5942_v15 = vadd.f32 %v5941_v61, %v5940_v30 }
 0x2e8   : > { %6372 = vst [vmem:[%s289_s29 + $0x1] sm:$0x1] %v6371_v22 }
 0x2e9   : > { %5943 = vst [vmem:[%s282_s10 + $0x1] sm:$0x1] %v5942_v15 }
 0x2ea   : > { %8166 = shalt.err (!%p8163_p11)
}
 0x2eb   : > { %s8167_s16 = scalar_lea.hbm %s10735_s8, 32  ;;  %s8171_s29 = scalar_lea.hbm %s10814_s4, 64 }
 0x2ec   : > { %p8168_p9 = scmp.ne.s32.totalorder %s10735_s8, %s8167_s16  ;;  %p8172_p6 = scmp.lt.s32.totalorder %s10735_s8, %s10814_s4 }
 0x2ed   : > { %p8173_p8 = scmp.lt.s32.totalorder %s8171_s29, %s8167_s16 }
 0x2ee   : > { %p8169_p1 = pnand %p8168_p9, %p10955_p2 }
 0x2ef   : > { %p8174_p5 = por %p8173_p8, %p8172_p6 }
 0x2f0   : > { %p8170_p4 = pneg %p8169_p1 }
 0x2f2   : > { %p8175_p7 = pnand %p8174_p5, %p8170_p4 }
 0x2f4   : > { %8178 = shalt.err (!%p8175_p7)
}
 0x2f5   : > { %7780 = dma.vmem_to_hbm [thread:$0]  (%p10955_p2), %s10737_s12, 32, %s10735_s8, %s10746_s24  }
 0x2f6   : > { %s8179_s7 = scalar_lea.vmem %s10744_s6, 32  ;;  %s8263_s14 = smov [#allocation12]  }
 0x2f7   : > { %p8180_p12 = scmp.ne.s32.totalorder %s10744_s6, %s8179_s7  ;;  %s8183_s26 = sshll.u32 %s8263_s14, 4  ;;  %s8184_s26 = int_to_ptr.vmem [resolvable:$false] %s8183_s26 }
 0x2f8   : > { %s8185_s11 = scalar_lea.vmem %s8184_s26, 64  ;;  %p8186_p10 = scmp.lt.s32.totalorder %s10744_s6, %s8184_s26 }
 0x2f9   : > { %p8181_p13 = pnand %p8180_p12, %p10955_p2  ;;  %p8187_p3 = scmp.lt.s32.totalorder %s8185_s11, %s8179_s7 }
 0x2fb   : > { %p8182_p0 = pneg %p8181_p13  ;;  %p8188_p11 = por %p8187_p3, %p8186_p10 }
 0x2fd   : > { %p8189_p9 = pnand %p8188_p11, %p8182_p0 }
 0x2ff   : > { %8192 = shalt.err (!%p8189_p9)
}
 0x300   : > { %s8193_s13 = scalar_lea.hbm %s10742_s22, 32  ;;  %s8197_s9 = scalar_lea.hbm %s10815_s5, 64 }
 0x301   : > { %p8194_p1 = scmp.ne.s32.totalorder %s10742_s22, %s8193_s13  ;;  %p8198_p8 = scmp.lt.s32.totalorder %s10742_s22, %s10815_s5 }
 0x302   : > { %p8199_p5 = scmp.lt.s32.totalorder %s8197_s9, %s8193_s13 }
 0x303   : > { %p8195_p4 = pnand %p8194_p1, %p10955_p2 }
 0x304   : > { %p8200_p7 = por %p8199_p5, %p8198_p8 }
 0x305   : > { %p8196_p6 = pneg %p8195_p4 }
 0x307   : > { %p8201_p12 = pnand %p8200_p7, %p8196_p6 }
 0x309   : > { %8204 = shalt.err (!%p8201_p12)
}
 0x30a   : > { %7781 = dma.vmem_to_hbm [thread:$0]  (%p10955_p2), %s10744_s6, 32, %s10742_s22, %s10746_s24  }
 0x30b PF: > { %s6438_s10 = sand.u32 1, %s8239_s18   ;;  %p10956_p13 = scmp.ne.s32.totalorder %s10826_s25, 0 }
 0x30c   : > { %p10957_p0 = scmp.ge.s32.totalorder %s8251_s21, 2  ;;  %s6439_s29 = scalar_lea.sflag [#allocation5], %s6438_s10 }
 0x30e   : > { %p7797_p10 = pnand %p10957_p0, %p10956_p13 }
 0x310   : > { %p7798_p3 = pneg %p7797_p10 }
 0x312   : > { %8230 = dma.done.wait (%p7798_p3), %s6439_s29, 2048  }
 0x313   : > { %8232 = vsyncadd (%p7798_p3), %s6439_s29, 4294965248  ;;  %s10958_s23 = sadd.s32 4294967294, %s8251_s21  }
 0x314   : > { %s6447_s17 = sand.u32 1, %s10958_s23  }
 0x315   : > { %s6448_s27 = scalar_lea.sflag [#allocation11], %s6447_s17 }
 0x316   : > { %8234 = dma.done.wait (%p7798_p3), %s6448_s27, 64  }
 0x317   : > { %8236 = vsyncadd (%p7798_p3), %s6448_s27, 4294967232  ;;  %p23_p2 = scmp.ge.s32.totalorder %s8374_s15, 4   ;;  %s10959_s18 = smov %s8243_s19 }
 0x318   : > { %s10960_s19 = smov %s8247_s20  ;;  %s10961_s20 = smov %s8390_s28 }
 0x319   : > { %s10962_s21 = smov %s8374_s15  ;;  %25 = sbr.rel (!%p23_p2) target bundleno = 8 (0x8), region = 128 }
 0x31e   :  { %6462 = vsyncpa [#allocation4], 1 }
 0x31f   :  { %6464 = vsyncpa [#allocation4 + $0x1], 1 }
 0x320   :  { %6465 = vsyncpa [#allocation7], 1 }
 0x321   :  { %6466 = vsyncpa [#allocation5], 1 }
 0x322   :  { %6468 = vsyncpa [#allocation5 + $0x1], 1 }
 0x323   :  { %6469 = vsyncpa [#allocation11], 1 }
 0x324   :  { %6471 = vsyncpa [#allocation11 + $0x1], 1 }

</bundles_post_ra>
